<compile_context>
chip_gen: v5e
topology: v5e:2x2
jax: 0.10.0
libtpu: 0.0.40
codegen_flags: <defaults>
</compile_context>

<pallas_src>
import functools

import numpy as np
import jax
import jax.numpy as jnp
from jax.experimental import pallas as pl
from jax.experimental.pallas import tpu as pltpu


def _mm(a, b):
    return jnp.dot(a, b, preferred_element_type=jnp.float32)


def pf_unfolding_kernel(p1_ref, c_ref, p3_ref, hct_ref, u_ref, w_ref, p4_ref,
                        out_ref, *, M, N, Nr, G):
    """One grid step == one block of G users (G is VMEM/code-size capped).

    Per-user operands (leading block axis = user within block), all stacked
    [real; imag] along the sublane axis:
      p1_ref  : (G, 2M, M )  [P1r; P1i]
      c_ref   : (G, 2M, M )  [Cr ; Ci ]   with C = inv(B)
      p3_ref  : (G, 2M, M )  [P3r; P3i]
      hct_ref : (G, 2M, Nr)  [alpha*Hr^T; -alpha*Hi^T]  (conjT + alpha folded)
      u_ref   : (G, 2Nr, N)  [Ur ; Ui ]
      w_ref   : (G, 2N, N )  [Wr ; Wi ]
      p4_ref  : (G, 2M, N )  [P4r; P4i]
      out_ref : (1, 2M, G*N) [Or ; Oi], user u occupies lanes [u*N, (u+1)*N)
    """
    for u in range(G):  # G <= 8: bounded static unroll (see _pick_users_per_block)
        # ---- B_inv = P1 @ inv(B) + P3 : stacked-LHS trick (2 matmuls) ----
        p1 = p1_ref[u]                                     # (2M, M)
        x0 = _mm(p1, c_ref[u, :M])                         # [P1r@Cr ; P1i@Cr]
        x1 = _mm(p1, c_ref[u, M:])                         # [P1r@Ci ; P1i@Ci]
        binv_r = x0[:M] - x1[M:] + p3_ref[u, :M]           # (M, M)
        binv_i = x1[:M] + x0[M:] + p3_ref[u, M:]

        # ---- T1 = B_inv @ (alpha * conjT(Hbar)) : components kept separate ----
        hct_r = hct_ref[u, :M]                             # (M, Nr)
        hct_i = hct_ref[u, M:]
        t1_r = _mm(binv_r, hct_r) - _mm(binv_i, hct_i)     # (M, Nr)
        t1_i = _mm(binv_r, hct_i) + _mm(binv_i, hct_r)

        # ---- T2 = U @ W : stacked-LHS trick (2 matmuls) ----
        us = u_ref[u]                                      # (2Nr, N)
        z0 = _mm(us, w_ref[u, :N])                         # [Ur@Wr ; Ui@Wr]
        z1 = _mm(us, w_ref[u, N:])                         # [Ur@Wi ; Ui@Wi]
        t2_r = z0[:Nr] - z1[Nr:]                           # (Nr, N)
        t2_i = z1[:Nr] + z0[Nr:]

        # ---- out = T1 @ T2 + P4 : halves written directly (no concatenate) ----
        col = slice(u * N, (u + 1) * N)
        out_ref[0, :M, col] = _mm(t1_r, t2_r) - _mm(t1_i, t2_i) + p4_ref[u, :M]
        out_ref[0, M:, col] = _mm(t1_r, t2_i) + _mm(t1_i, t2_r) + p4_ref[u, M:]


# ------------------------------ host-side glue ------------------------------

def _stack(r, i):
    """Complex stacked form [r; i] along the row (sublane) axis."""
    return jnp.concatenate([r, i], axis=-2)


def complex_inv_cols(Br, Bi):
    """[Re(inv(B)); Im(inv(B))] of shape (..., 2M, M), computed via one real
    2Mx2M solve against the first M identity columns (only the left M columns
    of the block inverse are ever used -> half the back-substitution work)."""
    M = Br.shape[-1]
    big = jnp.concatenate(
        [jnp.concatenate([Br, -Bi], axis=-1),
         jnp.concatenate([Bi, Br], axis=-1)], axis=-2)             # (.., 2M, 2M)
    eye_cols = jnp.broadcast_to(jnp.eye(2 * M, M, dtype=Br.dtype),
                                Br.shape[:-2] + (2 * M, M))
    return jnp.linalg.solve(big, eye_cols)                         # (.., 2M, M)


def _round_up(x, m):
    return ((x + m - 1) // m) * m


def _vreg_tile_bytes(rows, cols, itemsize=4):
    """f32 VMEM footprint of a (rows, cols) tile after (8, 128) padding."""
    return _round_up(rows, 8) * _round_up(cols, 128) * itemsize


def _pick_users_per_block(num_users, M, N, Nr, *,
                          vmem_block_budget_bytes=4 << 20, unroll_cap=8):
    """VMEM-budgeted users-per-block, bounded independently of num_users so the
    grid gets many steps and the double-buffered blocks stay well inside the
    scoped VMEM of v5e (16 MiB default), v6e (32 MiB) and v7x (32 MiB scoped /
    64 MiB physical)."""
    per_user = 2 * (3 * _vreg_tile_bytes(2 * M, M)      # P1, inv(B), P3
                    + _vreg_tile_bytes(2 * M, Nr)       # alpha*conjT(Hbar)
                    + _vreg_tile_bytes(2 * Nr, N)       # U
                    + _vreg_tile_bytes(2 * N, N)        # W
                    + _vreg_tile_bytes(2 * M, N))       # P4  (x2 = double buffer)
    g_cap = max(1, min(unroll_cap, vmem_block_budget_bytes // per_user))
    if num_users >= 2:                   # keep >= 2 grid steps for pipelining
        g_cap = min(g_cap, max(1, num_users // 2))
    g = 1
    for d in range(1, min(g_cap, num_users) + 1):
        if num_users % d == 0:
            g = d
    return g


def pack_pf_params(params1, params3, params4):
    """One-time repack of the learnable per-user parameters into the kernel's
    stacked [r; i] layout (hoisted out of the per-call path)."""
    f32 = jnp.float32
    p1 = _stack(params1[:, 0], params1[:, 1]).astype(f32)          # (U, 2M, M)
    p3 = _stack(params3[:, 0], params3[:, 1]).astype(f32)          # (U, 2M, M)
    p4 = _stack(params4[:, 0], params4[:, 1]).astype(f32)          # (U, 2M, N)
    return p1, p3, p4


@functools.partial(jax.jit, static_argnames=("users_per_block",))
def pf_unfolding_forward(packed_params, B, Hbar, U, W, alpha, *,
                         users_per_block=None):
    """packed_params = pack_pf_params(...).  B/Hbar/U/W use the PyTorch layout
    (2, rows, cols, num_users); output is (2, M, N, num_users)."""
    P1_s, P3_s, P4_s = packed_params
    num_users, _, M = P1_s.shape
    N = P4_s.shape[-1]
    Nr = Hbar.shape[1]
    f32 = jnp.float32

    # per-call repack of the channel inputs to user-major, stacked [r; i]
    to_um = lambda x: jnp.transpose(x, (3, 0, 1, 2)).astype(f32)   # (U, 2, r, c)
    B_u, H_u, U_u, W_u = (to_um(x) for x in (B, Hbar, U, W))
    alpha = jnp.asarray(alpha, f32)

    # TODO(synk): cdiv (complex matrix inverse) has no Pallas solver primitive;
    # it is computed here as a batched real solve and overlapped with the
    # kernel by XLA (cost_estimate below). The matmul chain runs in the kernel.
    BinvC = complex_inv_cols(B_u[:, 0], B_u[:, 1])                 # (U, 2M, M)

    # conjT(Hbar): real = Hr^T, imag = -Hi^T; alpha folded here so the kernel
    # carries no scalar operand.
    HcT_s = _stack(jnp.swapaxes(H_u[:, 0], -1, -2) * alpha,
                   jnp.swapaxes(H_u[:, 1], -1, -2) * (-alpha))     # (U, 2M, Nr)
    U_s = _stack(U_u[:, 0], U_u[:, 1])                             # (U, 2Nr, N)
    W_s = _stack(W_u[:, 0], W_u[:, 1])                             # (U, 2N, N)

    # ---- grid policy: VMEM-budgeted block of users, many pipelined steps ----
    G = users_per_block or _pick_users_per_block(num_users, M, N, Nr)
    assert num_users % G == 0
    num_blocks = num_users // G

    bs = lambda r, c: pl.BlockSpec((G, r, c), lambda b: (b, 0, 0))

    mm = lambda a, k, b: 2 * a * k * b
    per_user_flops = (2 * mm(2 * M, M, M) + 4 * mm(M, M, Nr)
                      + 2 * mm(2 * Nr, N, N) + 4 * mm(M, Nr, N))
    in_elems = num_users * (3 * 2 * M * M + 2 * M * Nr + 2 * Nr * N
                            + 2 * N * N + 2 * M * N)
    out_elems = num_users * 2 * M * N
    cost = pl.CostEstimate(flops=num_users * per_user_flops,
                           transcendentals=0,
                           bytes_accessed=4 * (in_elems + out_elems))

    out = pl.pallas_call(
        functools.partial(pf_unfolding_kernel, M=M, N=N, Nr=Nr, G=G),
        out_shape=jax.ShapeDtypeStruct((num_blocks, 2 * M, G * N), f32),
        grid=(num_blocks,),
        in_specs=[
            bs(2 * M, M),     # P1 stacked
            bs(2 * M, M),     # inv(B) stacked
            bs(2 * M, M),     # P3 stacked
            bs(2 * M, Nr),    # alpha * conjT(Hbar) stacked
            bs(2 * Nr, N),    # U stacked
            bs(2 * N, N),     # W stacked
            bs(2 * M, N),     # P4 stacked
        ],
        out_specs=pl.BlockSpec((1, 2 * M, G * N), lambda b: (b, 0, 0)),
        compiler_params=pltpu.CompilerParams(
            dimension_semantics=("parallel",),
            vmem_limit_bytes=32 * 1024 * 1024),
        cost_estimate=cost,
    )(P1_s, BinvC, P3_s, HcT_s, U_s, W_s, P4_s)

    # back to the PyTorch output layout (2, M, N, num_users); user = b*G + u.
    out = out.reshape(num_blocks, 2, M, G, N)
    return jnp.transpose(out, (1, 2, 4, 0, 3)).reshape(2, M, N, num_users)


def xavier_uniform(key, shape, gain):
    """Matches torch.nn.init.xavier_uniform_ bound formula (deterministic jax PRNG)."""
    receptive = int(np.prod(shape[2:])) if len(shape) > 2 else 1
    fan_in = shape[1] * receptive
    fan_out = shape[0] * receptive
    bound = gain * float(np.sqrt(6.0 / (fan_in + fan_out)))
    return jax.random.uniform(key, shape, jnp.float32, -bound, bound)


if __name__ == "__main__":
    M, N, Nr, num_users = 16, 8, 8, 4
    power = 0.01                      # Xgain = Ygain = Zgain = Ogain = 0.01
    alpha = 0.7

    key = jax.random.PRNGKey(0)
    keys = jax.random.split(key, 3 * num_users + 5)

    params1 = jnp.stack([xavier_uniform(keys[i], (2, M, M), power)
                         for i in range(num_users)])
    params3 = jnp.stack([xavier_uniform(keys[num_users + i], (2, M, M), power)
                         for i in range(num_users)])
    params4 = jnp.stack([xavier_uniform(keys[2 * num_users + i], (2, M, N), power)
                         for i in range(num_users)])
    # params2 is defined by the module but never used in forward.

    kB, kBi, kH, kU, kW = keys[3 * num_users:3 * num_users + 5]
    eye = jnp.broadcast_to(jnp.eye(M, dtype=jnp.float32)[:, :, None],
                           (M, M, num_users))
    B = jnp.stack([
        0.1 * jax.random.normal(kB, (M, M, num_users), jnp.float32) + eye,
        0.1 * jax.random.normal(kBi, (M, M, num_users), jnp.float32),
    ], axis=0)                                                     # (2, M, M, U)
    Hbar = jax.random.normal(kH, (2, Nr, M, num_users), jnp.float32)
    U = jax.random.normal(kU, (2, Nr, N, num_users), jnp.float32)
    W = jax.random.normal(kW, (2, N, N, num_users), jnp.float32)

    packed = pack_pf_params(params1, params3, params4)   # hoisted, done once
    out = pf_unfolding_forward(packed, B, Hbar, U, W, alpha)
    out = jax.block_until_ready(out)
    assert out.shape == (2, M, N, num_users)

    # Pure-JAX complex reference (independent full-inverse path).
    refs = []
    for i in range(num_users):
        Br, Bi = B[0, :, :, i], B[1, :, :, i]
        big = jnp.concatenate([jnp.concatenate([Br, -Bi], -1),
                               jnp.concatenate([Bi, Br], -1)], -2)
        big_inv = jnp.linalg.inv(big)
        Binv_c = big_inv[:M, :M] + 1j * big_inv[M:, :M]
        P1 = params1[i, 0] + 1j * params1[i, 1]
        P3 = params3[i, 0] + 1j * params3[i, 1]
        P4 = params4[i, 0] + 1j * params4[i, 1]
        Hc = Hbar[0, :, :, i] + 1j * Hbar[1, :, :, i]
        Uc = U[0, :, :, i] + 1j * U[1, :, :, i]
        Wc = W[0, :, :, i] + 1j * W[1, :, :, i]
        Binv = P1 @ Binv_c + P3
        o = alpha * (Binv @ Hc.conj().T @ (Uc @ Wc)) + P4
        refs.append(jnp.stack([jnp.real(o), jnp.imag(o)], axis=0))
    ref = jnp.stack(refs, axis=-1)

    np.testing.assert_allclose(np.asarray(out), np.asarray(ref),
                               rtol=1e-4, atol=1e-4)
    print("KERNEL_OK")
</pallas_src>

<mosaic_0001>
module attributes {stable_mosaic.version = 11 : i64} {
  func.func @pf_unfolding_kernel(%arg0: i32, %arg1: memref<2x32x16xf32, #tpu.memory_space<vmem>>, %arg2: memref<2x32x16xf32, #tpu.memory_space<vmem>>, %arg3: memref<2x32x16xf32, #tpu.memory_space<vmem>>, %arg4: memref<2x32x8xf32, #tpu.memory_space<vmem>>, %arg5: memref<2x16x8xf32, #tpu.memory_space<vmem>>, %arg6: memref<2x16x8xf32, #tpu.memory_space<vmem>>, %arg7: memref<2x32x8xf32, #tpu.memory_space<vmem>>, %arg8: memref<1x32x16xf32, #tpu.memory_space<vmem>>) attributes {dimension_semantics = [#tpu.dimension_semantics<parallel>], iteration_bounds = array<i64: 2>, scalar_prefetch = 0 : i64, scratch_operands = 0 : i64, tpu.core_type = #tpu.core_type<tc>, window_params = [{transform_indices = @transform_0, window_bounds = array<i64: 2, 32, 16>}, {transform_indices = @transform_1, window_bounds = array<i64: 2, 32, 16>}, {transform_indices = @transform_2, window_bounds = array<i64: 2, 32, 16>}, {transform_indices = @transform_3, window_bounds = array<i64: 2, 32, 8>}, {transform_indices = @transform_4, window_bounds = array<i64: 2, 16, 8>}, {transform_indices = @transform_5, window_bounds = array<i64: 2, 16, 8>}, {transform_indices = @transform_6, window_bounds = array<i64: 2, 32, 8>}, {transform_indices = @transform_7, window_bounds = array<i64: 1, 32, 16>}]} {
    %c0 = arith.constant 0 : index
    %c0_0 = arith.constant 0 : index
    %c0_1 = arith.constant 0 : index
    %0 = vector.load %arg1[%c0, %c0_0, %c0_1] : memref<2x32x16xf32, #tpu.memory_space<vmem>>, vector<1x32x16xf32>
    %1 = vector.shape_cast %0 : vector<1x32x16xf32> to vector<32x16xf32>
    %c0_2 = arith.constant 0 : index
    %c0_3 = arith.constant 0 : index
    %c0_4 = arith.constant 0 : index
    %2 = vector.load %arg2[%c0_2, %c0_3, %c0_4] : memref<2x32x16xf32, #tpu.memory_space<vmem>>, vector<1x16x16xf32>
    %3 = vector.shape_cast %2 : vector<1x16x16xf32> to vector<16x16xf32>
    %cst = arith.constant dense<0.000000e+00> : vector<32x16xf32>
    %4 = tpu.matmul %1, %3, %cst {dimension_numbers = #tpu.dot_dimension_numbers<[1], [0], [0], [1], [0, 0, 1, 1], [], []>} : vector<32x16xf32>, vector<16x16xf32>, vector<32x16xf32> -> vector<32x16xf32>
    %c0_5 = arith.constant 0 : index
    %c16 = arith.constant 16 : index
    %c0_6 = arith.constant 0 : index
    %5 = vector.load %arg2[%c0_5, %c16, %c0_6] : memref<2x32x16xf32, #tpu.memory_space<vmem>>, vector<1x16x16xf32>
    %6 = vector.shape_cast %5 : vector<1x16x16xf32> to vector<16x16xf32>
    %cst_7 = arith.constant dense<0.000000e+00> : vector<32x16xf32>
    %7 = tpu.matmul %1, %6, %cst_7 {dimension_numbers = #tpu.dot_dimension_numbers<[1], [0], [0], [1], [0, 0, 1, 1], [], []>} : vector<32x16xf32>, vector<16x16xf32>, vector<32x16xf32> -> vector<32x16xf32>
    %8 = vector.extract_strided_slice %4 {offsets = [0, 0], sizes = [16, 16], strides = [1, 1]} : vector<32x16xf32> to vector<16x16xf32>
    %9 = vector.extract_strided_slice %7 {offsets = [16, 0], sizes = [16, 16], strides = [1, 1]} : vector<32x16xf32> to vector<16x16xf32>
    %10 = arith.subf %8, %9 : vector<16x16xf32>
    %c0_8 = arith.constant 0 : index
    %c0_9 = arith.constant 0 : index
    %c0_10 = arith.constant 0 : index
    %11 = vector.load %arg3[%c0_8, %c0_9, %c0_10] : memref<2x32x16xf32, #tpu.memory_space<vmem>>, vector<1x16x16xf32>
    %12 = vector.shape_cast %11 : vector<1x16x16xf32> to vector<16x16xf32>
    %13 = arith.addf %10, %12 : vector<16x16xf32>
    %14 = vector.extract_strided_slice %7 {offsets = [0, 0], sizes = [16, 16], strides = [1, 1]} : vector<32x16xf32> to vector<16x16xf32>
    %15 = vector.extract_strided_slice %4 {offsets = [16, 0], sizes = [16, 16], strides = [1, 1]} : vector<32x16xf32> to vector<16x16xf32>
    %16 = arith.addf %14, %15 : vector<16x16xf32>
    %c0_11 = arith.constant 0 : index
    %c16_12 = arith.constant 16 : index
    %c0_13 = arith.constant 0 : index
    %17 = vector.load %arg3[%c0_11, %c16_12, %c0_13] : memref<2x32x16xf32, #tpu.memory_space<vmem>>, vector<1x16x16xf32>
    %18 = vector.shape_cast %17 : vector<1x16x16xf32> to vector<16x16xf32>
    %19 = arith.addf %16, %18 : vector<16x16xf32>
    %c0_14 = arith.constant 0 : index
    %c0_15 = arith.constant 0 : index
    %c0_16 = arith.constant 0 : index
    %20 = vector.load %arg4[%c0_14, %c0_15, %c0_16] : memref<2x32x8xf32, #tpu.memory_space<vmem>>, vector<1x16x8xf32>
    %21 = vector.shape_cast %20 : vector<1x16x8xf32> to vector<16x8xf32>
    %c0_17 = arith.constant 0 : index
    %c16_18 = arith.constant 16 : index
    %c0_19 = arith.constant 0 : index
    %22 = vector.load %arg4[%c0_17, %c16_18, %c0_19] : memref<2x32x8xf32, #tpu.memory_space<vmem>>, vector<1x16x8xf32>
    %23 = vector.shape_cast %22 : vector<1x16x8xf32> to vector<16x8xf32>
    %cst_20 = arith.constant dense<0.000000e+00> : vector<16x8xf32>
    %24 = tpu.matmul %13, %21, %cst_20 {dimension_numbers = #tpu.dot_dimension_numbers<[1], [0], [0], [1], [0, 0, 1, 1], [], []>} : vector<16x16xf32>, vector<16x8xf32>, vector<16x8xf32> -> vector<16x8xf32>
    %cst_21 = arith.constant dense<0.000000e+00> : vector<16x8xf32>
    %25 = tpu.matmul %19, %23, %cst_21 {dimension_numbers = #tpu.dot_dimension_numbers<[1], [0], [0], [1], [0, 0, 1, 1], [], []>} : vector<16x16xf32>, vector<16x8xf32>, vector<16x8xf32> -> vector<16x8xf32>
    %26 = arith.subf %24, %25 : vector<16x8xf32>
    %cst_22 = arith.constant dense<0.000000e+00> : vector<16x8xf32>
    %27 = tpu.matmul %13, %23, %cst_22 {dimension_numbers = #tpu.dot_dimension_numbers<[1], [0], [0], [1], [0, 0, 1, 1], [], []>} : vector<16x16xf32>, vector<16x8xf32>, vector<16x8xf32> -> vector<16x8xf32>
    %cst_23 = arith.constant dense<0.000000e+00> : vector<16x8xf32>
    %28 = tpu.matmul %19, %21, %cst_23 {dimension_numbers = #tpu.dot_dimension_numbers<[1], [0], [0], [1], [0, 0, 1, 1], [], []>} : vector<16x16xf32>, vector<16x8xf32>, vector<16x8xf32> -> vector<16x8xf32>
    %29 = arith.addf %27, %28 : vector<16x8xf32>
    %c0_24 = arith.constant 0 : index
    %c0_25 = arith.constant 0 : index
    %c0_26 = arith.constant 0 : index
    %30 = vector.load %arg5[%c0_24, %c0_25, %c0_26] : memref<2x16x8xf32, #tpu.memory_space<vmem>>, vector<1x16x8xf32>
    %31 = vector.shape_cast %30 : vector<1x16x8xf32> to vector<16x8xf32>
    %c0_27 = arith.constant 0 : index
    %c0_28 = arith.constant 0 : index
    %c0_29 = arith.constant 0 : index
    %32 = vector.load %arg6[%c0_27, %c0_28, %c0_29] : memref<2x16x8xf32, #tpu.memory_space<vmem>>, vector<1x8x8xf32>
    %33 = vector.shape_cast %32 : vector<1x8x8xf32> to vector<8x8xf32>
    %cst_30 = arith.constant dense<0.000000e+00> : vector<16x8xf32>
    %34 = tpu.matmul %31, %33, %cst_30 {dimension_numbers = #tpu.dot_dimension_numbers<[1], [0], [0], [1], [0, 0, 1, 1], [], []>} : vector<16x8xf32>, vector<8x8xf32>, vector<16x8xf32> -> vector<16x8xf32>
    %c0_31 = arith.constant 0 : index
    %c8 = arith.constant 8 : index
    %c0_32 = arith.constant 0 : index
    %35 = vector.load %arg6[%c0_31, %c8, %c0_32] : memref<2x16x8xf32, #tpu.memory_space<vmem>>, vector<1x8x8xf32>
    %36 = vector.shape_cast %35 : vector<1x8x8xf32> to vector<8x8xf32>
    %cst_33 = arith.constant dense<0.000000e+00> : vector<16x8xf32>
    %37 = tpu.matmul %31, %36, %cst_33 {dimension_numbers = #tpu.dot_dimension_numbers<[1], [0], [0], [1], [0, 0, 1, 1], [], []>} : vector<16x8xf32>, vector<8x8xf32>, vector<16x8xf32> -> vector<16x8xf32>
    %38 = vector.extract_strided_slice %34 {offsets = [0, 0], sizes = [8, 8], strides = [1, 1]} : vector<16x8xf32> to vector<8x8xf32>
    %39 = vector.extract_strided_slice %37 {offsets = [8, 0], sizes = [8, 8], strides = [1, 1]} : vector<16x8xf32> to vector<8x8xf32>
    %40 = arith.subf %38, %39 : vector<8x8xf32>
    %41 = vector.extract_strided_slice %37 {offsets = [0, 0], sizes = [8, 8], strides = [1, 1]} : vector<16x8xf32> to vector<8x8xf32>
    %42 = vector.extract_strided_slice %34 {offsets = [8, 0], sizes = [8, 8], strides = [1, 1]} : vector<16x8xf32> to vector<8x8xf32>
    %43 = arith.addf %41, %42 : vector<8x8xf32>
    %cst_34 = arith.constant dense<0.000000e+00> : vector<16x8xf32>
    %44 = tpu.matmul %26, %40, %cst_34 {dimension_numbers = #tpu.dot_dimension_numbers<[1], [0], [0], [1], [0, 0, 1, 1], [], []>} : vector<16x8xf32>, vector<8x8xf32>, vector<16x8xf32> -> vector<16x8xf32>
    %cst_35 = arith.constant dense<0.000000e+00> : vector<16x8xf32>
    %45 = tpu.matmul %29, %43, %cst_35 {dimension_numbers = #tpu.dot_dimension_numbers<[1], [0], [0], [1], [0, 0, 1, 1], [], []>} : vector<16x8xf32>, vector<8x8xf32>, vector<16x8xf32> -> vector<16x8xf32>
    %46 = arith.subf %44, %45 : vector<16x8xf32>
    %c0_36 = arith.constant 0 : index
    %c0_37 = arith.constant 0 : index
    %c0_38 = arith.constant 0 : index
    %47 = vector.load %arg7[%c0_36, %c0_37, %c0_38] : memref<2x32x8xf32, #tpu.memory_space<vmem>>, vector<1x16x8xf32>
    %48 = vector.shape_cast %47 : vector<1x16x8xf32> to vector<16x8xf32>
    %49 = arith.addf %46, %48 : vector<16x8xf32>
    %c0_39 = arith.constant 0 : index
    %c0_40 = arith.constant 0 : index
    %c0_41 = arith.constant 0 : index
    %50 = vector.load %arg8[%c0_39, %c0_40, %c0_41] : memref<1x32x16xf32, #tpu.memory_space<vmem>>, vector<1x16x8xf32>
    %51 = vector.shape_cast %50 : vector<1x16x8xf32> to vector<16x8xf32>
    %52 = vector.shape_cast %49 : vector<16x8xf32> to vector<1x16x8xf32>
    tpu.vector_store %arg8[%c0_39, %c0_40, %c0_41], %52 {strides = array<i32>} : memref<1x32x16xf32, #tpu.memory_space<vmem>>, vector<1x16x8xf32>,
    %cst_42 = arith.constant dense<0.000000e+00> : vector<16x8xf32>
    %53 = tpu.matmul %26, %43, %cst_42 {dimension_numbers = #tpu.dot_dimension_numbers<[1], [0], [0], [1], [0, 0, 1, 1], [], []>} : vector<16x8xf32>, vector<8x8xf32>, vector<16x8xf32> -> vector<16x8xf32>
    %cst_43 = arith.constant dense<0.000000e+00> : vector<16x8xf32>
    %54 = tpu.matmul %29, %40, %cst_43 {dimension_numbers = #tpu.dot_dimension_numbers<[1], [0], [0], [1], [0, 0, 1, 1], [], []>} : vector<16x8xf32>, vector<8x8xf32>, vector<16x8xf32> -> vector<16x8xf32>
    %55 = arith.addf %53, %54 : vector<16x8xf32>
    %c0_44 = arith.constant 0 : index
    %c16_45 = arith.constant 16 : index
    %c0_46 = arith.constant 0 : index
    %56 = vector.load %arg7[%c0_44, %c16_45, %c0_46] : memref<2x32x8xf32, #tpu.memory_space<vmem>>, vector<1x16x8xf32>
    %57 = vector.shape_cast %56 : vector<1x16x8xf32> to vector<16x8xf32>
    %58 = arith.addf %55, %57 : vector<16x8xf32>
    %c0_47 = arith.constant 0 : index
    %c16_48 = arith.constant 16 : index
    %c0_49 = arith.constant 0 : index
    %59 = vector.load %arg8[%c0_47, %c16_48, %c0_49] : memref<1x32x16xf32, #tpu.memory_space<vmem>>, vector<1x16x8xf32>
    %60 = vector.shape_cast %59 : vector<1x16x8xf32> to vector<16x8xf32>
    %61 = vector.shape_cast %58 : vector<16x8xf32> to vector<1x16x8xf32>
    tpu.vector_store %arg8[%c0_47, %c16_48, %c0_49], %61 {strides = array<i32>} : memref<1x32x16xf32, #tpu.memory_space<vmem>>, vector<1x16x8xf32>,
    %c1 = arith.constant 1 : index
    %c0_50 = arith.constant 0 : index
    %c0_51 = arith.constant 0 : index
    %62 = vector.load %arg1[%c1, %c0_50, %c0_51] : memref<2x32x16xf32, #tpu.memory_space<vmem>>, vector<1x32x16xf32>
    %63 = vector.shape_cast %62 : vector<1x32x16xf32> to vector<32x16xf32>
    %c1_52 = arith.constant 1 : index
    %c0_53 = arith.constant 0 : index
    %c0_54 = arith.constant 0 : index
    %64 = vector.load %arg2[%c1_52, %c0_53, %c0_54] : memref<2x32x16xf32, #tpu.memory_space<vmem>>, vector<1x16x16xf32>
    %65 = vector.shape_cast %64 : vector<1x16x16xf32> to vector<16x16xf32>
    %cst_55 = arith.constant dense<0.000000e+00> : vector<32x16xf32>
    %66 = tpu.matmul %63, %65, %cst_55 {dimension_numbers = #tpu.dot_dimension_numbers<[1], [0], [0], [1], [0, 0, 1, 1], [], []>} : vector<32x16xf32>, vector<16x16xf32>, vector<32x16xf32> -> vector<32x16xf32>
    %c1_56 = arith.constant 1 : index
    %c16_57 = arith.constant 16 : index
    %c0_58 = arith.constant 0 : index
    %67 = vector.load %arg2[%c1_56, %c16_57, %c0_58] : memref<2x32x16xf32, #tpu.memory_space<vmem>>, vector<1x16x16xf32>
    %68 = vector.shape_cast %67 : vector<1x16x16xf32> to vector<16x16xf32>
    %cst_59 = arith.constant dense<0.000000e+00> : vector<32x16xf32>
    %69 = tpu.matmul %63, %68, %cst_59 {dimension_numbers = #tpu.dot_dimension_numbers<[1], [0], [0], [1], [0, 0, 1, 1], [], []>} : vector<32x16xf32>, vector<16x16xf32>, vector<32x16xf32> -> vector<32x16xf32>
    %70 = vector.extract_strided_slice %66 {offsets = [0, 0], sizes = [16, 16], strides = [1, 1]} : vector<32x16xf32> to vector<16x16xf32>
    %71 = vector.extract_strided_slice %69 {offsets = [16, 0], sizes = [16, 16], strides = [1, 1]} : vector<32x16xf32> to vector<16x16xf32>
    %72 = arith.subf %70, %71 : vector<16x16xf32>
    %c1_60 = arith.constant 1 : index
    %c0_61 = arith.constant 0 : index
    %c0_62 = arith.constant 0 : index
    %73 = vector.load %arg3[%c1_60, %c0_61, %c0_62] : memref<2x32x16xf32, #tpu.memory_space<vmem>>, vector<1x16x16xf32>
    %74 = vector.shape_cast %73 : vector<1x16x16xf32> to vector<16x16xf32>
    %75 = arith.addf %72, %74 : vector<16x16xf32>
    %76 = vector.extract_strided_slice %69 {offsets = [0, 0], sizes = [16, 16], strides = [1, 1]} : vector<32x16xf32> to vector<16x16xf32>
    %77 = vector.extract_strided_slice %66 {offsets = [16, 0], sizes = [16, 16], strides = [1, 1]} : vector<32x16xf32> to vector<16x16xf32>
    %78 = arith.addf %76, %77 : vector<16x16xf32>
    %c1_63 = arith.constant 1 : index
    %c16_64 = arith.constant 16 : index
    %c0_65 = arith.constant 0 : index
    %79 = vector.load %arg3[%c1_63, %c16_64, %c0_65] : memref<2x32x16xf32, #tpu.memory_space<vmem>>, vector<1x16x16xf32>
    %80 = vector.shape_cast %79 : vector<1x16x16xf32> to vector<16x16xf32>
    %81 = arith.addf %78, %80 : vector<16x16xf32>
    %c1_66 = arith.constant 1 : index
    %c0_67 = arith.constant 0 : index
    %c0_68 = arith.constant 0 : index
    %82 = vector.load %arg4[%c1_66, %c0_67, %c0_68] : memref<2x32x8xf32, #tpu.memory_space<vmem>>, vector<1x16x8xf32>
    %83 = vector.shape_cast %82 : vector<1x16x8xf32> to vector<16x8xf32>
    %c1_69 = arith.constant 1 : index
    %c16_70 = arith.constant 16 : index
    %c0_71 = arith.constant 0 : index
    %84 = vector.load %arg4[%c1_69, %c16_70, %c0_71] : memref<2x32x8xf32, #tpu.memory_space<vmem>>, vector<1x16x8xf32>
    %85 = vector.shape_cast %84 : vector<1x16x8xf32> to vector<16x8xf32>
    %cst_72 = arith.constant dense<0.000000e+00> : vector<16x8xf32>
    %86 = tpu.matmul %75, %83, %cst_72 {dimension_numbers = #tpu.dot_dimension_numbers<[1], [0], [0], [1], [0, 0, 1, 1], [], []>} : vector<16x16xf32>, vector<16x8xf32>, vector<16x8xf32> -> vector<16x8xf32>
    %cst_73 = arith.constant dense<0.000000e+00> : vector<16x8xf32>
    %87 = tpu.matmul %81, %85, %cst_73 {dimension_numbers = #tpu.dot_dimension_numbers<[1], [0], [0], [1], [0, 0, 1, 1], [], []>} : vector<16x16xf32>, vector<16x8xf32>, vector<16x8xf32> -> vector<16x8xf32>
    %88 = arith.subf %86, %87 : vector<16x8xf32>
    %cst_74 = arith.constant dense<0.000000e+00> : vector<16x8xf32>
    %89 = tpu.matmul %75, %85, %cst_74 {dimension_numbers = #tpu.dot_dimension_numbers<[1], [0], [0], [1], [0, 0, 1, 1], [], []>} : vector<16x16xf32>, vector<16x8xf32>, vector<16x8xf32> -> vector<16x8xf32>
    %cst_75 = arith.constant dense<0.000000e+00> : vector<16x8xf32>
    %90 = tpu.matmul %81, %83, %cst_75 {dimension_numbers = #tpu.dot_dimension_numbers<[1], [0], [0], [1], [0, 0, 1, 1], [], []>} : vector<16x16xf32>, vector<16x8xf32>, vector<16x8xf32> -> vector<16x8xf32>
    %91 = arith.addf %89, %90 : vector<16x8xf32>
    %c1_76 = arith.constant 1 : index
    %c0_77 = arith.constant 0 : index
    %c0_78 = arith.constant 0 : index
    %92 = vector.load %arg5[%c1_76, %c0_77, %c0_78] : memref<2x16x8xf32, #tpu.memory_space<vmem>>, vector<1x16x8xf32>
    %93 = vector.shape_cast %92 : vector<1x16x8xf32> to vector<16x8xf32>
    %c1_79 = arith.constant 1 : index
    %c0_80 = arith.constant 0 : index
    %c0_81 = arith.constant 0 : index
    %94 = vector.load %arg6[%c1_79, %c0_80, %c0_81] : memref<2x16x8xf32, #tpu.memory_space<vmem>>, vector<1x8x8xf32>
    %95 = vector.shape_cast %94 : vector<1x8x8xf32> to vector<8x8xf32>
    %cst_82 = arith.constant dense<0.000000e+00> : vector<16x8xf32>
    %96 = tpu.matmul %93, %95, %cst_82 {dimension_numbers = #tpu.dot_dimension_numbers<[1], [0], [0], [1], [0, 0, 1, 1], [], []>} : vector<16x8xf32>, vector<8x8xf32>, vector<16x8xf32> -> vector<16x8xf32>
    %c1_83 = arith.constant 1 : index
    %c8_84 = arith.constant 8 : index
    %c0_85 = arith.constant 0 : index
    %97 = vector.load %arg6[%c1_83, %c8_84, %c0_85] : memref<2x16x8xf32, #tpu.memory_space<vmem>>, vector<1x8x8xf32>
    %98 = vector.shape_cast %97 : vector<1x8x8xf32> to vector<8x8xf32>
    %cst_86 = arith.constant dense<0.000000e+00> : vector<16x8xf32>
    %99 = tpu.matmul %93, %98, %cst_86 {dimension_numbers = #tpu.dot_dimension_numbers<[1], [0], [0], [1], [0, 0, 1, 1], [], []>} : vector<16x8xf32>, vector<8x8xf32>, vector<16x8xf32> -> vector<16x8xf32>
    %100 = vector.extract_strided_slice %96 {offsets = [0, 0], sizes = [8, 8], strides = [1, 1]} : vector<16x8xf32> to vector<8x8xf32>
    %101 = vector.extract_strided_slice %99 {offsets = [8, 0], sizes = [8, 8], strides = [1, 1]} : vector<16x8xf32> to vector<8x8xf32>
    %102 = arith.subf %100, %101 : vector<8x8xf32>
    %103 = vector.extract_strided_slice %99 {offsets = [0, 0], sizes = [8, 8], strides = [1, 1]} : vector<16x8xf32> to vector<8x8xf32>
    %104 = vector.extract_strided_slice %96 {offsets = [8, 0], sizes = [8, 8], strides = [1, 1]} : vector<16x8xf32> to vector<8x8xf32>
    %105 = arith.addf %103, %104 : vector<8x8xf32>
    %cst_87 = arith.constant dense<0.000000e+00> : vector<16x8xf32>
    %106 = tpu.matmul %88, %102, %cst_87 {dimension_numbers = #tpu.dot_dimension_numbers<[1], [0], [0], [1], [0, 0, 1, 1], [], []>} : vector<16x8xf32>, vector<8x8xf32>, vector<16x8xf32> -> vector<16x8xf32>
    %cst_88 = arith.constant dense<0.000000e+00> : vector<16x8xf32>
    %107 = tpu.matmul %91, %105, %cst_88 {dimension_numbers = #tpu.dot_dimension_numbers<[1], [0], [0], [1], [0, 0, 1, 1], [], []>} : vector<16x8xf32>, vector<8x8xf32>, vector<16x8xf32> -> vector<16x8xf32>
    %108 = arith.subf %106, %107 : vector<16x8xf32>
    %c1_89 = arith.constant 1 : index
    %c0_90 = arith.constant 0 : index
    %c0_91 = arith.constant 0 : index
    %109 = vector.load %arg7[%c1_89, %c0_90, %c0_91] : memref<2x32x8xf32, #tpu.memory_space<vmem>>, vector<1x16x8xf32>
    %110 = vector.shape_cast %109 : vector<1x16x8xf32> to vector<16x8xf32>
    %111 = arith.addf %108, %110 : vector<16x8xf32>
    %c0_92 = arith.constant 0 : index
    %c0_93 = arith.constant 0 : index
    %c8_94 = arith.constant 8 : index
    %112 = vector.load %arg8[%c0_92, %c0_93, %c8_94] : memref<1x32x16xf32, #tpu.memory_space<vmem>>, vector<1x16x8xf32>
    %113 = vector.shape_cast %112 : vector<1x16x8xf32> to vector<16x8xf32>
    %114 = vector.shape_cast %111 : vector<16x8xf32> to vector<1x16x8xf32>
    tpu.vector_store %arg8[%c0_92, %c0_93, %c8_94], %114 {strides = array<i32>} : memref<1x32x16xf32, #tpu.memory_space<vmem>>, vector<1x16x8xf32>,
    %cst_95 = arith.constant dense<0.000000e+00> : vector<16x8xf32>
    %115 = tpu.matmul %88, %105, %cst_95 {dimension_numbers = #tpu.dot_dimension_numbers<[1], [0], [0], [1], [0, 0, 1, 1], [], []>} : vector<16x8xf32>, vector<8x8xf32>, vector<16x8xf32> -> vector<16x8xf32>
    %cst_96 = arith.constant dense<0.000000e+00> : vector<16x8xf32>
    %116 = tpu.matmul %91, %102, %cst_96 {dimension_numbers = #tpu.dot_dimension_numbers<[1], [0], [0], [1], [0, 0, 1, 1], [], []>} : vector<16x8xf32>, vector<8x8xf32>, vector<16x8xf32> -> vector<16x8xf32>
    %117 = arith.addf %115, %116 : vector<16x8xf32>
    %c1_97 = arith.constant 1 : index
    %c16_98 = arith.constant 16 : index
    %c0_99 = arith.constant 0 : index
    %118 = vector.load %arg7[%c1_97, %c16_98, %c0_99] : memref<2x32x8xf32, #tpu.memory_space<vmem>>, vector<1x16x8xf32>
    %119 = vector.shape_cast %118 : vector<1x16x8xf32> to vector<16x8xf32>
    %120 = arith.addf %117, %119 : vector<16x8xf32>
    %c0_100 = arith.constant 0 : index
    %c16_101 = arith.constant 16 : index
    %c8_102 = arith.constant 8 : index
    %121 = vector.load %arg8[%c0_100, %c16_101, %c8_102] : memref<1x32x16xf32, #tpu.memory_space<vmem>>, vector<1x16x8xf32>
    %122 = vector.shape_cast %121 : vector<1x16x8xf32> to vector<16x8xf32>
    %123 = vector.shape_cast %120 : vector<16x8xf32> to vector<1x16x8xf32>
    tpu.vector_store %arg8[%c0_100, %c16_101, %c8_102], %123 {strides = array<i32>} : memref<1x32x16xf32, #tpu.memory_space<vmem>>, vector<1x16x8xf32>,
    return
  }
  func.func @transform_0(%arg0: i32) -> (i32, i32, i32) {
    %c0_i32 = arith.constant 0 : i32
    %c0_i32_0 = arith.constant 0 : i32
    %c0_i32_1 = arith.constant 0 : i32
    return %arg0, %c0_i32, %c0_i32_0 : i32, i32, i32
  }
  func.func @transform_1(%arg0: i32) -> (i32, i32, i32) {
    %c0_i32 = arith.constant 0 : i32
    %c0_i32_0 = arith.constant 0 : i32
    %c0_i32_1 = arith.constant 0 : i32
    return %arg0, %c0_i32, %c0_i32_0 : i32, i32, i32
  }
  func.func @transform_2(%arg0: i32) -> (i32, i32, i32) {
    %c0_i32 = arith.constant 0 : i32
    %c0_i32_0 = arith.constant 0 : i32
    %c0_i32_1 = arith.constant 0 : i32
    return %arg0, %c0_i32, %c0_i32_0 : i32, i32, i32
  }
  func.func @transform_3(%arg0: i32) -> (i32, i32, i32) {
    %c0_i32 = arith.constant 0 : i32
    %c0_i32_0 = arith.constant 0 : i32
    %c0_i32_1 = arith.constant 0 : i32
    return %arg0, %c0_i32, %c0_i32_0 : i32, i32, i32
  }
  func.func @transform_4(%arg0: i32) -> (i32, i32, i32) {
    %c0_i32 = arith.constant 0 : i32
    %c0_i32_0 = arith.constant 0 : i32
    %c0_i32_1 = arith.constant 0 : i32
    return %arg0, %c0_i32, %c0_i32_0 : i32, i32, i32
  }
  func.func @transform_5(%arg0: i32) -> (i32, i32, i32) {
    %c0_i32 = arith.constant 0 : i32
    %c0_i32_0 = arith.constant 0 : i32
    %c0_i32_1 = arith.constant 0 : i32
    return %arg0, %c0_i32, %c0_i32_0 : i32, i32, i32
  }
  func.func @transform_6(%arg0: i32) -> (i32, i32, i32) {
    %c0_i32 = arith.constant 0 : i32
    %c0_i32_0 = arith.constant 0 : i32
    %c0_i32_1 = arith.constant 0 : i32
    return %arg0, %c0_i32, %c0_i32_0 : i32, i32, i32
  }
  func.func @transform_7(%arg0: i32) -> (i32, i32, i32) {
    %c0_i32 = arith.constant 0 : i32
    %c0_i32_0 = arith.constant 0 : i32
    %c0_i32_1 = arith.constant 0 : i32
    return %arg0, %c0_i32, %c0_i32_0 : i32, i32, i32
  }
}

</mosaic_0001>

<bundles_post_ra>
// kernel: custom-call.8
= control target key start
LH: loop header
LB: loop body
LE: loop exit
PB: predicated region body
PF: predicated region fallthrough
CT: control target
= control target key end

     0   :  { %5 = vsyncpa [#allocation4], 0  ;;  %s1190_s0 = inlined_call_operand.vmem [shape: f32[4,32,32], index: 0, kind: input, shape index: {}]   ;;  %s1191_s1 = inlined_call_operand.vmem [shape: f32[4,32,32], index: 1, kind: output, shape index: {0}]   ;;  %s1192_s2 = inlined_call_operand.hbm [shape: s32[4,32], index: 2, kind: output, shape index: {1}]   ;;  %s1193_s3 = inlined_call_operand.vmem [shape: s32[4,32], index: 3, kind: output, shape index: {2}]  }
   0x1   :  { %7 = vsyncpa [#allocation4 + $0x1], 0  ;;  %s896_s12 = smov 0   ;;  %s898_s13 = smov 0  }
   0x2   :  { %s900_s14 = smov 0   ;;  %s902_s15 = smov 0  }
   0x3 LB: > { %s917_s16 = sadd.s32 4294967295, %s865_s15   ;;  %s693_s17 = sadd.s32 4294967294, %s865_s15   ;;  %s865_s15 = sphi %s902_s15, %s1213_s15   ;;  %s861_s14 = sphi %s900_s14, %s1212_s14   ;;  %s857_s13 = sphi %s898_s13, %s1211_s13   ;;  %s853_s12 = sphi %s896_s12, %s1210_s12  }
   0x4   : > { %s921_s18 = sadd.s32 1, %s865_s15   ;;  %s17_s19 = sshrl.u32 %s865_s15, 3 }
   0x5   : > { %s18_s20 = sshrl.u32 %s921_s18, 3  ;;  %s22_s21 = sadd.s32 1, %s861_s14 }
   0x6   : > { %s19_s22 = ssub.s32 %s17_s19, %s18_s20  ;;  %p32_p0 = scmp.ne.s32.totalorder %s861_s14, %s857_s13 }
   0x7   : > { %p20_p1 = scmp.eq.s32.totalorder %s19_s22, 0  ;;  %p33_p2 = scmp.eq.s32.totalorder %s917_s16, 3 }
   0x8   : > { %p38_p3 = scmp.ne.s32.totalorder %s857_s13, %s853_s12  ;;  %p39_p4 = scmp.eq.s32.totalorder %s693_s17, 3 }
   0x9   : > { %s932_s23 = scalar_select %p20_p1, %s861_s14, %s22_s21  }
   0xa   : > { %p934_p5 = por %p33_p2, %p32_p0  ;;  %p938_p6 = por %p39_p4, %p38_p3 }
   0xb   : > { %p695_p7 = scmp.ge.s32.totalorder %s865_s15, 4 }
   0xc   : > { %s85_s26 = sand.u32 (!%p695_p7), 1, %s865_s15   ;;  %s697_s27 = sshll.u32 (!%p695_p7), %s865_s15, 5 }
   0xd   : > { %83 = sbr.rel (%p695_p7) target bundleno = 23 (0x17), region = 16  ;;  %s696_s28 = sshll.u32 (!%p695_p7), %s85_s26, 5 }
   0xe   : > { %s89_s4 = scalar_lea.vmem (!%p695_p7), %s1190_s0, %s697_s27  ;;  %s87_s5 = scalar_lea.vmem (!%p695_p7), [#allocation0], %s696_s28 }
  0x12   : > { %v102_v0 = vld [vmem:[%s89_s4] sm:$0xff]  ;;  %v104_v1 = vld [vmem:[%s89_s4 + $0x8] sm:$0xff]  ;;  %v106_v2 = vld [vmem:[%s89_s4 + $0x10] sm:$0xff] }
  0x13   : > { %103 = vst [vmem:[%s87_s5] sm:$0xff] %v102_v0  ;;  %v108_v3 = vld [vmem:[%s89_s4 + $0x18] sm:$0xff] }
  0x14   : > { %105 = vst [vmem:[%s87_s5 + $0x8] sm:$0xff] %v104_v1 }
  0x15   : > { %107 = vst [vmem:[%s87_s5 + $0x10] sm:$0xff] %v106_v2 }
  0x16   : > { %109 = vst [vmem:[%s87_s5 + $0x18] sm:$0xff] %v108_v3 }
  0x17 PF: > { %p698_p8 = scmp.ge.s32.totalorder %s865_s15, 1  ;;  %p114_p9 = scmp.lt.s32.totalorder %s865_s15, 5 }
  0x19   : > { %p115_p10 = pnand %p698_p8, %p114_p9 }
  0x1b   : > { %118 = sbr.rel (%p115_p10) target bundleno = 496 (0x1f0), region = 39 }
  0x20   : > { %s121_s6 = sand.u32 1, %s917_s16   ;;  %s136_s7 = sand.u32 1, %s857_s13   ;;  %v166_v4 = vlaneseq  ;;  %v875_v10 = vmov 0  }
  0x21   : > { %s699_s8 = sshll.u32 %s121_s6, 5  ;;  %s954_s9 = sshll.u32 %s136_s7, 2 }
  0x22   : > { %v957_v5 = vshrl.u32 %v166_v4, 7  ;;  %s123_s10 = scalar_lea.vmem [#allocation0], %s699_s8  ;;  %s959_s11 = scalar_lea.vmem [#allocation1], %s699_s8 }
  0x23   : > { %v147_v6 = vld [vmem:[%s123_s10] sm:$0xff]  ;;  %v703_v7 = vld [vmem:[%s123_s10 + $0x8] sm:$0xff]  ;;  %v705_v8 = vld [vmem:[%s123_s10 + $0x10] sm:$0xff]  ;;  %s161_s17 = sand.u32 7, %s917_s16   ;;  %s138_s20 = scalar_lea.vmem [#allocation3], %s954_s9 }
  0x24   : > { %148 = vst [vmem:[%s959_s11] sm:$0xff] %v147_v6  ;;  %v707_v9 = vld [vmem:[%s123_s10 + $0x18] sm:$0xff]  ;;  %s966_s19 = scalar_lea.vmem [#allocation2], %s161_s17  ;;  %s144_s21 = scalar_lea.vmem [#allocation6], %s954_s9 }
  0x25   : > { %704 = vst [vmem:[%s959_s11 + $0x8] sm:$0xff] %v703_v7  ;;  %s971_s22 = scalar_lea.vmem [#allocation5], %s161_s17  ;;  %s867_s26 = smov 0  }
  0x26   : > { %706 = vst [vmem:[%s959_s11 + $0x10] sm:$0xff] %v705_v8 }
  0x27   : > { %708 = vst [vmem:[%s959_s11 + $0x18] sm:$0xff] %v707_v9 }
  0x28   : > { %165 = vst [vmem:[%s966_s19] sm:$0x1] %v875_v10 }
  0x29 LB: >> { %s709_s27 = sshll.u32 %s869_s26, 3  ;;  %s174_s26 = sadd.s32 1, %s869_s26   ;;  %s869_s26 = sphi %s867_s26, %s174_s26  }
  0x2a   : >> { %v178_v11 = vstv %s709_s27  ;;  %s176_s28 = scalar_lea.vmem [#allocation7], %s709_s27  ;;  %p171_p11 = scmp.ge.s32.totalorder %s174_s26, 4  }
  0x2b   : >> { %v179_v12 = vadd.s32 %v178_v11, %v957_v5  ;;  %s974_s29 = smov (%p171_p11), 0  }
  0x2c   : > { %173 = sbr.rel (!%p171_p11) target bundleno = 41 (0x29), region = 199 }
  0x2d   : >> { %180 = vst [vmem:[%s176_s28] sm:$0xff] %v179_v12 }
  0x31 LB: >> { %v191_v13 = vld [vmem:[%s959_s11] sm:$0xff]  ;;  %v712_v14 = vld [vmem:[%s959_s11 + $0x8] sm:$0xff]  ;;  %v982_v15 = vadd.s32 8, %v957_v5  ;;  %v985_v17 = vstv %s873_s29  ;;  %v713_v19 = vld [vmem:[%s959_s11 + $0x10] sm:$0xff]  ;;  %v991_v20 = vadd.s32 16, %v957_v5  ;;  %v999_v25 = vadd.s32 24, %v957_v5  ;;  %s285_s4 = scalar_lea.vmem %s959_s11, %s873_s29 [#allocation1]  ;;  %s873_s29 = sphi %s974_s29, %s186_s29  }
  0x32   : >> { %v192_v16 = vand.u32 2147483647, %v191_v13  ;;  %v204_v18 = vand.u32 2147483647, %v712_v14  ;;  %vm195_vm0 = vcmp.ge.s32.totalorder %v957_v5, %v985_v17  ;;  %v216_v23 = vand.u32 2147483647, %v713_v19 }
  0x33   : >> { %vm207_vm3 = vcmp.ge.s32.totalorder %v982_v15, %v985_v17  ;;  %v714_v24 = vld [vmem:[%s959_s11 + $0x18] sm:$0xff]  ;;  %vm219_vm6 = vcmp.ge.s32.totalorder %v991_v20, %v985_v17  ;;  %vm231_vm9 = vcmp.ge.s32.totalorder %v999_v25, %v985_v17  ;;  %s273_s30 = ssub.s32 128, %s873_s29  ;;  %v1010_v61 = vand.u32 127, %v166_v4  ;;  %v282_v63 = vld [vmem:[%s966_s19] ss:$0 sm:$0xff]  ;;  %s291_s8 = scalar_lea.vmem [#allocation7], %s873_s29 }
  0x34   : >> { %vm711_vm1 = vcmp.gt.f32.partialorder %v192_v16, -inf  ;;  %v228_v28 = vand.u32 2147483647, %v714_v24  ;;  %v287_v0 = vld [vmem:[%s285_s4] ss:$0 sm:$0xff]  ;;  %s186_s29 = sadd.s32 1, %s873_s29  }
  0x35   : >> { %vm199_vm2 = vmand %vm195_vm0, %vm711_vm1  ;;  %v293_v6 = vld [vmem:[%s291_s8] ss:$0 sm:$0xff]  ;;  %p183_p12 = scmp.ge.s32.totalorder %s186_s29, 32  }
  0x36   : >> { %v200_v21 = vsel %vm199_vm2, %v957_v5, %v985_v17  ;;  %v201_v22 = vsel %vm199_vm2, %v192_v16, -inf  ;;  %s524_s17 = sshrl.u32 (%p183_p12), %s917_s16, 3  ;;  %s724_s29 = sshll.u32 (%p183_p12), %s917_s16, 5 }
  0x37   : >> { %vm210_vm4 = vcmp.lt.f32.partialorder %v201_v22, %v204_v18  ;;  %s1132_s26 = sshll.u32 (%p183_p12), %s524_s17, 2  ;;  %s488_s16 = scalar_lea.sflag (%p183_p12), [#allocation4], %s136_s7 }
  0x38   : >> { %vm211_vm5 = vmand %vm207_vm3, %vm210_vm4  ;;  %vm1016_vm3 = vcmp.eq.s32.totalorder %v1010_v61, %v985_v17  ;;  %s528_s28 = scalar_lea.hbm (%p183_p12), %s1192_s2, %s1132_s26 }
  0x39   : >> { %v212_v26 = vsel %vm211_vm5, %v982_v15, %v200_v21  ;;  %v213_v27 = vsel %vm211_vm5, %v204_v18, %v201_v22  ;;  %vm395_vm5 = vcmp.gt.s32.totalorder %v999_v25, %v985_v17 }
  0x3a   : >> { %vm222_vm7 = vcmp.lt.f32.partialorder %v213_v27, %v216_v23 }
  0x3b   : >> { %vm223_vm8 = vmand %vm219_vm6, %vm222_vm7  ;;  %vm339_vm6 = vcmp.gt.s32.totalorder %v982_v15, %v985_v17  ;;  %vm311_vm7 = vcmp.gt.s32.totalorder %v957_v5, %v985_v17 }
  0x3c   : >> { %v224_v29 = vsel %vm223_vm8, %v991_v20, %v212_v26  ;;  %v225_v30 = vsel %vm223_vm8, %v216_v23, %v213_v27 }
  0x3d   : >> { %vm234_vm10 = vcmp.lt.f32.partialorder %v225_v30, %v228_v28 }
  0x3e   : >> { %vm235_vm11 = vmand %vm231_vm9, %vm234_vm10  ;;  %vm1194_vm9 = vcmp.gt.s32.totalorder %v991_v20, %v985_v17 }
  0x3f   : >> { %v236_v31 = vsel %vm235_vm11, %v999_v25, %v224_v29  ;;  %v237_v32 = vsel %vm235_vm11, %v228_v28, %v225_v30 }
  0x40   : >> { %v238_v33 = vrot.slane %v237_v32, 1  ;;  %v239_v34 = vrot.slane %v236_v31, 1 }
  0x42   : >> { %vm240_vm12 = vcmp.ge.f32.partialorder %v238_v33, %v237_v32  ;;  %v243_v35 = vrot.slane %v238_v33, 1  ;;  %v244_v36 = vrot.slane %v239_v34, 1 }
  0x43   : >> { %v241_v37 = vsel %vm240_vm12, %v238_v33, %v237_v32  ;;  %v242_v38 = vsel %vm240_vm12, %v239_v34, %v236_v31 }
  0x44   : >> { %vm245_vm13 = vcmp.ge.f32.partialorder %v243_v35, %v241_v37  ;;  %v248_v39 = vrot.slane %v243_v35, 1  ;;  %v249_v40 = vrot.slane %v244_v36, 1 }
  0x45   : >> { %v246_v41 = vsel %vm245_vm13, %v243_v35, %v241_v37  ;;  %v247_v42 = vsel %vm245_vm13, %v244_v36, %v242_v38 }
  0x46   : >> { %vm250_vm14 = vcmp.ge.f32.partialorder %v248_v39, %v246_v41  ;;  %v253_v43 = vrot.slane %v248_v39, 1  ;;  %v254_v44 = vrot.slane %v249_v40, 1 }
  0x47   : >> { %v251_v45 = vsel %vm250_vm14, %v248_v39, %v246_v41  ;;  %v252_v46 = vsel %vm250_vm14, %v249_v40, %v247_v42 }
  0x48   : >> { %vm255_vm15 = vcmp.ge.f32.partialorder %v253_v43, %v251_v45  ;;  %v258_v47 = vrot.slane %v253_v43, 1  ;;  %v259_v48 = vrot.slane %v254_v44, 1 }
  0x49   : >> { %v256_v49 = vsel %vm255_vm15, %v253_v43, %v251_v45  ;;  %v257_v50 = vsel %vm255_vm15, %v254_v44, %v252_v46 }
  0x4a   : >> { %vm260_vm0 = vcmp.ge.f32.partialorder %v258_v47, %v256_v49  ;;  %v263_v51 = vrot.slane %v258_v47, 1  ;;  %v264_v52 = vrot.slane %v259_v48, 1 }
  0x4b   : >> { %v261_v53 = vsel %vm260_vm0, %v258_v47, %v256_v49  ;;  %v262_v54 = vsel %vm260_vm0, %v259_v48, %v257_v50  ;;  %vm1070_vm0 = vmand %vm395_vm5, %vm1016_vm3 }
  0x4c   : >> { %vm265_vm1 = vcmp.ge.f32.partialorder %v263_v51, %v261_v53  ;;  %v268_v55 = vrot.slane %v263_v51, 1  ;;  %v269_v56 = vrot.slane %v264_v52, 1 }
  0x4d   : >> { %v266_v57 = vsel %vm265_vm1, %v263_v51, %v261_v53  ;;  %v267_v58 = vsel %vm265_vm1, %v264_v52, %v262_v54 }
  0x4e   : >> { %vm270_vm2 = vcmp.ge.f32.partialorder %v268_v55, %v266_v57 }
  0x4f   : >> { %v272_v59 = vsel %vm270_vm2, %v269_v56, %v267_v58  ;;  %vm1079_vm2 = vmand %vm339_vm6, %vm1016_vm3 }
  0x50   : >> { %274 = vrot.lane.b32.xlu0 %v272_v59, %s273_s30  ;;  %s530_s30 = sshll.u32 (%p183_p12), %s138_s20, 4  ;;  %s531_s30 = int_to_ptr.vmem [resolvable:$true] %s530_s30 }
  0xc2   : >> { %v275_v60 = vpop.permute.xlu0 %274 }
  0xc3   : >> { %729 = vpush %v275_v60 }
  0xf4   : >> { %s730_s5 = spop %729 }
  0xf5   : >> { %v281_v1 = vstv %s730_s5  ;;  %s286_s6 = scalar_lea.vmem %s959_s11, %s730_s5 [#allocation1]  ;;  %s292_s10 = scalar_lea.vmem [#allocation7], %s730_s5 }
  0xf6   : >> { %v283_v2 = vsel %vm1016_vm3, %v281_v1, %v282_v63  ;;  %v1024_v3 = vld [vmem:[%s286_s6] ss:$0 sm:$0xff] }
  0xf7   : >> { %284 = vst [vmem:[%s966_s19] sm:$0x1] %v283_v2  ;;  %v294_v7 = vld [vmem:[%s292_s10] ss:$0 sm:$0xff]  ;;  %vm297_vm4 = vcmp.ne.f32.partialorder %v1024_v3, 0.0 }
  0xf8   : >> { %289 = vst [vmem:[%s286_s6] sm:$0x1] %v287_v0  ;;  %vm298_vm8 = vmand %vm1016_vm3, %vm297_vm4 }
  0xf9   : >> { %290 = vst [vmem:[%s285_s4] sm:$0x1] %v1024_v3  ;;  %v299_v8 = vsel %vm298_vm8, %v1024_v3, 1.0  ;;  %s532_s4 = sshll.u32 (%p183_p12), %s528_s28, 4  ;;  %s815_s28 = scalar_lea.hbm (%p183_p12), %s1192_s2, 4  ;;  %s533_s4 = int_to_ptr.hbm [resolvable:$true] %s532_s4 }
  0xfa   : >> { %295 = vst [vmem:[%s292_s10] sm:$0x1] %v293_v6  ;;  %v396_v9 = vsel %vm395_vm5, %v299_v8, 1.0  ;;  %v340_v10 = vsel %vm339_vm6, %v299_v8, 1.0  ;;  %v312_v11 = vsel %vm311_vm7, %v299_v8, 1.0  ;;  %v1053_v12 = vsel %vm1194_vm9, %v299_v8, 1.0  ;;  %s809_s10 = sshra.s32 (%p183_p12), %s533_s4, 4  ;;  %s810_s10 = int_to_ptr.hbm [resolvable:$true] %s809_s10 }
  0xfb   : >> { %296 = vst [vmem:[%s291_s8] sm:$0x1] %v294_v7  ;;  %787 = vrcp.f32 %v396_v9  ;;  %v406_v13 = vand.u32 2147483647, %v396_v9  ;;  %v408_v14 = vand.u32 2147483648, %v396_v9  ;;  %v350_v18 = vand.u32 2147483647, %v340_v10  ;;  %s497_s8 = scalar_lea.vmem (%p183_p12), %s1191_s1, %s724_s29  ;;  %p816_p2 = scmp.lt.s32.totalorder (%p183_p12), %s810_s10, %s1192_s2 }
  0xfc   : >> { %789 = vrcp.f32 %v340_v10  ;;  %v352_v19 = vand.u32 2147483648, %v340_v10  ;;  %vm402_vm10 = vweird.f32 %v396_v9  ;;  %vm346_vm11 = vweird.f32 %v340_v10  ;;  %s811_s17 = scalar_lea.hbm (%p183_p12), %s810_s10, 4 }
  0xfd   : >> { %791 = vrcp.f32 %v312_v11  ;;  %vm1056_vm12 = vcmp.eq.f32.partialorder %v406_v13, 8.507059e+37  ;;  %v409_v28 = vor.u32 1.1754944e-38, %v408_v14  ;;  %vm1060_vm13 = vcmp.eq.f32.partialorder %v350_v18, 8.507059e+37  ;;  %p812_p13 = scmp.ne.s32.totalorder (%p183_p12), %s810_s10, %s811_s17  ;;  %p817_p3 = scmp.lt.s32.totalorder (%p183_p12), %s815_s28, %s811_s17 }
  0xfe   : >> { %793 = vrcp.f32 %v1053_v12  ;;  %v353_v33 = vor.u32 1.1754944e-38, %v352_v19  ;;  %vm318_vm14 = vweird.f32 %v312_v11  ;;  %v322_v39 = vand.u32 2147483647, %v312_v11  ;;  %v473_v4 = vld [vmem:[#allocation2] sm:$0xf] (%p183_p12) }
  0xff   : >> { %v324_v40 = vand.u32 2147483648, %v312_v11  ;;  %vm374_vm8 = vweird.f32 %v1053_v12  ;;  %v378_v45 = vand.u32 2147483647, %v1053_v12  ;;  %v380_v46 = vand.u32 2147483648, %v1053_v12  ;;  %476 = vst [vmem:[%s138_s20] sm:$0xf] (%p183_p12), %v473_v4  ;;  %p813_p0 = pnand (%p183_p12), %p812_p13, %p934_p5  ;;  %p818_p4 = por (%p183_p12), %p817_p3, %p816_p2 }
 0x100   : >> { %v719_v49 = vld [vmem:[%s959_s11 + $0x18] sm:$0xff]  ;;  %v715_v54 = vld [vmem:[%s959_s11 + $0x8] sm:$0xff]  ;;  %v308_v60 = vld [vmem:[%s959_s11] sm:$0xff] }
 0x101   : >> { %v788_v16 = vpop.eup %787  ;;  %v325_v52 = vor.u32 1.1754944e-38, %v324_v40  ;;  %v381_v6 = vor.u32 1.1754944e-38, %v380_v46  ;;  %p814_p1 = pneg (%p183_p12), %p813_p0 }
 0x102   : >> { %v790_v21 = vpop.eup %789  ;;  %v398_v22 = vmul.f32 %v788_v16, %v396_v9  ;;  %vm403_vm15 = vweird.f32 %v788_v16 }
 0x103   : >> { %v792_v23 = vpop.eup %791  ;;  %v342_v24 = vmul.f32 %v790_v21, %v340_v10  ;;  %vm347_vm1 = vweird.f32 %v790_v21  ;;  %vm404_vm5 = vmor %vm402_vm10, %vm403_vm15  ;;  %vm323_vm15 = vcmp.eq.f32.partialorder %v322_v39, 8.507059e+37  ;;  %v717_v10 = vld [vmem:[%s959_s11 + $0x10] sm:$0xff]  ;;  %p819_p7 = pnand (%p183_p12), %p818_p4, %p814_p1 }
 0x104   : >> { %v399_v26 = vsub.f32 1.0, %v398_v22  ;;  %v314_v29 = vmul.f32 %v792_v23, %v312_v11  ;;  %v794_v30 = vpop.eup %793  ;;  %vm319_vm4 = vweird.f32 %v792_v23  ;;  %vm348_vm9 = vmor %vm346_vm11, %vm347_vm1 }
 0x105   : >> { %v343_v31 = vsub.f32 1.0, %v342_v24  ;;  %v370_v36 = vmul.f32 %v794_v30, %v1053_v12  ;;  %vm375_vm6 = vweird.f32 %v794_v30  ;;  %vm320_vm10 = vmor %vm318_vm14, %vm319_vm4  ;;  %vm303_vm14 = vcmp.gt.s32.totalorder %v1010_v61, %v985_v17  ;;  %v421_v61 = vld [vmem:[#allocation7 + $0x8] sm:$0xff] (%p183_p12) }
 0x106   : >> { %v400_v34 = vmul.f32 %v788_v16, %v399_v26  ;;  %v315_v35 = vsub.f32 1.0, %v314_v29  ;;  %vm1101_vm11 = vmand %vm311_vm7, %vm1016_vm3  ;;  %vm379_vm7 = vcmp.eq.f32.partialorder %v378_v45, 8.507059e+37  ;;  %v304_v13 = vsel %vm303_vm14, %v1024_v3, 0.0  ;;  %v423_v3 = vld [vmem:[#allocation7 + $0x10] sm:$0xff] (%p183_p12) }
 0x107   : >> { %v344_v38 = vmul.f32 %v790_v21, %v343_v31  ;;  %v371_v43 = vsub.f32 1.0, %v370_v36 }
 0x108   : >> { %v401_v41 = vadd.f32 %v788_v16, %v400_v34  ;;  %v316_v25 = vmul.f32 %v792_v23, %v315_v35 }
 0x109   : >> { %v345_v44 = vadd.f32 %v790_v21, %v344_v38  ;;  %v372_v48 = vmul.f32 %v794_v30, %v371_v43 }
 0x10a   : >> { %v405_v47 = vsel %vm404_vm5, %v788_v16, %v401_v41  ;;  %v317_v15 = vadd.f32 %v792_v23, %v316_v25 }
 0x10b   : >> { %v410_v50 = vsel %vm1056_vm12, %v409_v28, %v405_v47  ;;  %v349_v51 = vsel %vm348_vm9, %v790_v21, %v345_v44  ;;  %v373_v58 = vadd.f32 %v794_v30, %v372_v48  ;;  %vm376_vm9 = vmor %vm374_vm8, %vm375_vm6  ;;  %vm1209_vm12 = vcmp.gt.s32.totalorder %v991_v20, %v985_v17  ;;  %v419_v17 = vld [vmem:[#allocation7] sm:$0xff] (%p183_p12)  ;;  %v425_v28 = vld [vmem:[#allocation7 + $0x18] sm:$0xff] (%p183_p12) }
 0x10c   : >> { %v411_v53 = vmul.f32 %v719_v49, %v410_v50  ;;  %v354_v55 = vsel %vm1060_vm13, %v353_v33, %v349_v51  ;;  %v321_v56 = vsel %vm320_vm10, %v792_v23, %v317_v15  ;;  %vm384_vm13 = vmand %vm1209_vm12, %vm1016_vm3 }
 0x10d   : >> { %v355_v59 = vmul.f32 %v715_v54, %v354_v55  ;;  %v326_v63 = vsel %vm323_vm15, %v325_v52, %v321_v56  ;;  %v377_v2 = vsel %vm376_vm9, %v794_v30, %v373_v58 }
 0x10e   : >> { %v413_v0 = vsel %vm1070_vm0, %v411_v53, 0.0  ;;  %v327_v1 = vmul.f32 %v326_v63, %v308_v60  ;;  %v382_v9 = vsel %vm379_vm7, %v381_v6, %v377_v2 }
 0x10f   : >> { %414 = vadd.xlane.f32.xlu2 %v413_v0  ;;  %v357_v7 = vsel %vm1079_vm2, %v355_v59, 0.0  ;;  %v383_v11 = vmul.f32 %v717_v10, %v382_v9 }
 0x110   : >> { %358 = vadd.xlane.f32.xlu1 %v357_v7  ;;  %v329_v8 = vsel %vm1101_vm11, %v327_v1, 0.0 }
 0x111   : >> { %330 = vadd.xlane.f32.xlu0 %v329_v8  ;;  %v385_v12 = vsel %vm384_vm13, %v383_v11, 0.0 }
 0x118   : >> { %386 = vadd.xlane.f32.xlu1 %v385_v12 }
 0x13a   : > { %438 = vxpose.xlu0.b32.start [1/4] (short) (narrow) (%p183_p12), %v419_v17, 8 }
 0x142   : > { %439 = vxpose.xlu0.b32.cont [2/4] (short) (narrow) (%p183_p12), %v421_v61, 8 }
 0x14a   : > { %440 = vxpose.xlu0.b32.cont [3/4] (short) (narrow) (%p183_p12), %v423_v3, 8 }
 0x152   : > { %441 = vxpose.xlu0.b32.end [4/4] (short) (narrow) (%p183_p12), %v425_v28, 8 }
 0x182   : >> { %v415_v14 = vpop.xlane.xlu2 %414 }
 0x183   : >> { %v416_v16 = vmul.f32 %v415_v14, %v304_v13  ;;  %v359_v18 = vpop.xlane.xlu1 %358 }
 0x184   : >> { %v360_v19 = vmul.f32 %v359_v18, %v304_v13  ;;  %v331_v21 = vpop.xlane.xlu0 %330 }
 0x185   : >> { %v417_v62 = vsub.f32 %v411_v53, %v416_v16  ;;  %v332_v22 = vmul.f32 %v331_v21, %v304_v13 }
 0x186   : >> { %v361_v23 = vsub.f32 %v355_v59, %v360_v19 }
 0x187   : >> { %720 = vst [vmem:[%s959_s11 + $0x18] sm:$0xff] %v417_v62  ;;  %v333_v20 = vsub.f32 %v327_v1, %v332_v22 }
 0x188   : >> { %716 = vst [vmem:[%s959_s11 + $0x8] sm:$0xff] %v361_v23 }
 0x189   : >> { %334 = vst [vmem:[%s959_s11] sm:$0xff] %v333_v20 }
 0x18b   : >> { %v387_v24 = vpop.xlane.xlu1 %386 }
 0x18c   : >> { %v388_v26 = vmul.f32 %v387_v24, %v304_v13 }
 0x18e   : >> { %v389_v27 = vsub.f32 %v383_v11, %v388_v26  ;;  %185 = sbr.rel (!%p183_p12) target bundleno = 49 (0x31), region = 210  ;;  %v516_v31 = vld [vmem:[%s959_s11 + $0x18] sm:$0xff] (%p183_p12) }
 0x18f   : > { %v512_v29 = vld [vmem:[%s959_s11 + $0x8] sm:$0xff] (%p183_p12) }
 0x190   : >> { %718 = vst [vmem:[%s959_s11 + $0x10] sm:$0xff] %v389_v27  ;;  %v510_v5 = vld [vmem:[%s959_s11] sm:$0xff] (%p183_p12) }
 0x191   : > { %511 = vst [vmem:[%s497_s8] sm:$0xff] (%p183_p12), %v510_v5 }
 0x197   : > { %v514_v30 = vld [vmem:[%s959_s11 + $0x10] sm:$0xff] }
 0x198   : > { %822 = shalt.err (!%p819_p7)
}
 0x199   : > { %731 = dma.vmem_to_hbm [thread:$0]  (%p934_p5), %s531_s30, 64, %s533_s4, %s488_s16   ;;  %513 = vst [vmem:[%s497_s8 + $0x8] sm:$0xff] %v512_v29 }
 0x19a   : > { %515 = vst [vmem:[%s497_s8 + $0x10] sm:$0xff] %v514_v30  ;;  %s541_s5 = scalar_lea.vmem (%p934_p5), %s1193_s3, %s1132_s26 }
 0x19b   : > { %517 = vst [vmem:[%s497_s8 + $0x18] sm:$0xff] %v516_v31 }
 0x1de   : > { %v454_v32 = vpop.trf.xlu0 }
 0x1df   : > { %470 = vst [vmem:[%s971_s22] sm:$0x1] %v454_v32 }
 0x1e3   : > { %538 = sbr.rel (!%p934_p5) target bundleno = 496 (0x1f0), region = 80 }
 0x1e6   : > { %v479_v33 = vld [vmem:[#allocation5] sm:$0xf] }
 0x1e7   : > { %482 = vst [vmem:[%s144_s21] sm:$0xf] %v479_v33 }
 0x1ee   : > { %v558_v34 = vld [vmem:[%s144_s21] sm:$0xf] }
 0x1ef   : > { %559 = vst [vmem:[%s541_s5] sm:$0xf] %v558_v34 }
 0x1f0 PF: > { %p737_p8 = scmp.ge.s32.totalorder %s865_s15, 2  ;;  %s587_s22 = sand.u32 1, %s853_s12  }
 0x1f1   : > { %s588_s24 = scalar_lea.sflag [#allocation4], %s587_s22 }
 0x1f2   : > { %p734_p9 = pnand %p737_p8, %p938_p6 }
 0x1f4   : > { %p735_p10 = pneg %p734_p9 }
 0x1f6   : > { %848 = dma.done.wait (%p735_p10), %s588_s24, 64  }
 0x1f7   : > { %850 = vsyncadd (%p735_p10), %s588_s24, 4294967232  ;;  %p10_p5 = scmp.ge.s32.totalorder %s921_s18, 6   ;;  %s1210_s12 = smov %s857_s13 }
 0x1f8   : > { %s1211_s13 = smov %s861_s14  ;;  %s1212_s14 = smov %s932_s23 }
 0x1f9   : > { %s1213_s15 = smov %s921_s18  ;;  %12 = sbr.rel (!%p10_p5) target bundleno = 3 (0x3), region = 221 }
 0x1fe   :  { %601 = vsyncpa [#allocation4], 1 }
 0x1ff   :  { %603 = vsyncpa [#allocation4 + $0x1], 1 }

// kernel: custom-call.10
= control target key start
LH: loop header
LB: loop body
LE: loop exit
PB: predicated region body
PF: predicated region fallthrough
CT: control target
= control target key end

     0   :  { %s1060_s6 = smov 0   ;;  %s1062_s7 = smov 0   ;;  %s1274_s0 = inlined_call_operand.vmem [shape: f32[4,1,32,32], index: 0, kind: input, shape index: {}]   ;;  %s1275_s1 = inlined_call_operand.vmem [shape: f32[4,1,32,32], index: 1, kind: output, shape index: {}]  }
   0x1   :  { %s1064_s8 = smov 0  }
   0x2 LB: > { %s968_s9 = sadd.s32 4294967295, %s1046_s8   ;;  %s33_s10 = sadd.s32 1, %s1042_s7  ;;  %s1046_s8 = sphi %s1064_s8, %s7_s8   ;;  %s1042_s7 = sphi %s1062_s7, %s1277_s7   ;;  %s1038_s6 = sphi %s1060_s6, %s1276_s6  }
   0x3   : > { %p35_p0 = scmp.ge.s32.totalorder %s33_s10, 4  ;;  %p970_p1 = scmp.ge.s32.totalorder %s1046_s8, 4 }
   0x4   : > { %s49_s11 = sand.u32 (!%p970_p1), 1, %s1046_s8   ;;  %s988_s12 = sshll.u32 (!%p970_p1), %s1042_s7, 5 }
   0x5   : > { %s1279_s10 = smov (%p35_p0, %s33_s10), 0  ;;  %47 = sbr.rel (%p970_p1) target bundleno = 15 (0xf), region = 16 }
   0x6   : > { %s971_s13 = sshll.u32 (!%p970_p1), %s49_s11, 5  ;;  %s58_s16 = scalar_lea.vmem (!%p970_p1), %s1274_s0, %s988_s12 }
   0x7   : > { %s51_s17 = scalar_lea.vmem (!%p970_p1), [#allocation0], %s971_s13 }
   0xa   : > { %v93_v0 = vld [vmem:[%s58_s16] sm:$0xff]  ;;  %v95_v1 = vld [vmem:[%s58_s16 + $0x8] sm:$0xff]  ;;  %v97_v2 = vld [vmem:[%s58_s16 + $0x10] sm:$0xff] }
   0xb   : > { %94 = vst [vmem:[%s51_s17] sm:$0xff] %v93_v0  ;;  %v99_v3 = vld [vmem:[%s58_s16 + $0x18] sm:$0xff] }
   0xc   : > { %96 = vst [vmem:[%s51_s17 + $0x8] sm:$0xff] %v95_v1 }
   0xd   : > { %98 = vst [vmem:[%s51_s17 + $0x10] sm:$0xff] %v97_v2 }
   0xe   : > { %100 = vst [vmem:[%s51_s17 + $0x18] sm:$0xff] %v99_v3 }
   0xf PF: > { %p974_p2 = scmp.ge.s32.totalorder %s1046_s8, 1  ;;  %p105_p3 = scmp.lt.s32.totalorder %s1046_s8, 5 }
  0x11   : > { %p106_p4 = pnand %p974_p2, %p105_p3 }
  0x13   : > { %109 = sbr.rel (%p106_p4) target bundleno = 3876 (0xf24), region = 54 }
  0x18   : > { %s112_s18 = sand.u32 1, %s968_s9   ;;  %v123_v4 = vlaneseq  ;;  %v1048_v22 = vmov -1.0   ;;  %v1049_v1 = vmov 0.0   ;;  %s989_s21 = sshll.u32 %s1038_s6, 5 }
  0x19   : > { %s975_s19 = sshll.u32 %s112_s18, 5  ;;  %s859_s24 = scalar_lea.vmem %s1275_s1, %s989_s21 }
  0x1a   : > { %v1087_v5 = vand.u32 127, %v123_v4  ;;  %v1089_v6 = vshrl.u32 %v123_v4, 7  ;;  %s1091_s20 = scalar_lea.vmem [#allocation0], %s975_s19 }
  0x1b   : > { %v130_v7 = vld [vmem:[%s1091_s20] sm:$0xff]  ;;  %v977_v44 = vld [vmem:[%s1091_s20 + $0x8] sm:$0xff] }
  0x1c   : > { %vm129_vm0 = vcmp.eq.s32.totalorder %v1089_v6, %v1087_v5  ;;  %vm125_vm1 = vcmp.lt.s32.totalorder %v1087_v5, 32  ;;  %vm134_vm2 = vcmp.ge.s32.totalorder %v1089_v6, %v1087_v5  ;;  %vm248_vm8 = vcmp.eq.s32.totalorder %v1087_v5, 0 }
  0x1d   : > { %v131_v8 = vsel %vm129_vm0, %v130_v7, 0.0  ;;  %vm135_vm3 = vmand %vm134_vm2, %vm125_vm1  ;;  %vm245_vm9 = vcmp.eq.s32.totalorder %v1087_v5, %v1089_v6  ;;  %v249_v23 = vsel %vm248_vm8, 1.0, %v1048_v22  ;;  %vm277_vm10 = vcmp.eq.s32.totalorder %v1087_v5, 1 }
  0x1e   : > { %132 = vadd.xlane.f32.xlu0 %v131_v8  ;;  %v136_v17 = vsel %vm135_vm3, %v130_v7, 0.0  ;;  %v250_v24 = vsel %vm245_vm9, %v249_v23, 0.0  ;;  %vm287_vm11 = vcmp.eq.s32.totalorder %v1087_v5, 2  ;;  %vm297_vm12 = vcmp.eq.s32.totalorder %v1087_v5, 3 }
  0x1f   : > { %v157_v43 = vadd.s32 8, %v1089_v6  ;;  %vm307_vm14 = vcmp.eq.s32.totalorder %v1087_v5, 4  ;;  %vm317_vm8 = vcmp.eq.s32.totalorder %v1087_v5, 5  ;;  %vm327_vm9 = vcmp.eq.s32.totalorder %v1087_v5, 6 }
  0x21   : > { %vm158_vm13 = vcmp.eq.s32.totalorder %v157_v43, %v1087_v5  ;;  %vm163_vm15 = vcmp.ge.s32.totalorder %v157_v43, %v1087_v5 }
  0x22   : > { %v160_v45 = vsel %vm158_vm13, %v977_v44, 0.0  ;;  %vm164_vm3 = vmand %vm163_vm15, %vm125_vm1  ;;  %vm375_vm13 = vcmp.eq.s32.totalorder %v1087_v5, 10  ;;  %vm403_vm15 = vcmp.eq.s32.totalorder %v1087_v5, 12 }
  0x23   : > { %v165_v60 = vsel %vm164_vm3, %v977_v44, 0.0  ;;  %vm417_vm3 = vcmp.eq.s32.totalorder %v1087_v5, 13 }
  0x91   : > { %v1096_v9 = vpop.xlane.xlu0 %132 }
  0x92   : > { %1016 = vrcp.f32 %v1096_v9  ;;  %v148_v13 = vand.u32 2147483648, %v1096_v9  ;;  %v146_v15 = vand.u32 2147483647, %v1096_v9  ;;  %vm142_vm5 = vweird.f32 %v1096_v9 }
  0x94   : > { %v149_v18 = vor.u32 1.1754944e-38, %v148_v13  ;;  %vm147_vm7 = vcmp.eq.f32.partialorder %v146_v15, 8.507059e+37 }
  0x98   : > { %v1017_v10 = vpop.eup %1016 }
  0x99   : > { %v138_v11 = vmul.f32 %v1017_v10, %v1096_v9  ;;  %vm143_vm4 = vweird.f32 %v1017_v10 }
  0x9a   : > { %vm144_vm6 = vmor %vm142_vm5, %vm143_vm4 }
  0x9b   : > { %v139_v12 = vsub.f32 1.0, %v138_v11 }
  0x9d   : > { %v140_v14 = vmul.f32 %v1017_v10, %v139_v12 }
  0x9f   : > { %v141_v16 = vadd.f32 %v1017_v10, %v140_v14 }
  0xa1   : > { %v145_v19 = vsel %vm144_vm6, %v1017_v10, %v141_v16 }
  0xa2   : > { %v1110_v20 = vsel %vm147_vm7, %v149_v18, %v145_v19  ;;  %vm256_vm7 = vcmp.eq.s32.totalorder %v1087_v5, %v157_v43 }
  0xa3   : > { %v151_v21 = vmul.f32 %v1110_v20, %v136_v17  ;;  %v257_v2 = vsel %vm256_vm7, -1.0, %v1049_v1 }
  0xa5   : > { %152 = vst [vmem:[#allocation2] sm:$0xff] %v151_v21 }
  0xac   : > { %v273_v25 = vld [vmem:[#allocation2 + $0x1] ss:$0 sm:$0xff]  ;;  %v283_v28 = vld [vmem:[#allocation2 + $0x2] ss:$0 sm:$0xff]  ;;  %v293_v33 = vld [vmem:[#allocation2 + $0x3] ss:$0 sm:$0xff] }
  0xad   : > { %v274_v26 = vxor.u32 2147483648, %v273_v25  ;;  %v284_v30 = vxor.u32 2147483648, %v283_v28  ;;  %v294_v35 = vxor.u32 2147483648, %v293_v33  ;;  %v303_v38 = vld [vmem:[#allocation2 + $0x4] ss:$0 sm:$0xff] }
  0xae   : > { %v304_v40 = vxor.u32 2147483648, %v303_v38  ;;  %v313_v46 = vld [vmem:[#allocation2 + $0x5] ss:$0 sm:$0xff]  ;;  %v323_v0 = vld [vmem:[#allocation2 + $0x6] ss:$0 sm:$0xff] }
  0xaf   : > { %v278_v27 = vmul.f32 %v274_v26, %v250_v24  ;;  %v314_v48 = vxor.u32 2147483648, %v313_v46  ;;  %v324_v7 = vxor.u32 2147483648, %v323_v0  ;;  %v333_v13 = vld [vmem:[#allocation2 + $0x7] ss:$0 sm:$0xff] }
  0xb0   : > { %v334_v15 = vxor.u32 2147483648, %v333_v13 }
  0xb1   : > { %279 = vadd.xlane.f32.xlu0 %v278_v27 }
 0x124   : > { %v280_v29 = vpop.xlane.xlu0 %279 }
 0x125   : > { %v281_v31 = vsel %vm277_vm10, %v280_v29, %v250_v24  ;;  %vm337_vm10 = vcmp.eq.s32.totalorder %v1087_v5, 7 }
 0x126   : > { %v288_v32 = vmul.f32 %v284_v30, %v281_v31 }
 0x128   : > { %289 = vadd.xlane.f32.xlu1 %v288_v32 }
 0x19b   : > { %v290_v34 = vpop.xlane.xlu1 %289 }
 0x19c   : > { %v291_v36 = vsel %vm287_vm11, %v290_v34, %v281_v31  ;;  %vm347_vm11 = vcmp.eq.s32.totalorder %v1087_v5, 8 }
 0x19d   : > { %v298_v37 = vmul.f32 %v294_v35, %v291_v36 }
 0x19f   : > { %299 = vadd.xlane.f32.xlu1 %v298_v37 }
 0x1a7   : > { %161 = vadd.xlane.f32.xlu1 %v160_v45 }
 0x212   : > { %v300_v39 = vpop.xlane.xlu1 %299 }
 0x213   : > { %v301_v41 = vsel %vm297_vm12, %v300_v39, %v291_v36  ;;  %vm361_vm12 = vcmp.eq.s32.totalorder %v1087_v5, 9 }
 0x214   : > { %v308_v42 = vmul.f32 %v304_v40, %v301_v41 }
 0x216   : > { %309 = vadd.xlane.f32.xlu2 %v308_v42 }
 0x21a   : > { %v1123_v51 = vpop.xlane.xlu1 %161 }
 0x21b   : > { %1018 = vrcp.f32 %v1123_v51  ;;  %v177_v54 = vand.u32 2147483648, %v1123_v51  ;;  %vm171_vm0 = vweird.f32 %v1123_v51  ;;  %v175_v56 = vand.u32 2147483647, %v1123_v51 }
 0x21d   : > { %v178_v58 = vor.u32 1.1754944e-38, %v177_v54  ;;  %vm176_vm6 = vcmp.eq.f32.partialorder %v175_v56, 8.507059e+37 }
 0x221   : > { %v1019_v52 = vpop.eup %1018 }
 0x222   : > { %v167_v53 = vmul.f32 %v1019_v52, %v1123_v51  ;;  %vm172_vm2 = vweird.f32 %v1019_v52 }
 0x223   : > { %vm173_vm4 = vmor %vm171_vm0, %vm172_vm2 }
 0x224   : > { %v168_v55 = vsub.f32 1.0, %v167_v53 }
 0x226   : > { %v169_v57 = vmul.f32 %v1019_v52, %v168_v55 }
 0x228   : > { %v170_v59 = vadd.f32 %v1019_v52, %v169_v57 }
 0x22a   : > { %v174_v61 = vsel %vm173_vm4, %v1019_v52, %v170_v59 }
 0x22b   : > { %v1135_v62 = vsel %vm176_vm6, %v178_v58, %v174_v61  ;;  %v978_v61 = vld [vmem:[%s1091_s20 + $0x10] sm:$0xff] }
 0x22c   : > { %v180_v63 = vmul.f32 %v1135_v62, %v165_v60  ;;  %v186_v60 = vadd.s32 16, %v1089_v6 }
 0x22e   : > { %181 = vst [vmem:[#allocation2 + $0x8] sm:$0xff] %v180_v63  ;;  %vm187_vm2 = vcmp.eq.s32.totalorder %v186_v60, %v1087_v5  ;;  %vm192_vm4 = vcmp.ge.s32.totalorder %v186_v60, %v1087_v5 }
 0x22f   : > { %v189_v63 = vsel %vm187_vm2, %v978_v61, 0.0  ;;  %vm495_vm2 = vcmp.eq.s32.totalorder %v1087_v5, 18 }
 0x235   : > { %v343_v3 = vld [vmem:[#allocation2 + $0x8] ss:$0 sm:$0xff]  ;;  %v357_v22 = vld [vmem:[#allocation2 + $0x9] ss:$0 sm:$0xff]  ;;  %v371_v30 = vld [vmem:[#allocation2 + $0xa] ss:$0 sm:$0xff] }
 0x236   : > { %v344_v8 = vxor.u32 2147483648, %v343_v3  ;;  %v358_v24 = vxor.u32 2147483648, %v357_v22  ;;  %v372_v32 = vxor.u32 2147483648, %v371_v30  ;;  %v385_v38 = vld [vmem:[#allocation2 + $0xb] ss:$0 sm:$0xff] }
 0x237   : > { %v386_v40 = vxor.u32 2147483648, %v385_v38  ;;  %v399_v46 = vld [vmem:[#allocation2 + $0xc] ss:$0 sm:$0xff]  ;;  %v413_v55 = vld [vmem:[#allocation2 + $0xd] ss:$0 sm:$0xff] }
 0x238   : > { %v352_v12 = vmul.f32 %v344_v8, %v257_v2  ;;  %v414_v57 = vxor.u32 2147483648, %v413_v55 }
 0x23a   : > { %353 = vadd.xlane.f32.xlu1 %v352_v12 }
 0x289   : > { %v310_v47 = vpop.xlane.xlu2 %309 }
 0x28a   : > { %v311_v49 = vsel %vm307_vm14, %v310_v47, %v301_v41  ;;  %vm389_vm14 = vcmp.eq.s32.totalorder %v1087_v5, 11 }
 0x28b   : > { %v318_v50 = vmul.f32 %v314_v48, %v311_v49  ;;  %v400_v48 = vxor.u32 2147483648, %v399_v46 }
 0x28d   : > { %319 = vadd.xlane.f32.xlu2 %v318_v50 }
 0x2ad   : > { %v354_v23 = vpop.xlane.xlu1 %353 }
 0x2ae   : > { %v355_v25 = vsel %vm347_vm11, %v354_v23, %v257_v2 }
 0x2af   : > { %v366_v26 = vmul.f32 %v358_v24, %v355_v25 }
 0x300   : > { %v320_v4 = vpop.xlane.xlu2 %319 }
 0x301   : > { %v321_v10 = vsel %vm317_vm8, %v320_v4, %v311_v49  ;;  %v427_v4 = vld [vmem:[#allocation2 + $0xe] ss:$0 sm:$0xff]  ;;  %vm193_vm8 = vmand %vm192_vm4, %vm125_vm1  ;;  %vm531_vm4 = vcmp.eq.s32.totalorder %v1087_v5, 20 }
 0x302   : > { %v328_v11 = vmul.f32 %v324_v7, %v321_v10  ;;  %v194_v22 = vsel %vm193_vm8, %v978_v61, 0.0 }
 0x304   : > { %329 = vadd.xlane.f32.xlu0 %v328_v11 }
 0x377   : > { %v330_v14 = vpop.xlane.xlu0 %329 }
 0x378   : > { %v331_v16 = vsel %vm327_vm9, %v330_v14, %v321_v10 }
 0x379   : > { %v338_v17 = vmul.f32 %v334_v15, %v331_v16 }
 0x37b   : > { %339 = vadd.xlane.f32.xlu2 %v338_v17 }
 0x3ee   : > { %v340_v18 = vpop.xlane.xlu2 %339 }
 0x3ef   : > { %v341_v19 = vsel %vm337_vm10, %v340_v18, %v331_v16 }
 0x3f0   : > { %v348_v21 = vmul.f32 %v344_v8, %v341_v19  ;;  %v428_v8 = vxor.u32 2147483648, %v427_v4 }
 0x3f2   : > { %349 = vadd.xlane.f32.xlu0 %v348_v21 }
 0x3fa   : > { %367 = vadd.xlane.f32.xlu0 %v366_v26 }
 0x465   : > { %v350_v27 = vpop.xlane.xlu0 %349 }
 0x466   : > { %v351_v28 = vsel %vm347_vm11, %v350_v27, %v341_v19  ;;  %vm431_vm11 = vcmp.eq.s32.totalorder %v1087_v5, 14 }
 0x467   : > { %v362_v29 = vmul.f32 %v358_v24, %v351_v28 }
 0x469   : > { %363 = vadd.xlane.f32.xlu2 %v362_v29  ;;  %v441_v29 = vld [vmem:[#allocation2 + $0xf] ss:$0 sm:$0xff] }
 0x46d   : > { %v368_v31 = vpop.xlane.xlu0 %367 }
 0x46e   : > { %v369_v33 = vsel %vm361_vm12, %v368_v31, %v355_v25  ;;  %v442_v31 = vxor.u32 2147483648, %v441_v29 }
 0x46f   : > { %v380_v34 = vmul.f32 %v372_v32, %v369_v33 }
 0x471   : > { %381 = vadd.xlane.f32.xlu2 %v380_v34 }
 0x4dc   : > { %v364_v35 = vpop.xlane.xlu2 %363 }
 0x4dd   : > { %v365_v36 = vsel %vm361_vm12, %v364_v35, %v351_v28  ;;  %vm263_vm12 = vcmp.eq.s32.totalorder %v1087_v5, %v186_v60 }
 0x4de   : > { %v376_v37 = vmul.f32 %v372_v32, %v365_v36 }
 0x4e0   : > { %377 = vadd.xlane.f32.xlu1 %v376_v37 }
 0x4e4   : > { %v382_v39 = vpop.xlane.xlu2 %381 }
 0x4e5   : > { %v383_v41 = vsel %vm375_vm13, %v382_v39, %v369_v33 }
 0x4e6   : > { %v394_v42 = vmul.f32 %v386_v40, %v383_v41 }
 0x4e8   : > { %395 = vadd.xlane.f32.xlu1 %v394_v42 }
 0x553   : > { %v378_v43 = vpop.xlane.xlu1 %377 }
 0x554   : > { %v379_v44 = vsel %vm375_vm13, %v378_v43, %v365_v36  ;;  %v264_v36 = vsel %vm263_vm12, -1.0, %v1049_v1  ;;  %vm445_vm13 = vcmp.eq.s32.totalorder %v1087_v5, 15 }
 0x555   : > { %v390_v45 = vmul.f32 %v386_v40, %v379_v44 }
 0x557   : > { %391 = vadd.xlane.f32.xlu0 %v390_v45 }
 0x55b   : > { %v396_v47 = vpop.xlane.xlu1 %395 }
 0x55c   : > { %v397_v49 = vsel %vm389_vm14, %v396_v47, %v383_v41 }
 0x55d   : > { %v408_v50 = vmul.f32 %v400_v48, %v397_v49 }
 0x55f   : > { %409 = vadd.xlane.f32.xlu0 %v408_v50 }
 0x5ca   : > { %v392_v52 = vpop.xlane.xlu0 %391 }
 0x5cb   : > { %v393_v53 = vsel %vm389_vm14, %v392_v52, %v379_v44  ;;  %vm459_vm14 = vcmp.eq.s32.totalorder %v1087_v5, 16 }
 0x5cc   : > { %v404_v54 = vmul.f32 %v400_v48, %v393_v53 }
 0x5ce   : > { %405 = vadd.xlane.f32.xlu2 %v404_v54 }
 0x5d2   : > { %v410_v56 = vpop.xlane.xlu0 %409 }
 0x5d3   : > { %v411_v58 = vsel %vm403_vm15, %v410_v56, %v397_v49 }
 0x5d4   : > { %v422_v59 = vmul.f32 %v414_v57, %v411_v58 }
 0x5d6   : > { %423 = vadd.xlane.f32.xlu2 %v422_v59 }
 0x5de   : > { %190 = vadd.xlane.f32.xlu2 %v189_v63 }
 0x641   : > { %v406_v0 = vpop.xlane.xlu2 %405 }
 0x642   : > { %v407_v2 = vsel %vm403_vm15, %v406_v0, %v393_v53  ;;  %vm477_vm15 = vcmp.eq.s32.totalorder %v1087_v5, 17 }
 0x643   : > { %v418_v3 = vmul.f32 %v414_v57, %v407_v2 }
 0x645   : > { %419 = vadd.xlane.f32.xlu1 %v418_v3 }
 0x649   : > { %v424_v7 = vpop.xlane.xlu2 %423 }
 0x64a   : > { %v425_v10 = vsel %vm417_vm3, %v424_v7, %v411_v58 }
 0x64b   : > { %v436_v11 = vmul.f32 %v428_v8, %v425_v10 }
 0x64d   : > { %437 = vadd.xlane.f32.xlu1 %v436_v11 }
 0x651   : > { %v1154_v12 = vpop.xlane.xlu2 %190 }
 0x652   : > { %1020 = vrcp.f32 %v1154_v12  ;;  %v206_v15 = vand.u32 2147483648, %v1154_v12  ;;  %vm200_vm6 = vweird.f32 %v1154_v12  ;;  %v204_v17 = vand.u32 2147483647, %v1154_v12 }
 0x654   : > { %v207_v19 = vor.u32 1.1754944e-38, %v206_v15  ;;  %vm205_vm10 = vcmp.eq.f32.partialorder %v204_v17, 8.507059e+37 }
 0x658   : > { %v1021_v13 = vpop.eup %1020 }
 0x659   : > { %v196_v14 = vmul.f32 %v1021_v13, %v1154_v12  ;;  %vm201_vm7 = vweird.f32 %v1021_v13 }
 0x65a   : > { %vm202_vm9 = vmor %vm200_vm6, %vm201_vm7  ;;  %vm549_vm7 = vcmp.eq.s32.totalorder %v1087_v5, 21 }
 0x65b   : > { %v197_v16 = vsub.f32 1.0, %v196_v14 }
 0x65d   : > { %v198_v18 = vmul.f32 %v1021_v13, %v197_v16 }
 0x65f   : > { %v199_v21 = vadd.f32 %v1021_v13, %v198_v18 }
 0x661   : > { %v203_v23 = vsel %vm202_vm9, %v1021_v13, %v199_v21  ;;  %vm567_vm9 = vcmp.eq.s32.totalorder %v1087_v5, 22 }
 0x662   : > { %v1166_v24 = vsel %vm205_vm10, %v207_v19, %v203_v23 }
 0x663   : > { %v209_v25 = vmul.f32 %v1166_v24, %v194_v22 }
 0x665   : > { %210 = vst [vmem:[#allocation2 + $0x10] sm:$0xff] %v209_v25 }
 0x66c   : > { %v455_v33 = vld [vmem:[#allocation2 + $0x10] ss:$0 sm:$0xff]  ;;  %v473_v44 = vld [vmem:[#allocation2 + $0x11] ss:$0 sm:$0xff]  ;;  %v491_v56 = vld [vmem:[#allocation2 + $0x12] ss:$0 sm:$0xff] }
 0x66d   : > { %v456_v35 = vxor.u32 2147483648, %v455_v33  ;;  %v474_v45 = vxor.u32 2147483648, %v473_v44  ;;  %v492_v58 = vxor.u32 2147483648, %v491_v56  ;;  %v509_v7 = vld [vmem:[#allocation2 + $0x13] ss:$0 sm:$0xff] }
 0x66e   : > { %v527_v21 = vld [vmem:[#allocation2 + $0x14] ss:$0 sm:$0xff]  ;;  %v545_v33 = vld [vmem:[#allocation2 + $0x15] ss:$0 sm:$0xff]  ;;  %v563_v44 = vld [vmem:[#allocation2 + $0x16] ss:$0 sm:$0xff] }
 0x66f   : > { %v468_v37 = vmul.f32 %v456_v35, %v264_v36  ;;  %v528_v23 = vxor.u32 2147483648, %v527_v21 }
 0x6b8   : > { %v420_v26 = vpop.xlane.xlu1 %419 }
 0x6b9   : > { %v421_v27 = vsel %vm417_vm3, %v420_v26, %v407_v2  ;;  %vm513_vm3 = vcmp.eq.s32.totalorder %v1087_v5, 19 }
 0x6ba   : > { %v432_v28 = vmul.f32 %v428_v8, %v421_v27 }
 0x6bc   : > { %433 = vadd.xlane.f32.xlu0 %v432_v28 }
 0x6c0   : > { %v438_v30 = vpop.xlane.xlu1 %437 }
 0x6c1   : > { %v439_v32 = vsel %vm431_vm11, %v438_v30, %v425_v10  ;;  %v510_v10 = vxor.u32 2147483648, %v509_v7 }
 0x6c2   : > { %v450_v34 = vmul.f32 %v442_v31, %v439_v32 }
 0x6c4   : > { %451 = vadd.xlane.f32.xlu1 %v450_v34 }
 0x6cc   : > { %469 = vadd.xlane.f32.xlu1 %v468_v37 }
 0x72f   : > { %v434_v38 = vpop.xlane.xlu0 %433 }
 0x730   : > { %v435_v39 = vsel %vm431_vm11, %v434_v38, %v421_v27 }
 0x731   : > { %v446_v40 = vmul.f32 %v442_v31, %v435_v39 }
 0x733   : > { %447 = vadd.xlane.f32.xlu0 %v446_v40 }
 0x737   : > { %v452_v41 = vpop.xlane.xlu1 %451 }
 0x738   : > { %v453_v42 = vsel %vm445_vm13, %v452_v41, %v439_v32 }
 0x739   : > { %v464_v43 = vmul.f32 %v456_v35, %v453_v42 }
 0x73b   : > { %465 = vadd.xlane.f32.xlu0 %v464_v43 }
 0x73f   : > { %v470_v46 = vpop.xlane.xlu1 %469 }
 0x740   : > { %v471_v47 = vsel %vm459_vm14, %v470_v46, %v264_v36  ;;  %v564_v46 = vxor.u32 2147483648, %v563_v44 }
 0x741   : > { %v486_v48 = vmul.f32 %v474_v45, %v471_v47 }
 0x743   : > { %487 = vadd.xlane.f32.xlu1 %v486_v48 }
 0x7a6   : > { %v448_v49 = vpop.xlane.xlu0 %447 }
 0x7a7   : > { %v449_v50 = vsel %vm445_vm13, %v448_v49, %v435_v39 }
 0x7a8   : > { %v460_v52 = vmul.f32 %v456_v35, %v449_v50  ;;  %v546_v35 = vxor.u32 2147483648, %v545_v33 }
 0x7aa   : > { %461 = vadd.xlane.f32.xlu2 %v460_v52 }
 0x7ae   : > { %v466_v53 = vpop.xlane.xlu0 %465 }
 0x7af   : > { %v467_v54 = vsel %vm459_vm14, %v466_v53, %v453_v42 }
 0x7b0   : > { %v482_v55 = vmul.f32 %v474_v45, %v467_v54 }
 0x7b2   : > { %483 = vadd.xlane.f32.xlu0 %v482_v55 }
 0x7b6   : > { %v488_v57 = vpop.xlane.xlu1 %487 }
 0x7b7   : > { %v489_v59 = vsel %vm477_vm15, %v488_v57, %v471_v47 }
 0x7b8   : > { %v504_v60 = vmul.f32 %v492_v58, %v489_v59 }
 0x7ba   : > { %505 = vadd.xlane.f32.xlu1 %v504_v60  ;;  %v581_v60 = vld [vmem:[#allocation2 + $0x17] ss:$0 sm:$0xff] }
 0x81d   : > { %v462_v61 = vpop.xlane.xlu2 %461 }
 0x81e   : > { %v463_v63 = vsel %vm459_vm14, %v462_v61, %v449_v50  ;;  %v979_v61 = vld [vmem:[%s1091_s20 + $0x18] sm:$0xff] }
 0x81f   : > { %v478_v0 = vmul.f32 %v474_v45, %v463_v63 }
 0x821   : > { %479 = vadd.xlane.f32.xlu2 %v478_v0  ;;  %v582_v0 = vxor.u32 2147483648, %v581_v60 }
 0x825   : > { %v484_v2 = vpop.xlane.xlu0 %483 }
 0x826   : > { %v485_v3 = vsel %vm477_vm15, %v484_v2, %v467_v54 }
 0x827   : > { %v500_v4 = vmul.f32 %v492_v58, %v485_v3 }
 0x829   : > { %501 = vadd.xlane.f32.xlu0 %v500_v4 }
 0x82d   : > { %v506_v8 = vpop.xlane.xlu1 %505 }
 0x82e   : > { %v507_v11 = vsel %vm495_vm2, %v506_v8, %v489_v59  ;;  %v215_v59 = vadd.s32 24, %v1089_v6 }
 0x82f   : > { %v522_v13 = vmul.f32 %v510_v10, %v507_v11 }
 0x830   : > { %vm216_vm8 = vcmp.eq.s32.totalorder %v215_v59, %v1087_v5  ;;  %vm221_vm10 = vcmp.ge.s32.totalorder %v215_v59, %v1087_v5 }
 0x831   : > { %523 = vadd.xlane.f32.xlu1 %v522_v13  ;;  %vm222_vm13 = vmand %vm221_vm10, %vm125_vm1  ;;  %vm270_vm1 = vcmp.eq.s32.totalorder %v1087_v5, %v215_v59  ;;  %vm713_vm10 = vcmp.eq.s32.totalorder %v1087_v5, 29 }
 0x894   : > { %v480_v14 = vpop.xlane.xlu2 %479 }
 0x895   : > { %v481_v15 = vsel %vm477_vm15, %v480_v14, %v463_v63 }
 0x896   : > { %v496_v16 = vmul.f32 %v492_v58, %v481_v15 }
 0x898   : > { %497 = vadd.xlane.f32.xlu2 %v496_v16 }
 0x89c   : > { %v502_v17 = vpop.xlane.xlu0 %501 }
 0x89d   : > { %v503_v18 = vsel %vm495_vm2, %v502_v17, %v485_v3  ;;  %v218_v3 = vsel %vm216_vm8, %v979_v61, 0.0  ;;  %vm669_vm8 = vcmp.eq.s32.totalorder %v1087_v5, 27 }
 0x89e   : > { %v518_v19 = vmul.f32 %v510_v10, %v503_v18 }
 0x8a0   : > { %519 = vadd.xlane.f32.xlu0 %v518_v19 }
 0x8a4   : > { %v524_v22 = vpop.xlane.xlu1 %523 }
 0x8a5   : > { %v525_v25 = vsel %vm513_vm3, %v524_v22, %v507_v11 }
 0x8a6   : > { %v540_v26 = vmul.f32 %v528_v23, %v525_v25 }
 0x8a8   : > { %541 = vadd.xlane.f32.xlu1 %v540_v26 }
 0x90b   : > { %v498_v27 = vpop.xlane.xlu2 %497 }
 0x90c   : > { %v499_v28 = vsel %vm495_vm2, %v498_v27, %v481_v15  ;;  %vm585_vm2 = vcmp.eq.s32.totalorder %v1087_v5, 23 }
 0x90d   : > { %v514_v29 = vmul.f32 %v510_v10, %v499_v28 }
 0x90f   : > { %515 = vadd.xlane.f32.xlu2 %v514_v29 }
 0x913   : > { %v520_v30 = vpop.xlane.xlu0 %519 }
 0x914   : > { %v521_v31 = vsel %vm513_vm3, %v520_v30, %v503_v18 }
 0x915   : > { %v536_v32 = vmul.f32 %v528_v23, %v521_v31 }
 0x917   : > { %537 = vadd.xlane.f32.xlu0 %v536_v32 }
 0x91b   : > { %v542_v34 = vpop.xlane.xlu1 %541 }
 0x91c   : > { %v543_v36 = vsel %vm531_vm4, %v542_v34, %v525_v25  ;;  %v223_v25 = vsel %vm222_vm13, %v979_v61, 0.0  ;;  %vm757_vm13 = vcmp.eq.s32.totalorder %v1087_v5, 31 }
 0x91d   : > { %v558_v37 = vmul.f32 %v546_v35, %v543_v36 }
 0x91f   : > { %559 = vadd.xlane.f32.xlu1 %v558_v37 }
 0x982   : > { %v516_v38 = vpop.xlane.xlu2 %515 }
 0x983   : > { %v517_v39 = vsel %vm513_vm3, %v516_v38, %v499_v28  ;;  %vm603_vm3 = vcmp.eq.s32.totalorder %v1087_v5, 24 }
 0x984   : > { %v532_v40 = vmul.f32 %v528_v23, %v517_v39 }
 0x986   : > { %533 = vadd.xlane.f32.xlu2 %v532_v40  ;;  %v271_v40 = vsel %vm270_vm1, -1.0, %v1049_v1 }
 0x98a   : > { %v538_v41 = vpop.xlane.xlu0 %537 }
 0x98b   : > { %v539_v42 = vsel %vm531_vm4, %v538_v41, %v521_v31 }
 0x98c   : > { %v554_v43 = vmul.f32 %v546_v35, %v539_v42 }
 0x98e   : > { %555 = vadd.xlane.f32.xlu0 %v554_v43 }
 0x992   : > { %v560_v45 = vpop.xlane.xlu1 %559 }
 0x993   : > { %v561_v47 = vsel %vm549_vm7, %v560_v45, %v543_v36 }
 0x994   : > { %v576_v48 = vmul.f32 %v564_v46, %v561_v47 }
 0x996   : > { %577 = vadd.xlane.f32.xlu1 %v576_v48 }
 0x9f9   : > { %v534_v49 = vpop.xlane.xlu2 %533 }
 0x9fa   : > { %v535_v50 = vsel %vm531_vm4, %v534_v49, %v517_v39  ;;  %vm625_vm4 = vcmp.eq.s32.totalorder %v1087_v5, 25 }
 0x9fb   : > { %v550_v52 = vmul.f32 %v546_v35, %v535_v50 }
 0x9fd   : > { %551 = vadd.xlane.f32.xlu2 %v550_v52 }
 0xa01   : > { %v556_v53 = vpop.xlane.xlu0 %555 }
 0xa02   : > { %v557_v54 = vsel %vm549_vm7, %v556_v53, %v539_v42 }
 0xa03   : > { %v572_v55 = vmul.f32 %v564_v46, %v557_v54 }
 0xa05   : > { %573 = vadd.xlane.f32.xlu0 %v572_v55 }
 0xa09   : > { %v578_v7 = vpop.xlane.xlu1 %577 }
 0xa0a   : > { %v579_v8 = vsel %vm567_vm9, %v578_v7, %v561_v47 }
 0xa0b   : > { %v594_v10 = vmul.f32 %v582_v0, %v579_v8 }
 0xa70   : > { %v552_v56 = vpop.xlane.xlu2 %551 }
 0xa71   : > { %v553_v57 = vsel %vm549_vm7, %v552_v56, %v535_v50  ;;  %vm647_vm7 = vcmp.eq.s32.totalorder %v1087_v5, 26 }
 0xa72   : > { %v568_v58 = vmul.f32 %v564_v46, %v553_v57 }
 0xa74   : > { %569 = vadd.xlane.f32.xlu2 %v568_v58 }
 0xa78   : > { %v574_v63 = vpop.xlane.xlu0 %573 }
 0xa79   : > { %v575_v2 = vsel %vm567_vm9, %v574_v63, %v557_v54 }
 0xa7a   : > { %v590_v4 = vmul.f32 %v582_v0, %v575_v2 }
 0xa7c   : > { %219 = vadd.xlane.f32.xlu2 %v218_v3  ;;  %591 = vadd.xlane.f32.xlu1 %v590_v4 }
 0xa84   : > { %595 = vadd.xlane.f32.xlu2 %v594_v10 }
 0xae7   : > { %v570_v11 = vpop.xlane.xlu2 %569 }
 0xae8   : > { %v571_v6 = vsel %vm567_vm9, %v570_v11, %v553_v57  ;;  %vm691_vm9 = vcmp.eq.s32.totalorder %v1087_v5, 28 }
 0xae9   : > { %v586_v13 = vmul.f32 %v582_v0, %v571_v6 }
 0xaeb   : > { %587 = vadd.xlane.f32.xlu0 %v586_v13 }
 0xaef   : > { %v1215_v14 = vpop.xlane.xlu2 %219  ;;  %v592_v29 = vpop.xlane.xlu1 %591 }
 0xaf0   : > { %1022 = vrcp.f32 %v1215_v14  ;;  %v235_v17 = vand.u32 2147483648, %v1215_v14  ;;  %vm229_vm11 = vweird.f32 %v1215_v14  ;;  %v233_v19 = vand.u32 2147483647, %v1215_v14 }
 0xaf1   : > { %v593_v33 = vsel %vm585_vm2, %v592_v29, %v575_v2 }
 0xaf2   : > { %v236_v22 = vor.u32 1.1754944e-38, %v235_v17  ;;  %vm234_vm15 = vcmp.eq.f32.partialorder %v233_v19, 8.507059e+37 }
 0xaf6   : > { %v1023_v15 = vpop.eup %1022 }
 0xaf7   : > { %v225_v16 = vmul.f32 %v1023_v15, %v1215_v14  ;;  %vm230_vm12 = vweird.f32 %v1023_v15  ;;  %v596_v30 = vpop.xlane.xlu2 %595 }
 0xaf8   : > { %vm231_vm14 = vmor %vm229_vm11, %vm230_vm12  ;;  %v597_v34 = vsel %vm585_vm2, %v596_v30, %v579_v8  ;;  %vm735_vm12 = vcmp.eq.s32.totalorder %v1087_v5, 30 }
 0xaf9   : > { %v226_v18 = vsub.f32 1.0, %v225_v16 }
 0xafb   : > { %v227_v21 = vmul.f32 %v1023_v15, %v226_v18 }
 0xafd   : > { %v228_v23 = vadd.f32 %v1023_v15, %v227_v21 }
 0xaff   : > { %v232_v26 = vsel %vm231_vm14, %v1023_v15, %v228_v23 }
 0xb00   : > { %v1227_v27 = vsel %vm234_vm15, %v236_v22, %v232_v26 }
 0xb01   : > { %v238_v28 = vmul.f32 %v1227_v27, %v223_v25 }
 0xb03   : > { %239 = vst [vmem:[#allocation2 + $0x18] sm:$0xff] %v238_v28 }
 0xb0a   : > { %v599_v31 = vld [vmem:[#allocation2 + $0x18] ss:$0 sm:$0xff]  ;;  %v621_v42 = vld [vmem:[#allocation2 + $0x19] ss:$0 sm:$0xff]  ;;  %v643_v56 = vld [vmem:[#allocation2 + $0x1a] ss:$0 sm:$0xff] }
 0xb0b   : > { %v600_v32 = vxor.u32 2147483648, %v599_v31  ;;  %v622_v45 = vxor.u32 2147483648, %v621_v42  ;;  %v644_v59 = vxor.u32 2147483648, %v643_v56  ;;  %v665_v11 = vld [vmem:[#allocation2 + $0x1b] ss:$0 sm:$0xff] }
 0xb0c   : > { %v666_v15 = vxor.u32 2147483648, %v665_v11  ;;  %v687_v29 = vld [vmem:[#allocation2 + $0x1c] ss:$0 sm:$0xff] }
 0xb0d   : > { %v612_v35 = vmul.f32 %v600_v32, %v597_v34  ;;  %v608_v36 = vmul.f32 %v600_v32, %v593_v33  ;;  %v616_v41 = vmul.f32 %v600_v32, %v271_v40 }
 0xb0f   : > { %613 = vadd.xlane.f32.xlu2 %v612_v35  ;;  %609 = vadd.xlane.f32.xlu1 %v608_v36 }
 0xb5e   : > { %v588_v37 = vpop.xlane.xlu0 %587 }
 0xb5f   : > { %v589_v38 = vsel %vm585_vm2, %v588_v37, %v571_v6 }
 0xb60   : > { %v604_v39 = vmul.f32 %v600_v32, %v589_v38  ;;  %v688_v32 = vxor.u32 2147483648, %v687_v29 }
 0xb62   : > { %605 = vadd.xlane.f32.xlu0 %v604_v39 }
 0xb6a   : > { %617 = vadd.xlane.f32.xlu0 %v616_v41 }
 0xb82   : > { %v614_v43 = vpop.xlane.xlu2 %613  ;;  %v610_v44 = vpop.xlane.xlu1 %609 }
 0xb83   : > { %v615_v46 = vsel %vm603_vm3, %v614_v43, %v597_v34  ;;  %v611_v47 = vsel %vm603_vm3, %v610_v44, %v593_v33  ;;  %v709_v43 = vld [vmem:[#allocation2 + $0x1d] ss:$0 sm:$0xff] }
 0xb84   : > { %v630_v48 = vmul.f32 %v622_v45, %v611_v47  ;;  %v634_v49 = vmul.f32 %v622_v45, %v615_v46 }
 0xb86   : > { %631 = vadd.xlane.f32.xlu2 %v630_v48  ;;  %635 = vadd.xlane.f32.xlu0 %v634_v49 }
 0xbd5   : > { %v606_v50 = vpop.xlane.xlu0 %605 }
 0xbd6   : > { %v607_v52 = vsel %vm603_vm3, %v606_v50, %v589_v38 }
 0xbd7   : > { %v626_v53 = vmul.f32 %v622_v45, %v607_v52 }
 0xbd9   : > { %627 = vadd.xlane.f32.xlu1 %v626_v53 }
 0xbdd   : > { %v618_v54 = vpop.xlane.xlu0 %617 }
 0xbde   : > { %v619_v1 = vsel %vm603_vm3, %v618_v54, %v271_v40 }
 0xbdf   : > { %v638_v55 = vmul.f32 %v622_v45, %v619_v1 }
 0xbe1   : > { %639 = vadd.xlane.f32.xlu1 %v638_v55 }
 0xbf9   : > { %v632_v57 = vpop.xlane.xlu2 %631  ;;  %v636_v58 = vpop.xlane.xlu0 %635 }
 0xbfa   : > { %v633_v60 = vsel %vm625_vm4, %v632_v57, %v611_v47  ;;  %v637_v61 = vsel %vm625_vm4, %v636_v58, %v615_v46  ;;  %v710_v46 = vxor.u32 2147483648, %v709_v43  ;;  %v731_v57 = vld [vmem:[#allocation2 + $0x1e] ss:$0 sm:$0xff] }
 0xbfb   : > { %v652_v63 = vmul.f32 %v644_v59, %v633_v60  ;;  %v656_v0 = vmul.f32 %v644_v59, %v637_v61 }
 0xbfd   : > { %653 = vadd.xlane.f32.xlu0 %v652_v63  ;;  %657 = vadd.xlane.f32.xlu1 %v656_v0 }
 0xc4c   : > { %v628_v2 = vpop.xlane.xlu1 %627 }
 0xc4d   : > { %v629_v3 = vsel %vm625_vm4, %v628_v2, %v607_v52 }
 0xc4e   : > { %v648_v4 = vmul.f32 %v644_v59, %v629_v3 }
 0xc50   : > { %649 = vadd.xlane.f32.xlu2 %v648_v4 }
 0xc54   : > { %v640_v7 = vpop.xlane.xlu1 %639 }
 0xc55   : > { %v641_v8 = vsel %vm625_vm4, %v640_v7, %v619_v1 }
 0xc56   : > { %v660_v10 = vmul.f32 %v644_v59, %v641_v8 }
 0xc58   : > { %661 = vadd.xlane.f32.xlu2 %v660_v10 }
 0xc70   : > { %v658_v6 = vpop.xlane.xlu1 %657  ;;  %v654_v13 = vpop.xlane.xlu0 %653 }
 0xc71   : > { %v659_v16 = vsel %vm647_vm7, %v658_v6, %v637_v61  ;;  %v655_v17 = vsel %vm647_vm7, %v654_v13, %v633_v60  ;;  %v732_v60 = vxor.u32 2147483648, %v731_v57  ;;  %v753_v6 = vld [vmem:[#allocation2 + $0x1f] ss:$0 sm:$0xff] }
 0xc72   : > { %v678_v18 = vmul.f32 %v666_v15, %v659_v16  ;;  %v674_v19 = vmul.f32 %v666_v15, %v655_v17 }
 0xc74   : > { %679 = vadd.xlane.f32.xlu2 %v678_v18  ;;  %675 = vadd.xlane.f32.xlu1 %v674_v19 }
 0xcc3   : > { %v650_v21 = vpop.xlane.xlu2 %649 }
 0xcc4   : > { %v651_v22 = vsel %vm647_vm7, %v650_v21, %v629_v3 }
 0xcc5   : > { %v670_v23 = vmul.f32 %v666_v15, %v651_v22 }
 0xcc7   : > { %671 = vadd.xlane.f32.xlu0 %v670_v23 }
 0xccb   : > { %v662_v25 = vpop.xlane.xlu2 %661 }
 0xccc   : > { %v663_v26 = vsel %vm647_vm7, %v662_v25, %v641_v8 }
 0xccd   : > { %v682_v28 = vmul.f32 %v666_v15, %v663_v26 }
 0xccf   : > { %683 = vadd.xlane.f32.xlu0 %v682_v28 }
 0xce7   : > { %v680_v30 = vpop.xlane.xlu2 %679  ;;  %v676_v31 = vpop.xlane.xlu1 %675 }
 0xce8   : > { %v681_v33 = vsel %vm669_vm8, %v680_v30, %v659_v16  ;;  %v677_v34 = vsel %vm669_vm8, %v676_v31, %v655_v17  ;;  %v754_v16 = vxor.u32 2147483648, %v753_v6 }
 0xce9   : > { %v700_v35 = vmul.f32 %v688_v32, %v681_v33  ;;  %v696_v36 = vmul.f32 %v688_v32, %v677_v34 }
 0xceb   : > { %701 = vadd.xlane.f32.xlu0 %v700_v35  ;;  %697 = vadd.xlane.f32.xlu2 %v696_v36 }
 0xd3a   : > { %v672_v37 = vpop.xlane.xlu0 %671 }
 0xd3b   : > { %v673_v38 = vsel %vm669_vm8, %v672_v37, %v651_v22 }
 0xd3c   : > { %v692_v39 = vmul.f32 %v688_v32, %v673_v38 }
 0xd3e   : > { %693 = vadd.xlane.f32.xlu1 %v692_v39 }
 0xd42   : > { %v684_v40 = vpop.xlane.xlu0 %683 }
 0xd43   : > { %v685_v41 = vsel %vm669_vm8, %v684_v40, %v663_v26 }
 0xd44   : > { %v704_v42 = vmul.f32 %v688_v32, %v685_v41 }
 0xd46   : > { %705 = vadd.xlane.f32.xlu1 %v704_v42 }
 0xd5e   : > { %v698_v44 = vpop.xlane.xlu2 %697  ;;  %v702_v45 = vpop.xlane.xlu0 %701 }
 0xd5f   : > { %v699_v47 = vsel %vm691_vm9, %v698_v44, %v677_v34  ;;  %v703_v48 = vsel %vm691_vm9, %v702_v45, %v681_v33 }
 0xd60   : > { %v718_v49 = vmul.f32 %v710_v46, %v699_v47  ;;  %v722_v50 = vmul.f32 %v710_v46, %v703_v48 }
 0xd62   : > { %719 = vadd.xlane.f32.xlu0 %v718_v49  ;;  %723 = vadd.xlane.f32.xlu1 %v722_v50 }
 0xdb1   : > { %v694_v52 = vpop.xlane.xlu1 %693 }
 0xdb2   : > { %v695_v53 = vsel %vm691_vm9, %v694_v52, %v673_v38 }
 0xdb3   : > { %v714_v54 = vmul.f32 %v710_v46, %v695_v53 }
 0xdb5   : > { %715 = vadd.xlane.f32.xlu2 %v714_v54 }
 0xdb9   : > { %v706_v1 = vpop.xlane.xlu1 %705 }
 0xdba   : > { %v707_v55 = vsel %vm691_vm9, %v706_v1, %v685_v41 }
 0xdbb   : > { %v726_v56 = vmul.f32 %v710_v46, %v707_v55 }
 0xdbd   : > { %727 = vadd.xlane.f32.xlu2 %v726_v56 }
 0xdd5   : > { %v724_v58 = vpop.xlane.xlu1 %723  ;;  %v720_v59 = vpop.xlane.xlu0 %719 }
 0xdd6   : > { %v725_v61 = vsel %vm713_vm10, %v724_v58, %v703_v48  ;;  %v721_v63 = vsel %vm713_vm10, %v720_v59, %v699_v47 }
 0xdd7   : > { %v744_v0 = vmul.f32 %v732_v60, %v725_v61  ;;  %v740_v2 = vmul.f32 %v732_v60, %v721_v63 }
 0xdd9   : > { %745 = vadd.xlane.f32.xlu2 %v744_v0  ;;  %741 = vadd.xlane.f32.xlu1 %v740_v2 }
 0xe28   : > { %v716_v3 = vpop.xlane.xlu2 %715 }
 0xe29   : > { %v717_v4 = vsel %vm713_vm10, %v716_v3, %v695_v53 }
 0xe2a   : > { %v736_v7 = vmul.f32 %v732_v60, %v717_v4 }
 0xe2c   : > { %737 = vadd.xlane.f32.xlu0 %v736_v7 }
 0xe30   : > { %v728_v8 = vpop.xlane.xlu2 %727 }
 0xe31   : > { %v729_v10 = vsel %vm713_vm10, %v728_v8, %v707_v55 }
 0xe32   : > { %v748_v11 = vmul.f32 %v732_v60, %v729_v10 }
 0xe34   : > { %749 = vadd.xlane.f32.xlu0 %v748_v11 }
 0xe4c   : > { %v746_v13 = vpop.xlane.xlu2 %745  ;;  %v742_v15 = vpop.xlane.xlu1 %741 }
 0xe4d   : > { %v747_v17 = vsel %vm735_vm12, %v746_v13, %v725_v61  ;;  %v743_v18 = vsel %vm735_vm12, %v742_v15, %v721_v63 }
 0xe4e   : > { %v766_v19 = vmul.f32 %v754_v16, %v747_v17  ;;  %v762_v21 = vmul.f32 %v754_v16, %v743_v18 }
 0xe50   : > { %767 = vadd.xlane.f32.xlu0 %v766_v19  ;;  %763 = vadd.xlane.f32.xlu2 %v762_v21 }
 0xe9f   : > { %v738_v22 = vpop.xlane.xlu0 %737 }
 0xea0   : > { %v739_v23 = vsel %vm735_vm12, %v738_v22, %v717_v4 }
 0xea1   : > { %v758_v25 = vmul.f32 %v754_v16, %v739_v23 }
 0xea3   : > { %759 = vadd.xlane.f32.xlu1 %v758_v25 }
 0xea7   : > { %v750_v26 = vpop.xlane.xlu0 %749 }
 0xea8   : > { %v751_v28 = vsel %vm735_vm12, %v750_v26, %v729_v10 }
 0xea9   : > { %v770_v29 = vmul.f32 %v754_v16, %v751_v28 }
 0xeab   : > { %771 = vadd.xlane.f32.xlu1 %v770_v29 }
 0xec3   : > { %v764_v30 = vpop.xlane.xlu2 %763  ;;  %v768_v31 = vpop.xlane.xlu0 %767 }
 0xec4   : > { %v765_v32 = vsel %vm757_vm13, %v764_v30, %v743_v18  ;;  %v769_v33 = vsel %vm757_vm13, %v768_v31, %v747_v17 }
 0xec5   : > { %v806_v34 = vmul.f32 %v765_v32, %v1135_v62  ;;  %v825_v35 = vmul.f32 %v769_v33, %v1166_v24 }
 0xec7   : > { %v808_v36 = vsel %vm171_vm0, %v765_v32, %v806_v34  ;;  %v827_v37 = vsel %vm200_vm6, %v769_v33, %v825_v35 }
 0xec8   : > { %897 = vst [vmem:[%s859_s24 + $0x8] sm:$0xff] %v808_v36 }
 0xec9   : > { %899 = vst [vmem:[%s859_s24 + $0x10] sm:$0xff] %v827_v37 }
 0xf16   : > { %v760_v38 = vpop.xlane.xlu1 %759 }
 0xf17   : > { %v761_v39 = vsel %vm757_vm13, %v760_v38, %v739_v23 }
 0xf18   : > { %v788_v62 = vmul.f32 %v761_v39, %v1110_v20 }
 0xf1a   : > { %v790_v24 = vsel %vm142_vm5, %v761_v39, %v788_v62 }
 0xf1b   : > { %895 = vst [vmem:[%s859_s24] sm:$0xff] %v790_v24 }
 0xf1e   : > { %v772_v40 = vpop.xlane.xlu1 %771 }
 0xf1f   : > { %v773_v51 = vsel %vm757_vm13, %v772_v40, %v751_v28 }
 0xf20   : > { %v844_v41 = vmul.f32 %v773_v51, %v1227_v27 }
 0xf22   : > { %v846_v12 = vsel %vm229_vm11, %v773_v51, %v844_v41 }
 0xf23   : > { %901 = vst [vmem:[%s859_s24 + $0x18] sm:$0xff] %v846_v12 }
 0xf24 PF: > { %s7_s8 = sadd.s32 1, %s1046_s8   ;;  %s1276_s6 = smov %s1042_s7 }
 0xf25   : > { %p4_p5 = scmp.ge.s32.totalorder %s7_s8, 6   ;;  %s1277_s7 = smov %s1279_s10 }
 0xf27   :  { %6 = sbr.rel (!%p4_p5) target bundleno = 2 (0x2), region = 158 }

// kernel: custom-call.9
= control target key start
LH: loop header
LB: loop body
LE: loop exit
PB: predicated region body
PF: predicated region fallthrough
CT: control target
= control target key end

     0   :  { %s1059_s6 = smov 0   ;;  %s1061_s7 = smov 0   ;;  %s1375_s0 = inlined_call_operand.vmem [shape: f32[4,1,32,32], index: 0, kind: input, shape index: {}]   ;;  %s1376_s1 = inlined_call_operand.vmem [shape: f32[4,1,32,32], index: 1, kind: output, shape index: {}]  }
   0x1   :  { %s1063_s8 = smov 0  }
   0x2 LB: > { %s967_s9 = sadd.s32 4294967295, %s1045_s8   ;;  %s33_s10 = sadd.s32 1, %s1041_s7  ;;  %s1045_s8 = sphi %s1063_s8, %s7_s8   ;;  %s1041_s7 = sphi %s1061_s7, %s1378_s7   ;;  %s1037_s6 = sphi %s1059_s6, %s1377_s6  }
   0x3   : > { %p35_p0 = scmp.ge.s32.totalorder %s33_s10, 4  ;;  %p969_p1 = scmp.ge.s32.totalorder %s1045_s8, 4 }
   0x4   : > { %s49_s11 = sand.u32 (!%p969_p1), 1, %s1045_s8   ;;  %s987_s12 = sshll.u32 (!%p969_p1), %s1041_s7, 5 }
   0x5   : > { %s1380_s10 = smov (%p35_p0, %s33_s10), 0  ;;  %47 = sbr.rel (%p969_p1) target bundleno = 15 (0xf), region = 16 }
   0x6   : > { %s970_s13 = sshll.u32 (!%p969_p1), %s49_s11, 5  ;;  %s58_s16 = scalar_lea.vmem (!%p969_p1), %s1375_s0, %s987_s12 }
   0x7   : > { %s51_s17 = scalar_lea.vmem (!%p969_p1), [#allocation0], %s970_s13 }
   0xa   : > { %v93_v0 = vld [vmem:[%s58_s16] sm:$0xff]  ;;  %v95_v1 = vld [vmem:[%s58_s16 + $0x8] sm:$0xff]  ;;  %v97_v2 = vld [vmem:[%s58_s16 + $0x10] sm:$0xff] }
   0xb   : > { %94 = vst [vmem:[%s51_s17] sm:$0xff] %v93_v0  ;;  %v99_v3 = vld [vmem:[%s58_s16 + $0x18] sm:$0xff] }
   0xc   : > { %96 = vst [vmem:[%s51_s17 + $0x8] sm:$0xff] %v95_v1 }
   0xd   : > { %98 = vst [vmem:[%s51_s17 + $0x10] sm:$0xff] %v97_v2 }
   0xe   : > { %100 = vst [vmem:[%s51_s17 + $0x18] sm:$0xff] %v99_v3 }
   0xf PF: > { %p973_p2 = scmp.ge.s32.totalorder %s1045_s8, 1  ;;  %p105_p3 = scmp.lt.s32.totalorder %s1045_s8, 5 }
  0x11   : > { %p106_p4 = pnand %p973_p2, %p105_p3 }
  0x13   : > { %109 = sbr.rel (%p106_p4) target bundleno = 3870 (0xf1e), region = 54 }
  0x18   : > { %s112_s18 = sand.u32 1, %s967_s9   ;;  %v123_v4 = vlaneseq  ;;  %v1047_v23 = vmov -1.0   ;;  %s988_s21 = sshll.u32 %s1037_s6, 5 }
  0x19   : > { %s974_s19 = sshll.u32 %s112_s18, 5  ;;  %s858_s24 = scalar_lea.vmem %s1376_s1, %s988_s21 }
  0x1a   : > { %v1086_v5 = vand.u32 127, %v123_v4  ;;  %v1088_v6 = vshrl.u32 %v123_v4, 7  ;;  %s1091_s20 = scalar_lea.vmem [#allocation0], %s974_s19 }
  0x1b   : > { %v978_v8 = vld [vmem:[%s1091_s20 + $0x18] sm:$0xff]  ;;  %v977_v40 = vld [vmem:[%s1091_s20 + $0x10] sm:$0xff] }
  0x1c   : > { %v215_v7 = vadd.s32 24, %v1088_v6  ;;  %vm125_vm1 = vcmp.lt.s32.totalorder %v1086_v5, 32  ;;  %vm269_vm8 = vcmp.eq.s32.totalorder %v1086_v5, 31  ;;  %vm277_vm10 = vcmp.eq.s32.totalorder %v1086_v5, 30 }
  0x1d   : > { %v270_v24 = vsel %vm269_vm8, 1.0, %v1047_v23  ;;  %vm287_vm11 = vcmp.eq.s32.totalorder %v1086_v5, 29  ;;  %v186_v39 = vadd.s32 16, %v1088_v6  ;;  %vm297_vm13 = vcmp.eq.s32.totalorder %v1086_v5, 28 }
  0x1e   : > { %vm216_vm0 = vcmp.eq.s32.totalorder %v215_v7, %v1086_v5  ;;  %vm221_vm2 = vcmp.le.s32.totalorder %v215_v7, %v1086_v5  ;;  %vm266_vm9 = vcmp.eq.s32.totalorder %v1086_v5, %v215_v7 }
  0x1f   : > { %v218_v9 = vsel %vm216_vm0, %v978_v8, 0.0  ;;  %vm222_vm3 = vmand %vm221_vm2, %vm125_vm1  ;;  %v271_v25 = vsel %vm266_vm9, %v270_v24, 0.0  ;;  %vm187_vm12 = vcmp.eq.s32.totalorder %v186_v39, %v1086_v5  ;;  %vm192_vm14 = vcmp.le.s32.totalorder %v186_v39, %v1086_v5 }
  0x20   : > { %219 = vadd.xlane.f32.xlu0 %v218_v9  ;;  %v223_v18 = vsel %vm222_vm3, %v978_v8, 0.0  ;;  %v189_v41 = vsel %vm187_vm12, %v977_v40, 0.0  ;;  %vm193_vm2 = vmand %vm192_vm14, %vm125_vm1  ;;  %vm259_vm8 = vcmp.eq.s32.totalorder %v1086_v5, %v186_v39  ;;  %vm327_vm9 = vcmp.eq.s32.totalorder %v1086_v5, 25 }
  0x21   : > { %v194_v56 = vsel %vm193_vm2, %v977_v40, 0.0  ;;  %vm361_vm12 = vcmp.eq.s32.totalorder %v1086_v5, 22  ;;  %vm389_vm14 = vcmp.eq.s32.totalorder %v1086_v5, 20  ;;  %vm417_vm2 = vcmp.eq.s32.totalorder %v1086_v5, 18 }
  0x93   : > { %v1095_v10 = vpop.xlane.xlu0 %219 }
  0x94   : > { %1015 = vrcp.f32 %v1095_v10  ;;  %v235_v14 = vand.u32 2147483648, %v1095_v10  ;;  %v233_v16 = vand.u32 2147483647, %v1095_v10  ;;  %vm229_vm5 = vweird.f32 %v1095_v10 }
  0x96   : > { %v236_v19 = vor.u32 1.1754944e-38, %v235_v14  ;;  %vm234_vm7 = vcmp.eq.f32.partialorder %v233_v16, 8.507059e+37 }
  0x9a   : > { %v1016_v11 = vpop.eup %1015 }
  0x9b   : > { %v225_v12 = vmul.f32 %v1016_v11, %v1095_v10  ;;  %vm230_vm4 = vweird.f32 %v1016_v11 }
  0x9c   : > { %vm231_vm6 = vmor %vm229_vm5, %vm230_vm4 }
  0x9d   : > { %v226_v13 = vsub.f32 1.0, %v225_v12 }
  0x9f   : > { %v227_v15 = vmul.f32 %v1016_v11, %v226_v13 }
  0xa1   : > { %v228_v17 = vadd.f32 %v1016_v11, %v227_v15 }
  0xa3   : > { %v232_v20 = vsel %vm231_vm6, %v1016_v11, %v228_v17  ;;  %vm307_vm6 = vcmp.eq.s32.totalorder %v1086_v5, 27  ;;  %v1048_v11 = vmov 0.0  }
  0xa4   : > { %v1108_v21 = vsel %vm234_vm7, %v236_v19, %v232_v20  ;;  %vm317_vm7 = vcmp.eq.s32.totalorder %v1086_v5, 26  ;;  %v260_v12 = vsel %vm259_vm8, -1.0, %v1048_v11 }
  0xa5   : > { %v238_v22 = vmul.f32 %v1108_v21, %v223_v18 }
  0xa7   : > { %239 = vst [vmem:[#allocation2 + $0x18] sm:$0xff] %v238_v22 }
  0xae   : > { %v273_v26 = vld [vmem:[#allocation2 + $0x1e] ss:$0 sm:$0xff]  ;;  %v283_v29 = vld [vmem:[#allocation2 + $0x1d] ss:$0 sm:$0xff]  ;;  %v293_v34 = vld [vmem:[#allocation2 + $0x1c] ss:$0 sm:$0xff] }
  0xaf   : > { %v274_v27 = vxor.u32 2147483648, %v273_v26  ;;  %v284_v31 = vxor.u32 2147483648, %v283_v29  ;;  %v294_v36 = vxor.u32 2147483648, %v293_v34  ;;  %v303_v42 = vld [vmem:[#allocation2 + $0x1b] ss:$0 sm:$0xff] }
  0xb0   : > { %v304_v44 = vxor.u32 2147483648, %v303_v42  ;;  %v313_v60 = vld [vmem:[#allocation2 + $0x1a] ss:$0 sm:$0xff]  ;;  %v323_v1 = vld [vmem:[#allocation2 + $0x19] ss:$0 sm:$0xff] }
  0xb1   : > { %v278_v28 = vmul.f32 %v274_v27, %v271_v25  ;;  %v314_v62 = vxor.u32 2147483648, %v313_v60  ;;  %v324_v3 = vxor.u32 2147483648, %v323_v1  ;;  %v333_v14 = vld [vmem:[#allocation2 + $0x18] ss:$0 sm:$0xff] }
  0xb2   : > { %v334_v16 = vxor.u32 2147483648, %v333_v14 }
  0xb3   : > { %279 = vadd.xlane.f32.xlu0 %v278_v28 }
 0x126   : > { %v280_v30 = vpop.xlane.xlu0 %279 }
 0x127   : > { %v281_v32 = vsel %vm277_vm10, %v280_v30, %v271_v25  ;;  %vm347_vm10 = vcmp.eq.s32.totalorder %v1086_v5, 23 }
 0x128   : > { %v288_v33 = vmul.f32 %v284_v31, %v281_v32 }
 0x12a   : > { %289 = vadd.xlane.f32.xlu1 %v288_v33 }
 0x19d   : > { %v290_v35 = vpop.xlane.xlu1 %289 }
 0x19e   : > { %v291_v37 = vsel %vm287_vm11, %v290_v35, %v281_v32  ;;  %vm337_vm11 = vcmp.eq.s32.totalorder %v1086_v5, 24 }
 0x19f   : > { %v298_v38 = vmul.f32 %v294_v36, %v291_v37 }
 0x1a1   : > { %299 = vadd.xlane.f32.xlu1 %v298_v38 }
 0x1a9   : > { %190 = vadd.xlane.f32.xlu1 %v189_v41 }
 0x214   : > { %v300_v43 = vpop.xlane.xlu1 %299 }
 0x215   : > { %v301_v45 = vsel %vm297_vm13, %v300_v43, %v291_v37  ;;  %vm375_vm13 = vcmp.eq.s32.totalorder %v1086_v5, 21 }
 0x216   : > { %v308_v46 = vmul.f32 %v304_v44, %v301_v45 }
 0x218   : > { %309 = vadd.xlane.f32.xlu2 %v308_v46 }
 0x21c   : > { %v1119_v47 = vpop.xlane.xlu1 %190 }
 0x21d   : > { %1017 = vrcp.f32 %v1119_v47  ;;  %v206_v50 = vand.u32 2147483648, %v1119_v47  ;;  %vm200_vm15 = vweird.f32 %v1119_v47  ;;  %v204_v52 = vand.u32 2147483647, %v1119_v47 }
 0x21f   : > { %v207_v54 = vor.u32 1.1754944e-38, %v206_v50  ;;  %vm205_vm4 = vcmp.eq.f32.partialorder %v204_v52, 8.507059e+37 }
 0x223   : > { %v1018_v48 = vpop.eup %1017 }
 0x224   : > { %v196_v49 = vmul.f32 %v1018_v48, %v1119_v47  ;;  %vm201_vm0 = vweird.f32 %v1018_v48 }
 0x225   : > { %vm202_vm3 = vmor %vm200_vm15, %vm201_vm0  ;;  %vm403_vm0 = vcmp.eq.s32.totalorder %v1086_v5, 19 }
 0x226   : > { %v197_v51 = vsub.f32 1.0, %v196_v49 }
 0x228   : > { %v198_v53 = vmul.f32 %v1018_v48, %v197_v51 }
 0x22a   : > { %v199_v55 = vadd.f32 %v1018_v48, %v198_v53 }
 0x22c   : > { %v203_v57 = vsel %vm202_vm3, %v1018_v48, %v199_v55  ;;  %vm431_vm3 = vcmp.eq.s32.totalorder %v1086_v5, 17 }
 0x22d   : > { %v1131_v58 = vsel %vm205_vm4, %v207_v54, %v203_v57 }
 0x22e   : > { %v209_v59 = vmul.f32 %v1131_v58, %v194_v56 }
 0x230   : > { %210 = vst [vmem:[#allocation2 + $0x10] sm:$0xff] %v209_v59 }
 0x237   : > { %v343_v7 = vld [vmem:[#allocation2 + $0x17] ss:$0 sm:$0xff]  ;;  %v357_v19 = vld [vmem:[#allocation2 + $0x16] ss:$0 sm:$0xff]  ;;  %v371_v28 = vld [vmem:[#allocation2 + $0x15] ss:$0 sm:$0xff] }
 0x238   : > { %v344_v9 = vxor.u32 2147483648, %v343_v7  ;;  %v358_v20 = vxor.u32 2147483648, %v357_v19  ;;  %v372_v30 = vxor.u32 2147483648, %v371_v28  ;;  %v385_v36 = vld [vmem:[#allocation2 + $0x14] ss:$0 sm:$0xff] }
 0x239   : > { %v386_v38 = vxor.u32 2147483648, %v385_v36  ;;  %v399_v44 = vld [vmem:[#allocation2 + $0x13] ss:$0 sm:$0xff]  ;;  %v413_v53 = vld [vmem:[#allocation2 + $0x12] ss:$0 sm:$0xff] }
 0x23a   : > { %v348_v13 = vmul.f32 %v344_v9, %v260_v12  ;;  %v400_v46 = vxor.u32 2147483648, %v399_v44  ;;  %v414_v55 = vxor.u32 2147483648, %v413_v53 }
 0x28b   : > { %v310_v61 = vpop.xlane.xlu2 %309 }
 0x28c   : > { %v311_v63 = vsel %vm307_vm6, %v310_v61, %v301_v45 }
 0x28d   : > { %v318_v0 = vmul.f32 %v314_v62, %v311_v63  ;;  %v427_v62 = vld [vmem:[#allocation2 + $0x11] ss:$0 sm:$0xff] }
 0x28f   : > { %319 = vadd.xlane.f32.xlu2 %v318_v0  ;;  %v428_v0 = vxor.u32 2147483648, %v427_v62 }
 0x302   : > { %v320_v2 = vpop.xlane.xlu2 %319 }
 0x303   : > { %v321_v4 = vsel %vm317_vm7, %v320_v2, %v311_v63 }
 0x304   : > { %v328_v8 = vmul.f32 %v324_v3, %v321_v4 }
 0x306   : > { %329 = vadd.xlane.f32.xlu0 %v328_v8  ;;  %v157_v8 = vadd.s32 8, %v1088_v6 }
 0x308   : > { %vm158_vm4 = vcmp.eq.s32.totalorder %v157_v8, %v1086_v5  ;;  %vm163_vm6 = vcmp.le.s32.totalorder %v157_v8, %v1086_v5 }
 0x30e   : > { %349 = vadd.xlane.f32.xlu0 %v348_v13 }
 0x379   : > { %v330_v15 = vpop.xlane.xlu0 %329 }
 0x37a   : > { %v331_v17 = vsel %vm327_vm9, %v330_v15, %v321_v4  ;;  %vm164_vm9 = vmand %vm163_vm6, %vm125_vm1  ;;  %vm549_vm6 = vcmp.eq.s32.totalorder %v1086_v5, 10 }
 0x37b   : > { %v338_v18 = vmul.f32 %v334_v16, %v331_v17 }
 0x37d   : > { %339 = vadd.xlane.f32.xlu2 %v338_v18 }
 0x381   : > { %v350_v22 = vpop.xlane.xlu0 %349 }
 0x382   : > { %v351_v23 = vsel %vm347_vm10, %v350_v22, %v260_v12  ;;  %v976_v12 = vld [vmem:[%s1091_s20 + $0x8] sm:$0xff] }
 0x383   : > { %v362_v24 = vmul.f32 %v358_v20, %v351_v23  ;;  %v160_v16 = vsel %vm158_vm4, %v976_v12, 0.0  ;;  %vm531_vm4 = vcmp.eq.s32.totalorder %v1086_v5, 11 }
 0x385   : > { %363 = vadd.xlane.f32.xlu2 %v362_v24 }
 0x3f0   : > { %v340_v25 = vpop.xlane.xlu2 %339 }
 0x3f1   : > { %v341_v26 = vsel %vm337_vm11, %v340_v25, %v331_v17 }
 0x3f2   : > { %v352_v27 = vmul.f32 %v344_v9, %v341_v26  ;;  %v441_v9 = vld [vmem:[#allocation2 + $0x10] ss:$0 sm:$0xff] }
 0x3f3   : > { %v442_v14 = vxor.u32 2147483648, %v441_v9 }
 0x3f4   : > { %353 = vadd.xlane.f32.xlu1 %v352_v27 }
 0x3f8   : > { %v364_v29 = vpop.xlane.xlu2 %363 }
 0x3f9   : > { %v365_v31 = vsel %vm361_vm12, %v364_v29, %v351_v23 }
 0x3fa   : > { %v376_v32 = vmul.f32 %v372_v30, %v365_v31 }
 0x3fc   : > { %377 = vadd.xlane.f32.xlu1 %v376_v32 }
 0x467   : > { %v354_v33 = vpop.xlane.xlu1 %353 }
 0x468   : > { %v355_v34 = vsel %vm347_vm10, %v354_v33, %v341_v26 }
 0x469   : > { %v366_v35 = vmul.f32 %v358_v20, %v355_v34 }
 0x46b   : > { %367 = vadd.xlane.f32.xlu0 %v366_v35 }
 0x46f   : > { %v378_v37 = vpop.xlane.xlu1 %377 }
 0x470   : > { %v379_v39 = vsel %vm375_vm13, %v378_v37, %v365_v31  ;;  %v165_v31 = vsel %vm164_vm9, %v976_v12, 0.0  ;;  %vm567_vm9 = vcmp.eq.s32.totalorder %v1086_v5, 9 }
 0x471   : > { %v390_v40 = vmul.f32 %v386_v38, %v379_v39 }
 0x473   : > { %391 = vadd.xlane.f32.xlu0 %v390_v40 }
 0x4de   : > { %v368_v41 = vpop.xlane.xlu0 %367 }
 0x4df   : > { %v369_v42 = vsel %vm361_vm12, %v368_v41, %v355_v34  ;;  %vm252_vm12 = vcmp.eq.s32.totalorder %v1086_v5, %v157_v8 }
 0x4e0   : > { %v380_v43 = vmul.f32 %v372_v30, %v369_v42  ;;  %v253_v37 = vsel %vm252_vm12, -1.0, %v1048_v11 }
 0x4e2   : > { %381 = vadd.xlane.f32.xlu2 %v380_v43 }
 0x4e6   : > { %v392_v45 = vpop.xlane.xlu0 %391 }
 0x4e7   : > { %v393_v48 = vsel %vm389_vm14, %v392_v45, %v379_v39 }
 0x4e8   : > { %v404_v49 = vmul.f32 %v400_v46, %v393_v48 }
 0x4ea   : > { %405 = vadd.xlane.f32.xlu2 %v404_v49 }
 0x555   : > { %v382_v50 = vpop.xlane.xlu2 %381 }
 0x556   : > { %v383_v51 = vsel %vm375_vm13, %v382_v50, %v369_v42  ;;  %vm445_vm13 = vcmp.eq.s32.totalorder %v1086_v5, 16 }
 0x557   : > { %v394_v52 = vmul.f32 %v386_v38, %v383_v51 }
 0x559   : > { %395 = vadd.xlane.f32.xlu1 %v394_v52 }
 0x55d   : > { %v406_v54 = vpop.xlane.xlu2 %405 }
 0x55e   : > { %v407_v56 = vsel %vm403_vm0, %v406_v54, %v393_v48 }
 0x55f   : > { %v418_v57 = vmul.f32 %v414_v55, %v407_v56 }
 0x561   : > { %419 = vadd.xlane.f32.xlu1 %v418_v57 }
 0x5cc   : > { %v396_v59 = vpop.xlane.xlu1 %395 }
 0x5cd   : > { %v397_v60 = vsel %vm389_vm14, %v396_v59, %v383_v51  ;;  %vm459_vm14 = vcmp.eq.s32.totalorder %v1086_v5, 15 }
 0x5ce   : > { %v408_v61 = vmul.f32 %v400_v46, %v397_v60 }
 0x5d0   : > { %409 = vadd.xlane.f32.xlu0 %v408_v61 }
 0x5d4   : > { %v420_v63 = vpop.xlane.xlu1 %419 }
 0x5d5   : > { %v421_v1 = vsel %vm417_vm2, %v420_v63, %v407_v56 }
 0x5d6   : > { %v432_v2 = vmul.f32 %v428_v0, %v421_v1 }
 0x5d8   : > { %433 = vadd.xlane.f32.xlu0 %v432_v2 }
 0x643   : > { %v410_v3 = vpop.xlane.xlu0 %409 }
 0x644   : > { %v411_v4 = vsel %vm403_vm0, %v410_v3, %v397_v60  ;;  %vm477_vm0 = vcmp.eq.s32.totalorder %v1086_v5, 14 }
 0x645   : > { %v422_v7 = vmul.f32 %v414_v55, %v411_v4 }
 0x647   : > { %423 = vadd.xlane.f32.xlu2 %v422_v7 }
 0x64b   : > { %v434_v13 = vpop.xlane.xlu0 %433 }
 0x64c   : > { %v435_v15 = vsel %vm431_vm3, %v434_v13, %v421_v1 }
 0x64d   : > { %v446_v17 = vmul.f32 %v442_v14, %v435_v15 }
 0x64f   : > { %447 = vadd.xlane.f32.xlu0 %v446_v17  ;;  %161 = vadd.xlane.f32.xlu2 %v160_v16 }
 0x6ba   : > { %v424_v18 = vpop.xlane.xlu2 %423 }
 0x6bb   : > { %v425_v19 = vsel %vm417_vm2, %v424_v18, %v411_v4  ;;  %vm495_vm2 = vcmp.eq.s32.totalorder %v1086_v5, 13 }
 0x6bc   : > { %v436_v20 = vmul.f32 %v428_v0, %v425_v19 }
 0x6be   : > { %437 = vadd.xlane.f32.xlu1 %v436_v20 }
 0x6c2   : > { %v1176_v22 = vpop.xlane.xlu2 %161  ;;  %v448_v35 = vpop.xlane.xlu0 %447 }
 0x6c3   : > { %1019 = vrcp.f32 %v1176_v22  ;;  %v177_v25 = vand.u32 2147483648, %v1176_v22  ;;  %vm171_vm7 = vweird.f32 %v1176_v22  ;;  %v175_v27 = vand.u32 2147483647, %v1176_v22 }
 0x6c4   : > { %v449_v39 = vsel %vm445_vm13, %v448_v35, %v435_v15 }
 0x6c5   : > { %v178_v29 = vor.u32 1.1754944e-38, %v177_v25  ;;  %vm176_vm11 = vcmp.eq.f32.partialorder %v175_v27, 8.507059e+37 }
 0x6c9   : > { %v1020_v23 = vpop.eup %1019 }
 0x6ca   : > { %v167_v24 = vmul.f32 %v1020_v23, %v1176_v22  ;;  %vm172_vm8 = vweird.f32 %v1020_v23 }
 0x6cb   : > { %vm173_vm10 = vmor %vm171_vm7, %vm172_vm8  ;;  %vm129_vm8 = vcmp.eq.s32.totalorder %v1088_v6, %v1086_v5 }
 0x6cc   : > { %v168_v26 = vsub.f32 1.0, %v167_v24 }
 0x6ce   : > { %v169_v28 = vmul.f32 %v1020_v23, %v168_v26 }
 0x6d0   : > { %v170_v30 = vadd.f32 %v1020_v23, %v169_v28 }
 0x6d2   : > { %v174_v32 = vsel %vm173_vm10, %v1020_v23, %v170_v30  ;;  %vm134_vm10 = vcmp.le.s32.totalorder %v1088_v6, %v1086_v5 }
 0x6d3   : > { %v1188_v33 = vsel %vm176_vm11, %v178_v29, %v174_v32 }
 0x6d4   : > { %v180_v34 = vmul.f32 %v1188_v33, %v165_v31 }
 0x6d6   : > { %181 = vst [vmem:[#allocation2 + $0x8] sm:$0xff] %v180_v34 }
 0x6dd   : > { %v455_v36 = vld [vmem:[#allocation2 + $0xf] ss:$0 sm:$0xff]  ;;  %v473_v45 = vld [vmem:[#allocation2 + $0xe] ss:$0 sm:$0xff]  ;;  %v491_v57 = vld [vmem:[#allocation2 + $0xd] ss:$0 sm:$0xff] }
 0x6de   : > { %v456_v38 = vxor.u32 2147483648, %v455_v36  ;;  %v474_v46 = vxor.u32 2147483648, %v473_v45  ;;  %v492_v61 = vxor.u32 2147483648, %v491_v57  ;;  %v509_v7 = vld [vmem:[#allocation2 + $0xc] ss:$0 sm:$0xff] }
 0x6df   : > { %v510_v12 = vxor.u32 2147483648, %v509_v7  ;;  %v527_v20 = vld [vmem:[#allocation2 + $0xb] ss:$0 sm:$0xff]  ;;  %v545_v34 = vld [vmem:[#allocation2 + $0xa] ss:$0 sm:$0xff] }
 0x6e0   : > { %v464_v40 = vmul.f32 %v456_v38, %v449_v39  ;;  %v460_v41 = vmul.f32 %v456_v38, %v253_v37  ;;  %v528_v25 = vxor.u32 2147483648, %v527_v20  ;;  %v563_v45 = vld [vmem:[#allocation2 + $0x9] ss:$0 sm:$0xff] }
 0x6e2   : > { %465 = vadd.xlane.f32.xlu0 %v464_v40  ;;  %461 = vadd.xlane.f32.xlu2 %v460_v41 }
 0x731   : > { %v438_v42 = vpop.xlane.xlu1 %437 }
 0x732   : > { %v439_v43 = vsel %vm431_vm3, %v438_v42, %v425_v19  ;;  %vm513_vm3 = vcmp.eq.s32.totalorder %v1086_v5, 12 }
 0x733   : > { %v450_v44 = vmul.f32 %v442_v14, %v439_v43 }
 0x735   : > { %451 = vadd.xlane.f32.xlu1 %v450_v44 }
 0x755   : > { %v466_v48 = vpop.xlane.xlu0 %465  ;;  %v462_v49 = vpop.xlane.xlu2 %461 }
 0x756   : > { %v467_v50 = vsel %vm459_vm14, %v466_v48, %v449_v39  ;;  %v463_v51 = vsel %vm459_vm14, %v462_v49, %v253_v37  ;;  %v546_v37 = vxor.u32 2147483648, %v545_v34  ;;  %v564_v49 = vxor.u32 2147483648, %v563_v45 }
 0x757   : > { %v482_v52 = vmul.f32 %v474_v46, %v467_v50  ;;  %v478_v53 = vmul.f32 %v474_v46, %v463_v51 }
 0x759   : > { %483 = vadd.xlane.f32.xlu0 %v482_v52  ;;  %479 = vadd.xlane.f32.xlu2 %v478_v53 }
 0x7a8   : > { %v452_v54 = vpop.xlane.xlu1 %451 }
 0x7a9   : > { %v453_v55 = vsel %vm445_vm13, %v452_v54, %v439_v43  ;;  %v130_v54 = vld [vmem:[%s1091_s20] sm:$0xff]  ;;  %vm135_vm13 = vmand %vm134_vm10, %vm125_vm1  ;;  %vm585_vm1 = vcmp.eq.s32.totalorder %v1086_v5, 8  ;;  %vm713_vm10 = vcmp.eq.s32.totalorder %v1086_v5, 2 }
 0x7aa   : > { %v468_v56 = vmul.f32 %v456_v38, %v453_v55 }
 0x7ac   : > { %469 = vadd.xlane.f32.xlu1 %v468_v56 }
 0x7cc   : > { %v484_v59 = vpop.xlane.xlu0 %483  ;;  %v480_v60 = vpop.xlane.xlu2 %479 }
 0x7cd   : > { %v485_v62 = vsel %vm477_vm0, %v484_v59, %v467_v50  ;;  %v481_v63 = vsel %vm477_vm0, %v480_v60, %v463_v51  ;;  %v581_v60 = vld [vmem:[#allocation2 + $0x8] ss:$0 sm:$0xff] }
 0x7ce   : > { %v500_v0 = vmul.f32 %v492_v61, %v485_v62  ;;  %v496_v1 = vmul.f32 %v492_v61, %v481_v63 }
 0x7d0   : > { %501 = vadd.xlane.f32.xlu0 %v500_v0  ;;  %497 = vadd.xlane.f32.xlu2 %v496_v1 }
 0x81f   : > { %v470_v2 = vpop.xlane.xlu1 %469 }
 0x820   : > { %v471_v3 = vsel %vm459_vm14, %v470_v2, %v453_v55  ;;  %v131_v55 = vsel %vm129_vm8, %v130_v54, 0.0  ;;  %vm669_vm8 = vcmp.eq.s32.totalorder %v1086_v5, 4 }
 0x821   : > { %v486_v4 = vmul.f32 %v474_v46, %v471_v3 }
 0x823   : > { %487 = vadd.xlane.f32.xlu1 %v486_v4 }
 0x843   : > { %v502_v8 = vpop.xlane.xlu0 %501  ;;  %v498_v9 = vpop.xlane.xlu2 %497 }
 0x844   : > { %v503_v13 = vsel %vm495_vm2, %v502_v8, %v485_v62  ;;  %v499_v14 = vsel %vm495_vm2, %v498_v9, %v481_v63  ;;  %v582_v62 = vxor.u32 2147483648, %v581_v60 }
 0x845   : > { %v518_v15 = vmul.f32 %v510_v12, %v503_v13  ;;  %v514_v16 = vmul.f32 %v510_v12, %v499_v14 }
 0x847   : > { %519 = vadd.xlane.f32.xlu0 %v518_v15  ;;  %515 = vadd.xlane.f32.xlu2 %v514_v16 }
 0x896   : > { %v488_v17 = vpop.xlane.xlu1 %487 }
 0x897   : > { %v489_v18 = vsel %vm477_vm0, %v488_v17, %v471_v3 }
 0x898   : > { %v504_v19 = vmul.f32 %v492_v61, %v489_v18 }
 0x89a   : > { %505 = vadd.xlane.f32.xlu1 %v504_v19 }
 0x8ba   : > { %v520_v23 = vpop.xlane.xlu0 %519  ;;  %v516_v24 = vpop.xlane.xlu2 %515 }
 0x8bb   : > { %v521_v26 = vsel %vm513_vm3, %v520_v23, %v503_v13  ;;  %v517_v27 = vsel %vm513_vm3, %v516_v24, %v499_v14  ;;  %v136_v14 = vsel %vm135_vm13, %v130_v54, 0.0  ;;  %vm756_vm13 = vcmp.eq.s32.totalorder %v1086_v5, 0 }
 0x8bc   : > { %v536_v28 = vmul.f32 %v528_v25, %v521_v26  ;;  %v532_v29 = vmul.f32 %v528_v25, %v517_v27 }
 0x8be   : > { %537 = vadd.xlane.f32.xlu0 %v536_v28  ;;  %533 = vadd.xlane.f32.xlu2 %v532_v29 }
 0x90d   : > { %v506_v30 = vpop.xlane.xlu1 %505 }
 0x90e   : > { %v507_v31 = vsel %vm495_vm2, %v506_v30, %v489_v18  ;;  %vm245_vm2 = vcmp.eq.s32.totalorder %v1086_v5, %v1088_v6 }
 0x90f   : > { %v522_v32 = vmul.f32 %v510_v12, %v507_v31  ;;  %v246_v18 = vsel %vm245_vm2, -1.0, %v1048_v11 }
 0x911   : > { %523 = vadd.xlane.f32.xlu1 %v522_v32 }
 0x931   : > { %v538_v35 = vpop.xlane.xlu0 %537  ;;  %v534_v36 = vpop.xlane.xlu2 %533 }
 0x932   : > { %v539_v38 = vsel %vm531_vm4, %v538_v35, %v521_v26  ;;  %v535_v39 = vsel %vm531_vm4, %v534_v36, %v517_v27 }
 0x933   : > { %v554_v40 = vmul.f32 %v546_v37, %v539_v38  ;;  %v550_v41 = vmul.f32 %v546_v37, %v535_v39 }
 0x935   : > { %555 = vadd.xlane.f32.xlu0 %v554_v40  ;;  %551 = vadd.xlane.f32.xlu2 %v550_v41 }
 0x984   : > { %v524_v42 = vpop.xlane.xlu1 %523 }
 0x985   : > { %v525_v43 = vsel %vm513_vm3, %v524_v42, %v507_v31  ;;  %vm603_vm3 = vcmp.eq.s32.totalorder %v1086_v5, 7 }
 0x986   : > { %v540_v44 = vmul.f32 %v528_v25, %v525_v43 }
 0x988   : > { %541 = vadd.xlane.f32.xlu1 %v540_v44 }
 0x9a8   : > { %v556_v46 = vpop.xlane.xlu0 %555  ;;  %v552_v48 = vpop.xlane.xlu2 %551 }
 0x9a9   : > { %v557_v50 = vsel %vm549_vm6, %v556_v46, %v539_v38  ;;  %v553_v51 = vsel %vm549_vm6, %v552_v48, %v535_v39 }
 0x9aa   : > { %v572_v52 = vmul.f32 %v564_v49, %v557_v50  ;;  %v568_v53 = vmul.f32 %v564_v49, %v553_v51 }
 0x9ac   : > { %573 = vadd.xlane.f32.xlu0 %v572_v52  ;;  %569 = vadd.xlane.f32.xlu2 %v568_v53 }
 0x9b4   : > { %132 = vadd.xlane.f32.xlu2 %v131_v55 }
 0x9fb   : > { %v542_v56 = vpop.xlane.xlu1 %541 }
 0x9fc   : > { %v543_v57 = vsel %vm531_vm4, %v542_v56, %v525_v43  ;;  %vm625_vm4 = vcmp.eq.s32.totalorder %v1086_v5, 6 }
 0x9fd   : > { %v558_v59 = vmul.f32 %v546_v37, %v543_v57 }
 0x9ff   : > { %559 = vadd.xlane.f32.xlu1 %v558_v59 }
 0xa1f   : > { %v570_v61 = vpop.xlane.xlu2 %569  ;;  %v574_v27 = vpop.xlane.xlu0 %573 }
 0xa20   : > { %v571_v63 = vsel %vm567_vm9, %v570_v61, %v553_v51  ;;  %v575_v28 = vsel %vm567_vm9, %v574_v27, %v557_v50 }
 0xa21   : > { %v586_v0 = vmul.f32 %v582_v62, %v571_v63  ;;  %v590_v29 = vmul.f32 %v582_v62, %v575_v28 }
 0xa23   : > { %587 = vadd.xlane.f32.xlu0 %v586_v0 }
 0xa27   : > { %v1246_v1 = vpop.xlane.xlu2 %132 }
 0xa28   : > { %1021 = vrcp.f32 %v1246_v1  ;;  %v148_v4 = vand.u32 2147483648, %v1246_v1  ;;  %vm142_vm11 = vweird.f32 %v1246_v1  ;;  %v146_v8 = vand.u32 2147483647, %v1246_v1 }
 0xa2a   : > { %v149_v12 = vor.u32 1.1754944e-38, %v148_v4  ;;  %vm147_vm0 = vcmp.eq.f32.partialorder %v146_v8, 8.507059e+37 }
 0xa2e   : > { %v1022_v2 = vpop.eup %1021 }
 0xa2f   : > { %v138_v3 = vmul.f32 %v1022_v2, %v1246_v1  ;;  %vm143_vm12 = vweird.f32 %v1022_v2 }
 0xa30   : > { %vm144_vm14 = vmor %vm142_vm11, %vm143_vm12  ;;  %vm735_vm12 = vcmp.eq.s32.totalorder %v1086_v5, 1 }
 0xa31   : > { %v139_v7 = vsub.f32 1.0, %v138_v3 }
 0xa33   : > { %v140_v9 = vmul.f32 %v1022_v2, %v139_v7 }
 0xa35   : > { %v141_v13 = vadd.f32 %v1022_v2, %v140_v9 }
 0xa37   : > { %v145_v15 = vsel %vm144_vm14, %v1022_v2, %v141_v13 }
 0xa38   : > { %v1259_v16 = vsel %vm147_vm0, %v149_v12, %v145_v15 }
 0xa39   : > { %v151_v17 = vmul.f32 %v1259_v16, %v136_v14 }
 0xa3b   : > { %152 = vst [vmem:[#allocation2] sm:$0xff] %v151_v17 }
 0xa42   : > { %v599_v19 = vld [vmem:[#allocation2 + $0x7] ss:$0 sm:$0xff]  ;;  %v621_v31 = vld [vmem:[#allocation2 + $0x6] ss:$0 sm:$0xff]  ;;  %v643_v46 = vld [vmem:[#allocation2 + $0x5] ss:$0 sm:$0xff] }
 0xa43   : > { %v600_v20 = vxor.u32 2147483648, %v599_v19  ;;  %v622_v32 = vxor.u32 2147483648, %v621_v31  ;;  %v644_v48 = vxor.u32 2147483648, %v643_v46 }
 0xa45   : > { %v604_v23 = vmul.f32 %v600_v20, %v246_v18 }
 0xa47   : > { %605 = vadd.xlane.f32.xlu0 %v604_v23 }
 0xa72   : > { %v560_v24 = vpop.xlane.xlu1 %559 }
 0xa73   : > { %v561_v25 = vsel %vm549_vm6, %v560_v24, %v543_v57  ;;  %vm647_vm6 = vcmp.eq.s32.totalorder %v1086_v5, 5 }
 0xa74   : > { %v576_v26 = vmul.f32 %v564_v49, %v561_v25 }
 0xa76   : > { %577 = vadd.xlane.f32.xlu1 %v576_v26 }
 0xa7e   : > { %591 = vadd.xlane.f32.xlu1 %v590_v29 }
 0xa96   : > { %v588_v6 = vpop.xlane.xlu0 %587 }
 0xa97   : > { %v589_v11 = vsel %vm585_vm1, %v588_v6, %v571_v63 }
 0xa98   : > { %v608_v30 = vmul.f32 %v600_v20, %v589_v11 }
 0xa9a   : > { %609 = vadd.xlane.f32.xlu1 %v608_v30 }
 0xaba   : > { %v606_v34 = vpop.xlane.xlu0 %605 }
 0xabb   : > { %v607_v35 = vsel %vm603_vm3, %v606_v34, %v246_v18  ;;  %v687_v18 = vld [vmem:[#allocation2 + $0x3] ss:$0 sm:$0xff] }
 0xabc   : > { %v626_v36 = vmul.f32 %v622_v32, %v607_v35 }
 0xabe   : > { %627 = vadd.xlane.f32.xlu1 %v626_v36 }
 0xae9   : > { %v578_v37 = vpop.xlane.xlu1 %577 }
 0xaea   : > { %v579_v38 = vsel %vm567_vm9, %v578_v37, %v561_v25  ;;  %vm691_vm9 = vcmp.eq.s32.totalorder %v1086_v5, 3 }
 0xaeb   : > { %v594_v39 = vmul.f32 %v582_v62, %v579_v38  ;;  %v665_v62 = vld [vmem:[#allocation2 + $0x4] ss:$0 sm:$0xff] }
 0xaec   : > { %v666_v0 = vxor.u32 2147483648, %v665_v62 }
 0xaed   : > { %595 = vadd.xlane.f32.xlu2 %v594_v39 }
 0xaf1   : > { %v592_v40 = vpop.xlane.xlu1 %591 }
 0xaf2   : > { %v593_v41 = vsel %vm585_vm1, %v592_v40, %v575_v28 }
 0xaf3   : > { %v612_v42 = vmul.f32 %v600_v20, %v593_v41 }
 0xaf5   : > { %613 = vadd.xlane.f32.xlu2 %v612_v42 }
 0xb0d   : > { %v610_v43 = vpop.xlane.xlu1 %609 }
 0xb0e   : > { %v611_v44 = vsel %vm603_vm3, %v610_v43, %v589_v11 }
 0xb0f   : > { %v630_v45 = vmul.f32 %v622_v32, %v611_v44 }
 0xb11   : > { %631 = vadd.xlane.f32.xlu2 %v630_v45 }
 0xb31   : > { %v628_v49 = vpop.xlane.xlu1 %627 }
 0xb32   : > { %v629_v50 = vsel %vm625_vm4, %v628_v49, %v607_v35 }
 0xb33   : > { %v648_v51 = vmul.f32 %v644_v48, %v629_v50 }
 0xb35   : > { %649 = vadd.xlane.f32.xlu2 %v648_v51 }
 0xb60   : > { %v596_v52 = vpop.xlane.xlu2 %595 }
 0xb61   : > { %v597_v53 = vsel %vm585_vm1, %v596_v52, %v579_v38 }
 0xb62   : > { %v616_v54 = vmul.f32 %v600_v20, %v597_v53  ;;  %v688_v20 = vxor.u32 2147483648, %v687_v18 }
 0xb64   : > { %617 = vadd.xlane.f32.xlu0 %v616_v54 }
 0xb68   : > { %v614_v55 = vpop.xlane.xlu2 %613 }
 0xb69   : > { %v615_v56 = vsel %vm603_vm3, %v614_v55, %v593_v41 }
 0xb6a   : > { %v634_v57 = vmul.f32 %v622_v32, %v615_v56 }
 0xb6c   : > { %635 = vadd.xlane.f32.xlu0 %v634_v57 }
 0xb84   : > { %v632_v59 = vpop.xlane.xlu2 %631 }
 0xb85   : > { %v633_v60 = vsel %vm625_vm4, %v632_v59, %v611_v44 }
 0xb86   : > { %v652_v61 = vmul.f32 %v644_v48, %v633_v60 }
 0xb88   : > { %653 = vadd.xlane.f32.xlu0 %v652_v61 }
 0xba8   : > { %v650_v63 = vpop.xlane.xlu2 %649 }
 0xba9   : > { %v651_v2 = vsel %vm647_vm6, %v650_v63, %v629_v50  ;;  %v752_v63 = vld [vmem:[#allocation2] ss:$0 sm:$0xff] }
 0xbaa   : > { %v670_v3 = vmul.f32 %v666_v0, %v651_v2 }
 0xbac   : > { %671 = vadd.xlane.f32.xlu0 %v670_v3 }
 0xbd7   : > { %v618_v4 = vpop.xlane.xlu0 %617 }
 0xbd8   : > { %v619_v7 = vsel %vm603_vm3, %v618_v4, %v597_v53 }
 0xbd9   : > { %v638_v8 = vmul.f32 %v622_v32, %v619_v7  ;;  %v709_v32 = vld [vmem:[#allocation2 + $0x2] ss:$0 sm:$0xff] }
 0xbda   : > { %v710_v35 = vxor.u32 2147483648, %v709_v32 }
 0xbdb   : > { %639 = vadd.xlane.f32.xlu1 %v638_v8 }
 0xbdf   : > { %v636_v9 = vpop.xlane.xlu0 %635 }
 0xbe0   : > { %v637_v12 = vsel %vm625_vm4, %v636_v9, %v615_v56 }
 0xbe1   : > { %v656_v13 = vmul.f32 %v644_v48, %v637_v12 }
 0xbe3   : > { %657 = vadd.xlane.f32.xlu1 %v656_v13 }
 0xbfb   : > { %v654_v14 = vpop.xlane.xlu0 %653 }
 0xbfc   : > { %v655_v15 = vsel %vm647_vm6, %v654_v14, %v633_v60 }
 0xbfd   : > { %v674_v17 = vmul.f32 %v666_v0, %v655_v15 }
 0xbff   : > { %675 = vadd.xlane.f32.xlu1 %v674_v17 }
 0xc1f   : > { %v672_v19 = vpop.xlane.xlu0 %671 }
 0xc20   : > { %v673_v23 = vsel %vm669_vm8, %v672_v19, %v651_v2  ;;  %v753_v2 = vxor.u32 2147483648, %v752_v63 }
 0xc21   : > { %v692_v24 = vmul.f32 %v688_v20, %v673_v23 }
 0xc23   : > { %693 = vadd.xlane.f32.xlu1 %v692_v24 }
 0xc4e   : > { %v640_v25 = vpop.xlane.xlu1 %639 }
 0xc4f   : > { %v641_v26 = vsel %vm625_vm4, %v640_v25, %v619_v7 }
 0xc50   : > { %v660_v27 = vmul.f32 %v644_v48, %v641_v26  ;;  %v731_v48 = vld [vmem:[#allocation2 + $0x1] ss:$0 sm:$0xff] }
 0xc51   : > { %v732_v50 = vxor.u32 2147483648, %v731_v48 }
 0xc52   : > { %661 = vadd.xlane.f32.xlu2 %v660_v27 }
 0xc56   : > { %v658_v28 = vpop.xlane.xlu1 %657 }
 0xc57   : > { %v659_v29 = vsel %vm647_vm6, %v658_v28, %v637_v12 }
 0xc58   : > { %v678_v6 = vmul.f32 %v666_v0, %v659_v29 }
 0xc5a   : > { %679 = vadd.xlane.f32.xlu2 %v678_v6 }
 0xc72   : > { %v676_v11 = vpop.xlane.xlu1 %675 }
 0xc73   : > { %v677_v30 = vsel %vm669_vm8, %v676_v11, %v655_v15 }
 0xc74   : > { %v696_v31 = vmul.f32 %v688_v20, %v677_v30 }
 0xc76   : > { %697 = vadd.xlane.f32.xlu2 %v696_v31 }
 0xc96   : > { %v694_v34 = vpop.xlane.xlu1 %693 }
 0xc97   : > { %v695_v36 = vsel %vm691_vm9, %v694_v34, %v673_v23 }
 0xc98   : > { %v714_v37 = vmul.f32 %v710_v35, %v695_v36 }
 0xc9a   : > { %715 = vadd.xlane.f32.xlu2 %v714_v37 }
 0xcc5   : > { %v662_v38 = vpop.xlane.xlu2 %661 }
 0xcc6   : > { %v663_v39 = vsel %vm647_vm6, %v662_v38, %v641_v26 }
 0xcc7   : > { %v682_v40 = vmul.f32 %v666_v0, %v663_v39 }
 0xcc9   : > { %683 = vadd.xlane.f32.xlu0 %v682_v40 }
 0xccd   : > { %v680_v41 = vpop.xlane.xlu2 %679 }
 0xcce   : > { %v681_v42 = vsel %vm669_vm8, %v680_v41, %v659_v29 }
 0xccf   : > { %v700_v43 = vmul.f32 %v688_v20, %v681_v42 }
 0xcd1   : > { %701 = vadd.xlane.f32.xlu0 %v700_v43 }
 0xce9   : > { %v698_v44 = vpop.xlane.xlu2 %697 }
 0xcea   : > { %v699_v45 = vsel %vm691_vm9, %v698_v44, %v677_v30 }
 0xceb   : > { %v718_v46 = vmul.f32 %v710_v35, %v699_v45 }
 0xced   : > { %719 = vadd.xlane.f32.xlu0 %v718_v46 }
 0xd0d   : > { %v716_v49 = vpop.xlane.xlu2 %715 }
 0xd0e   : > { %v717_v51 = vsel %vm713_vm10, %v716_v49, %v695_v36 }
 0xd0f   : > { %v736_v52 = vmul.f32 %v732_v50, %v717_v51 }
 0xd11   : > { %737 = vadd.xlane.f32.xlu0 %v736_v52 }
 0xd3c   : > { %v684_v53 = vpop.xlane.xlu0 %683 }
 0xd3d   : > { %v685_v54 = vsel %vm669_vm8, %v684_v53, %v663_v39 }
 0xd3e   : > { %v704_v55 = vmul.f32 %v688_v20, %v685_v54 }
 0xd40   : > { %705 = vadd.xlane.f32.xlu1 %v704_v55 }
 0xd44   : > { %v702_v56 = vpop.xlane.xlu0 %701 }
 0xd45   : > { %v703_v57 = vsel %vm691_vm9, %v702_v56, %v681_v42 }
 0xd46   : > { %v722_v59 = vmul.f32 %v710_v35, %v703_v57 }
 0xd48   : > { %723 = vadd.xlane.f32.xlu1 %v722_v59 }
 0xd60   : > { %v720_v60 = vpop.xlane.xlu0 %719 }
 0xd61   : > { %v721_v61 = vsel %vm713_vm10, %v720_v60, %v699_v45 }
 0xd62   : > { %v740_v62 = vmul.f32 %v732_v50, %v721_v61 }
 0xd64   : > { %741 = vadd.xlane.f32.xlu1 %v740_v62 }
 0xd84   : > { %v738_v0 = vpop.xlane.xlu0 %737 }
 0xd85   : > { %v739_v3 = vsel %vm735_vm12, %v738_v0, %v717_v51 }
 0xd86   : > { %v757_v4 = vmul.f32 %v753_v2, %v739_v3 }
 0xd88   : > { %758 = vadd.xlane.f32.xlu1 %v757_v4 }
 0xdb3   : > { %v706_v7 = vpop.xlane.xlu1 %705 }
 0xdb4   : > { %v707_v8 = vsel %vm691_vm9, %v706_v7, %v685_v54 }
 0xdb5   : > { %v726_v9 = vmul.f32 %v710_v35, %v707_v8 }
 0xdb7   : > { %727 = vadd.xlane.f32.xlu2 %v726_v9 }
 0xdbb   : > { %v724_v12 = vpop.xlane.xlu1 %723 }
 0xdbc   : > { %v725_v13 = vsel %vm713_vm10, %v724_v12, %v703_v57 }
 0xdbd   : > { %v744_v14 = vmul.f32 %v732_v50, %v725_v13 }
 0xdbf   : > { %745 = vadd.xlane.f32.xlu2 %v744_v14 }
 0xdd7   : > { %v742_v15 = vpop.xlane.xlu1 %741 }
 0xdd8   : > { %v743_v17 = vsel %vm735_vm12, %v742_v15, %v721_v61 }
 0xdd9   : > { %v761_v18 = vmul.f32 %v753_v2, %v743_v17 }
 0xddb   : > { %762 = vadd.xlane.f32.xlu2 %v761_v18 }
 0xdfb   : > { %v759_v19 = vpop.xlane.xlu1 %758 }
 0xdfc   : > { %v760_v20 = vsel %vm756_vm13, %v759_v19, %v739_v3 }
 0xdfd   : > { %v787_v23 = vmul.f32 %v760_v20, %v1259_v16 }
 0xdff   : > { %v789_v24 = vsel %vm142_vm11, %v760_v20, %v787_v23 }
 0xe00   : > { %894 = vst [vmem:[%s858_s24] sm:$0xff] %v789_v24 }
 0xe2a   : > { %v728_v25 = vpop.xlane.xlu2 %727 }
 0xe2b   : > { %v729_v26 = vsel %vm713_vm10, %v728_v25, %v707_v8 }
 0xe2c   : > { %v748_v27 = vmul.f32 %v732_v50, %v729_v26 }
 0xe2e   : > { %749 = vadd.xlane.f32.xlu0 %v748_v27 }
 0xe32   : > { %v746_v28 = vpop.xlane.xlu2 %745 }
 0xe33   : > { %v747_v29 = vsel %vm735_vm12, %v746_v28, %v725_v13 }
 0xe34   : > { %v765_v6 = vmul.f32 %v753_v2, %v747_v29 }
 0xe36   : > { %766 = vadd.xlane.f32.xlu0 %v765_v6 }
 0xe4e   : > { %v763_v16 = vpop.xlane.xlu2 %762 }
 0xe4f   : > { %v764_v11 = vsel %vm756_vm13, %v763_v16, %v743_v17 }
 0xe50   : > { %v805_v1 = vmul.f32 %v764_v11, %v1188_v33 }
 0xe52   : > { %v807_v30 = vsel %vm171_vm7, %v764_v11, %v805_v1 }
 0xe53   : > { %896 = vst [vmem:[%s858_s24 + $0x8] sm:$0xff] %v807_v30 }
 0xea1   : > { %v750_v31 = vpop.xlane.xlu0 %749 }
 0xea2   : > { %v751_v32 = vsel %vm735_vm12, %v750_v31, %v729_v26 }
 0xea3   : > { %v769_v34 = vmul.f32 %v753_v2, %v751_v32 }
 0xea5   : > { %770 = vadd.xlane.f32.xlu1 %v769_v34 }
 0xea9   : > { %v767_v35 = vpop.xlane.xlu0 %766 }
 0xeaa   : > { %v768_v36 = vsel %vm756_vm13, %v767_v35, %v747_v29 }
 0xeab   : > { %v824_v37 = vmul.f32 %v768_v36, %v1131_v58 }
 0xead   : > { %v826_v38 = vsel %vm200_vm15, %v768_v36, %v824_v37 }
 0xeae   : > { %898 = vst [vmem:[%s858_s24 + $0x10] sm:$0xff] %v826_v38 }
 0xf18   : > { %v771_v33 = vpop.xlane.xlu1 %770 }
 0xf19   : > { %v772_v22 = vsel %vm756_vm13, %v771_v33, %v751_v32 }
 0xf1a   : > { %v843_v39 = vmul.f32 %v772_v22, %v1108_v21 }
 0xf1c   : > { %v845_v40 = vsel %vm229_vm5, %v772_v22, %v843_v39 }
 0xf1d   : > { %900 = vst [vmem:[%s858_s24 + $0x18] sm:$0xff] %v845_v40 }
 0xf1e PF: > { %s7_s8 = sadd.s32 1, %s1045_s8   ;;  %s1377_s6 = smov %s1041_s7 }
 0xf1f   : > { %p4_p5 = scmp.ge.s32.totalorder %s7_s8, 6   ;;  %s1378_s7 = smov %s1380_s10 }
 0xf21   :  { %6 = sbr.rel (!%p4_p5) target bundleno = 2 (0x2), region = 157 }

// kernel: pf_unfolding_forward.1
= control target key start
LH: loop header
LB: loop body
LE: loop exit
PB: predicated region body
PF: predicated region fallthrough
CT: control target
= control target key end

     0   :  { %s1515_s24 = smov 0   ;;  %s1698_s0 = inlined_call_operand.vmem [shape: f32[4,32,16], index: 0, kind: input, shape index: {}]   ;;  %s1699_s1 = inlined_call_operand.vmem [shape: f32[4,32,16], index: 1, kind: input, shape index: {}]   ;;  %s1700_s2 = inlined_call_operand.vmem [shape: f32[4,32,16], index: 2, kind: input, shape index: {}]   ;;  %s1701_s3 = inlined_call_operand.vmem [shape: f32[4,32,8], index: 3, kind: input, shape index: {}]   ;;  %s1702_s4 = inlined_call_operand.vmem [shape: f32[4,16,8], index: 4, kind: input, shape index: {}]   ;;  %s1703_s5 = inlined_call_operand.vmem [shape: f32[4,16,8], index: 5, kind: input, shape index: {}]   ;;  %s1704_s6 = inlined_call_operand.vmem [shape: f32[4,32,8], index: 6, kind: input, shape index: {}]   ;;  %s1705_s7 = inlined_call_operand.vmem [shape: f32[2,32,16], index: 7, kind: output, shape index: {}]  }
   0x1 LB: > { %s1521_s25 = sadd.s32 4294967295, %s1472_s24   ;;  %p1343_p0 = scmp.ge.s32.totalorder %s1472_s24, 1  ;;  %s1472_s24 = sphi %s1515_s24, %s17_s24  }
   0x2   : > { %p311_p1 = scmp.lt.s32.totalorder %s1472_s24, 3 }
   0x4   : > { %p312_p2 = pnand %p1343_p0, %p311_p1 }
   0x5   : > { %s1344_s26 = sshll.u32 (!%p312_p2), %s1521_s25, 1  ;;  %p429_p4 = scmp.lt.s32.totalorder (!%p312_p2), %s1521_s25, 1 }
   0x6   : > { %315 = sbr.rel (%p312_p2) target bundleno = 886 (0x376), region = 48  ;;  %p381_p3 = scmp.lt.s32.totalorder (!%p312_p2), %s1344_s26, 3 }
   0xb   : > { %s1707_s26 = smov (!%p381_p3, %s1344_s26), 3  ;;  %vm440_vm0 = vcmask 130048   ;;  %vm638_vm1 = vcmask 64512   ;;  %s1709_s25 = smov (!%p429_p4, %s1521_s25), 1  ;;  %vm1149_vm2 = vcmask 130112  }
   0xc   : > { %s1529_s27 = sshll.u32 %s1707_s26, 5  ;;  %s1453_s11 = sshll.u32 %s1707_s26, 4 }
   0xd   : > { %s1535_s30 = scalar_lea.vmem %s1699_s1, %s1529_s27  ;;  %s1541_s10 = scalar_lea.vmem %s1698_s0, %s1529_s27 }
   0xe   : > { %v439_v0 = vld [vmem:[%s1535_s30 + $0x8] sm:$0xff]  ;;  %v483_v1 = vld [vmem:[%s1535_s30 + $0x18] sm:$0xff]  ;;  %v438_v2 = vld [vmem:[%s1535_s30] sm:$0xff]  ;;  %s1563_s14 = scalar_lea.vmem %s1703_s5, %s1453_s11  ;;  %s1570_s17 = scalar_lea.vmem %s1702_s4, %s1453_s11 }
   0xf   : > { %467 = vmatpush.msra.mxu0 %v439_v0  ;;  %498 = vmatpush.msra.mxu1 %v483_v1  ;;  %v482_v3 = vld [vmem:[%s1535_s30 + $0x10] sm:$0xff]  ;;  %v434_v4 = vld [vmem:[%s1541_s10] sm:$0xff]  ;;  %v435_v5 = vld [vmem:[%s1541_s10 + $0x8] sm:$0xff]  ;;  %s1579_s20 = scalar_lea.vmem %s1701_s3, %s1529_s27  ;;  %s1592_s23 = scalar_lea.vmem %s1700_s2, %s1529_s27 }
  0x10   : > { %v436_v6 = vld [vmem:[%s1541_s10 + $0x10] sm:$0xff]  ;;  %v437_v7 = vld [vmem:[%s1541_s10 + $0x18] sm:$0xff]  ;;  %v637_v8 = vld [vmem:[%s1563_s14] sm:$0xff]  ;;  %s1645_s29 = scalar_lea.vmem %s1704_s6, %s1529_s27 }
  0x11   : > { %468 = vmatpush.msra.mxu0 %v438_v2  ;;  %499 = vmatpush.msra.mxu1 %v482_v3  ;;  %v668_v9 = vld [vmem:[%s1563_s14 + $0x8] sm:$0xff]  ;;  %v635_v10 = vld [vmem:[%s1570_s17] sm:$0xff]  ;;  %v528_v12 = vld [vmem:[%s1579_s20 + $0x18] sm:$0xff] }
  0x12   : > { %1367 = vmatmul.msk.f32.vlgmr.msra.gmra.mxu0 %vm440_vm0, %v434_v4  ;;  %1371 = vmatmul.msk.f32.vlgmr.msra.gmra.mxu1 %vm440_vm0, %v434_v4  ;;  %v526_v11 = vld [vmem:[%s1579_s20 + $0x8] sm:$0xff]  ;;  %v525_v14 = vld [vmem:[%s1579_s20] sm:$0xff]  ;;  %v527_v15 = vld [vmem:[%s1579_s20 + $0x10] sm:$0xff] }
  0x13   : > { %660 = vmatpush.msrb.mxu0 %v637_v8  ;;  %684 = vmatpush.msrb.mxu1 %v668_v9  ;;  %v636_v13 = vld [vmem:[%s1570_s17 + $0x8] sm:$0xff]  ;;  %v521_v21 = vld [vmem:[%s1592_s23 + $0x10] sm:$0xff]  ;;  %v515_v23 = vld [vmem:[%s1592_s23] sm:$0xff] }
  0x14   : > { %549 = vmatpush.msra.mxu2 %v526_v11  ;;  %578 = vmatpush.msra.mxu3 %v528_v12  ;;  %v522_v29 = vld [vmem:[%s1592_s23 + $0x18] sm:$0xff]  ;;  %v516_v31 = vld [vmem:[%s1592_s23 + $0x8] sm:$0xff]  ;;  %v1399_v43 = vld [vmem:[%s1535_s30 + $0x20] sm:$0xff] }
  0x15   : > { %v1400_v42 = vld [vmem:[%s1535_s30 + $0x28] sm:$0xff]  ;;  %v1406_v44 = vld [vmem:[%s1535_s30 + $0x38] sm:$0xff]  ;;  %v1405_v45 = vld [vmem:[%s1535_s30 + $0x30] sm:$0xff]  ;;  %s1456_s30 = sshll.u32 %s1709_s25, 5  ;;  %s1474_s25 = smov 8  }
  0x16   : > { %550 = vmatpush.msra.mxu2 %v525_v14  ;;  %579 = vmatpush.msra.mxu3 %v527_v15  ;;  %v1395_v55 = vld [vmem:[%s1541_s10 + $0x20] sm:$0xff]  ;;  %v1396_v59 = vld [vmem:[%s1541_s10 + $0x28] sm:$0xff]  ;;  %v1397_v60 = vld [vmem:[%s1541_s10 + $0x30] sm:$0xff] }
  0x17   : > { %v1398_v61 = vld [vmem:[%s1541_s10 + $0x38] sm:$0xff]  ;;  %v1429_v62 = vld [vmem:[%s1563_s14 + $0x10] sm:$0xff]  ;;  %v1416_v4 = vld [vmem:[%s1579_s20 + $0x28] sm:$0xff]  ;;  %s1653_s10 = scalar_lea.vmem %s1705_s7, %s1456_s30 }
  0x18   : > { %603 = vmatpush.msrb.mxu2 %v526_v11  ;;  %626 = vmatpush.msrb.mxu3 %v528_v12  ;;  %v1432_v63 = vld [vmem:[%s1563_s14 + $0x18] sm:$0xff]  ;;  %v1427_v0 = vld [vmem:[%s1570_s17 + $0x10] sm:$0xff]  ;;  %v1415_v11 = vld [vmem:[%s1579_s20 + $0x20] sm:$0xff] }
  0x19   : > { %v1418_v2 = vld [vmem:[%s1579_s20 + $0x38] sm:$0xff]  ;;  %v1417_v3 = vld [vmem:[%s1579_s20 + $0x30] sm:$0xff] }
  0x1a   : > { %1368 = vmatmul.msk.f32.gmra.mxu0 %vm440_vm0, %v435_v5  ;;  %1372 = vmatmul.msk.f32.gmra.mxu1 %vm440_vm0, %v435_v5  ;;  %v1428_v5 = vld [vmem:[%s1570_s17 + $0x18] sm:$0xff]  ;;  %v806_v9 = vld [vmem:[%s1645_s29 + $0x10] sm:$0xff] }
  0x1b   : > { %604 = vmatpush.msrb.mxu2 %v525_v14  ;;  %627 = vmatpush.msrb.mxu3 %v527_v15  ;;  %v754_v14 = vld [vmem:[%s1645_s29] sm:$0xff] }
  0x22   : > { %1369 = vmatmul.msk.f32.gmra.mxu0 %vm440_vm0, %v436_v6  ;;  %1373 = vmatmul.msk.f32.gmra.mxu1 %vm440_vm0, %v436_v6 }
  0x2a   : > { %1370 = vmatmul.msk.f32.gmra.mxu0 %vm440_vm0, %v437_v7  ;;  %1374 = vmatmul.msk.f32.gmra.mxu1 %vm440_vm0, %v437_v7 }
  0x32   : > { %1383 = vmatmul.msk.f32.vlgmr.msrb.gmra.mxu0 %vm638_vm1, %v635_v10  ;;  %1385 = vmatmul.msk.f32.vlgmr.msrb.gmra.mxu1 %vm638_vm1, %v635_v10 }
  0x3a   : > { %1384 = vmatmul.msk.f32.gmra.mxu0 %vm638_vm1, %v636_v13  ;;  %1386 = vmatmul.msk.f32.gmra.mxu1 %vm638_vm1, %v636_v13 }
  0x8f   : > { %v470_v16 = vpop.f32.mrf.mxu0  ;;  %v501_v17 = vpop.f32.mrf.mxu1 }
  0x97   : > { %v473_v18 = vpop.f32.mrf.mxu0  ;;  %v504_v19 = vpop.f32.mrf.mxu1 }
  0x9f   : > { %v476_v20 = vpop.f32.mrf.mxu0  ;;  %v507_v22 = vpop.f32.mrf.mxu1 }
  0xa0   : > { %v519_v24 = vadd.f32 %v501_v17, %v476_v20  ;;  %v513_v25 = vsub.f32 %v470_v16, %v507_v22 }
  0xa2   : > { %v523_v26 = vadd.f32 %v521_v21, %v519_v24  ;;  %v517_v27 = vadd.f32 %v515_v23, %v513_v25  ;;  %v755_v24 = vld [vmem:[%s1645_s29 + $0x8] sm:$0xff] }
  0xa4   : > { %1375 = vmatmul.msk.f32.vlgmr.msra.gmra.mxu2 %vm440_vm0, %v517_v27  ;;  %1377 = vmatmul.msk.f32.vlgmr.msra.gmra.mxu3 %vm440_vm0, %v523_v26 }
  0xa7   : > { %v479_v28 = vpop.f32.mrf.mxu0  ;;  %v510_v30 = vpop.f32.mrf.mxu1 }
  0xa8   : > { %v520_v32 = vadd.f32 %v504_v19, %v479_v28  ;;  %v514_v33 = vsub.f32 %v473_v18, %v510_v30  ;;  %v807_v19 = vld [vmem:[%s1645_s29 + $0x18] sm:$0xff]  ;;  %v1413_v30 = vld [vmem:[%s1592_s23 + $0x30] sm:$0xff] }
  0xaa   : > { %v524_v34 = vadd.f32 %v522_v29, %v520_v32  ;;  %v518_v35 = vadd.f32 %v516_v31, %v514_v33 }
  0xac   : > { %1376 = vmatmul.msk.f32.gmra.mxu2 %vm440_vm0, %v518_v35  ;;  %1378 = vmatmul.msk.f32.gmra.mxu3 %vm440_vm0, %v524_v34 }
  0xaf   : > { %v662_v36 = vpop.f32.mrf.mxu0  ;;  %v686_v37 = vpop.f32.mrf.mxu1 }
  0xb4   : > { %1379 = vmatmul.msk.f32.vlgmr.msrb.gmra.mxu2 %vm440_vm0, %v523_v26  ;;  %1381 = vmatmul.msk.f32.vlgmr.msrb.gmra.mxu3 %vm440_vm0, %v517_v27 }
  0xb7   : > { %v665_v38 = vpop.f32.mrf.mxu0  ;;  %v689_v39 = vpop.f32.mrf.mxu1 }
  0xb8   : > { %v693_v40 = vadd.f32 %v686_v37, %v665_v38  ;;  %v692_v41 = vsub.f32 %v662_v36, %v689_v39  ;;  %v1411_v39 = vld [vmem:[%s1592_s23 + $0x20] sm:$0xff] }
  0xba   : > { %715 = vmatpush.msra.mxu2 %v692_v41  ;;  %744 = vmatpush.msra.mxu3 %v693_v40 }
  0xbb   : > { %775 = vmatpush.msra.mxu0 %v692_v41  ;;  %798 = vmatpush.msra.mxu1 %v693_v40 }
  0xbc   : > { %1380 = vmatmul.msk.f32.gmra.mxu2 %vm440_vm0, %v524_v34  ;;  %1382 = vmatmul.msk.f32.gmra.mxu3 %vm440_vm0, %v518_v35  ;;  %v1414_v35 = vld [vmem:[%s1592_s23 + $0x38] sm:$0xff] }
  0xbd   : > { %846 = vmatpush.msrb.mxu2 %v1400_v42  ;;  %877 = vmatpush.msrb.mxu3 %v1406_v44 }
  0xbe   : > { %959 = vmatpush.msrb.mxu1 %v1418_v2  ;;  %930 = vmatpush.msrb.mxu0 %v1416_v4 }
  0xbf   : > { %847 = vmatpush.msrb.mxu2 %v1399_v43  ;;  %878 = vmatpush.msrb.mxu3 %v1405_v45  ;;  %v1412_v43 = vld [vmem:[%s1592_s23 + $0x28] sm:$0xff] }
  0xc0   : > { %960 = vmatpush.msrb.mxu1 %v1417_v3  ;;  %931 = vmatpush.msrb.mxu0 %v1415_v11 }
 0x127   : > { %v552_v46 = vpop.f32.mrf.mxu2  ;;  %v581_v47 = vpop.f32.mrf.mxu3 }
 0x128   : > { %v587_v48 = vsub.f32 %v552_v46, %v581_v47 }
 0x12a   : > { %1387 = vmatmul.msk.f32.vlgmr.msra.gmra.mxu2 %vm638_vm1, %v587_v48  ;;  %1393 = vmatmul.msk.f32.vlgmr.msra.gmra.mxu1 %vm638_vm1, %v587_v48 }
 0x12b   : > { %1042 = vmatpush.msra.mxu2 %v1429_v62  ;;  %1007 = vmatpush.msra.mxu1 %v1418_v2  ;;  %v1439_v2 = vld [vmem:[%s1645_s29 + $0x20] sm:$0xff] }
 0x12d   : > { %1008 = vmatpush.msra.mxu1 %v1417_v3 }
 0x12f   : > { %v555_v49 = vpop.f32.mrf.mxu2  ;;  %v584_v50 = vpop.f32.mrf.mxu3 }
 0x130   : > { %v588_v51 = vsub.f32 %v555_v49, %v584_v50 }
 0x132   : > { %1388 = vmatmul.msk.f32.gmra.mxu2 %vm638_vm1, %v588_v51  ;;  %1394 = vmatmul.msk.f32.gmra.mxu1 %vm638_vm1, %v588_v51 }
 0x137   : > { %v606_v52 = vpop.f32.mrf.mxu2  ;;  %v629_v53 = vpop.f32.mrf.mxu3 }
 0x138   : > { %v630_v54 = vadd.f32 %v629_v53, %v606_v52 }
 0x13a   : > { %1389 = vmatmul.msk.f32.vlgmr.msra.gmra.mxu3 %vm638_vm1, %v630_v54  ;;  %1391 = vmatmul.msk.f32.vlgmr.msra.gmra.mxu0 %vm638_vm1, %v630_v54 }
 0x13b   : > { %1401 = vmatmul.msk.f32.vlgmr.msrb.gmra.mxu2 %vm440_vm0, %v1395_v55  ;;  %1066 = vmatpush.msra.mxu3 %v1432_v63 }
 0x13c   : > { %984 = vmatpush.msra.mxu0 %v1416_v4 }
 0x13e   : > { %985 = vmatpush.msra.mxu0 %v1415_v11  ;;  %v1440_v11 = vld [vmem:[%s1645_s29 + $0x28] sm:$0xff] }
 0x13f   : > { %v609_v56 = vpop.f32.mrf.mxu2  ;;  %v632_v57 = vpop.f32.mrf.mxu3 }
 0x140   : > { %v633_v58 = vadd.f32 %v632_v57, %v609_v56 }
 0x142   : > { %1390 = vmatmul.msk.f32.gmra.mxu3 %vm638_vm1, %v633_v58  ;;  %1392 = vmatmul.msk.f32.gmra.mxu0 %vm638_vm1, %v633_v58 }
 0x143   : > { %1402 = vmatmul.msk.f32.gmra.mxu2 %vm440_vm0, %v1396_v59 }
 0x14a   : > { %1407 = vmatmul.msk.f32.vlgmr.msrb.gmra.mxu3 %vm440_vm0, %v1395_v55 }
 0x14b   : > { %1403 = vmatmul.msk.f32.gmra.mxu2 %vm440_vm0, %v1397_v60 }
 0x152   : > { %1408 = vmatmul.msk.f32.gmra.mxu3 %vm440_vm0, %v1396_v59 }
 0x153   : > { %1404 = vmatmul.msk.f32.gmra.mxu2 %vm440_vm0, %v1398_v61 }
 0x15a   : > { %1409 = vmatmul.msk.f32.gmra.mxu3 %vm440_vm0, %v1397_v60 }
 0x15b   : > { %1430 = vmatmul.msk.f32.vlgmr.msra.gmra.mxu2 %vm638_vm1, %v1427_v0 }
 0x162   : > { %1410 = vmatmul.msk.f32.gmra.mxu3 %vm440_vm0, %v1398_v61 }
 0x163   : > { %1431 = vmatmul.msk.f32.gmra.mxu2 %vm638_vm1, %v1428_v5 }
 0x16a   : > { %1433 = vmatmul.msk.f32.vlgmr.msra.gmra.mxu3 %vm638_vm1, %v1427_v0 }
 0x172   : > { %1434 = vmatmul.msk.f32.gmra.mxu3 %vm638_vm1, %v1428_v5 }
 0x1a7   : > { %v800_v6 = vpop.f32.mrf.mxu1 }
 0x1ad   : > { %v717_v1 = vpop.f32.mrf.mxu2 }
 0x1af   : > { %v803_v17 = vpop.f32.mrf.mxu1 }
 0x1b5   : > { %v720_v7 = vpop.f32.mrf.mxu2 }
 0x1b7   : > { %v777_v8 = vpop.f32.mrf.mxu0 }
 0x1b8   : > { %v801_v10 = vadd.f32 %v800_v6, %v777_v8 }
 0x1ba   : > { %v808_v12 = vadd.f32 %v806_v9, %v801_v10 }
 0x1bc   : > { %810 = vst.msk [vmem:[%s1653_s10 + $0x10] sm:$0xff] %vm638_vm1, %v808_v12 }
 0x1bd   : > { %v746_v13 = vpop.f32.mrf.mxu3 }
 0x1be   : > { %v752_v15 = vsub.f32 %v717_v1, %v746_v13  ;;  %v849_v16 = vpop.f32.mrf.mxu2 }
 0x1bf   : > { %v780_v18 = vpop.f32.mrf.mxu0 }
 0x1c0   : > { %v756_v20 = vadd.f32 %v754_v14, %v752_v15  ;;  %v804_v21 = vadd.f32 %v803_v17, %v780_v18  ;;  %v1446_v17 = vld [vmem:[%s1645_s29 + $0x38] sm:$0xff] }
 0x1c2   : > { %758 = vst.msk [vmem:[%s1653_s10] sm:$0xff] %vm638_vm1, %v756_v20  ;;  %v809_v22 = vadd.f32 %v807_v19, %v804_v21 }
 0x1c4   : > { %811 = vst.msk [vmem:[%s1653_s10 + $0x18] sm:$0xff] %vm638_vm1, %v809_v22 }
 0x1c5   : > { %v749_v23 = vpop.f32.mrf.mxu3 }
 0x1c6   : > { %v753_v25 = vsub.f32 %v720_v7, %v749_v23  ;;  %v852_v26 = vpop.f32.mrf.mxu2  ;;  %v1445_v7 = vld [vmem:[%s1645_s29 + $0x30] sm:$0xff] }
 0x1c8   : > { %v757_v27 = vadd.f32 %v755_v24, %v753_v25 }
 0x1ca   : > { %759 = vst.msk [vmem:[%s1653_s10 + $0x8] sm:$0xff] %vm638_vm1, %v757_v27 }
 0x1cd   : > { %v880_v28 = vpop.f32.mrf.mxu3 }
 0x1ce   : > { %v855_v29 = vpop.f32.mrf.mxu2 }
 0x1cf   : > { %v899_v31 = vadd.f32 %v880_v28, %v855_v29 }
 0x1d1   : > { %v903_v32 = vadd.f32 %v1413_v30, %v899_v31 }
 0x1d3   : > { %1421 = vmatmul.msk.f32.vlgmr.msrb.gmra.mxu1 %vm440_vm0, %v903_v32 }
 0x1d5   : > { %v883_v33 = vpop.f32.mrf.mxu3 }
 0x1d6   : > { %v858_v34 = vpop.f32.mrf.mxu2 }
 0x1d7   : > { %v900_v36 = vadd.f32 %v883_v33, %v858_v34 }
 0x1d9   : > { %v904_v37 = vadd.f32 %v1414_v35, %v900_v36 }
 0x1db   : > { %1422 = vmatmul.msk.f32.gmra.mxu1 %vm440_vm0, %v904_v37 }
 0x1dd   : > { %v886_v38 = vpop.f32.mrf.mxu3 }
 0x1de   : > { %v892_v40 = vsub.f32 %v849_v16, %v886_v38  ;;  %v1044_v46 = vpop.f32.mrf.mxu2 }
 0x1e0   : > { %v897_v41 = vadd.f32 %v1411_v39, %v892_v40 }
 0x1e2   : > { %1419 = vmatmul.msk.f32.vlgmr.msrb.gmra.mxu0 %vm440_vm0, %v897_v41 }
 0x1e3   : > { %1425 = vmatmul.msk.f32.vlgmr.msra.gmra.mxu1 %vm440_vm0, %v897_v41 }
 0x1e5   : > { %v889_v42 = vpop.f32.mrf.mxu3 }
 0x1e6   : > { %v893_v44 = vsub.f32 %v852_v26, %v889_v42  ;;  %v1047_v48 = vpop.f32.mrf.mxu2 }
 0x1e8   : > { %v898_v45 = vadd.f32 %v1412_v43, %v893_v44 }
 0x1ea   : > { %1420 = vmatmul.msk.f32.gmra.mxu0 %vm440_vm0, %v898_v45 }
 0x1eb   : > { %1426 = vmatmul.msk.f32.gmra.mxu1 %vm440_vm0, %v898_v45 }
 0x1ed   : > { %v1068_v47 = vpop.f32.mrf.mxu3 }
 0x1ee   : > { %v1075_v50 = vadd.f32 %v1068_v47, %v1047_v48 }
 0x1f0   : > { %1126 = vmatpush.msrb.mxu1 %v1075_v50  ;;  %1190 = vmatpush.msrb.mxu3 %v1075_v50 }
 0x1f2   : > { %1423 = vmatmul.msk.f32.vlgmr.msra.gmra.mxu0 %vm440_vm0, %v903_v32 }
 0x1f5   : > { %v1071_v49 = vpop.f32.mrf.mxu3 }
 0x1f6   : > { %v1074_v51 = vsub.f32 %v1044_v46, %v1071_v49 }
 0x1f8   : > { %1097 = vmatpush.msrb.mxu0 %v1074_v51  ;;  %1167 = vmatpush.msrb.mxu2 %v1074_v51 }
 0x1fa   : > { %1424 = vmatmul.msk.f32.gmra.mxu0 %vm440_vm0, %v904_v37 }
 0x250   : > { %v962_v52 = vpop.f32.mrf.mxu1 }
 0x258   : > { %v965_v55 = vpop.f32.mrf.mxu1 }
 0x25f   : > { %v933_v53 = vpop.f32.mrf.mxu0 }
 0x260   : > { %v968_v54 = vsub.f32 %v933_v53, %v962_v52  ;;  %v1010_v58 = vpop.f32.mrf.mxu1 }
 0x262   : > { %1435 = vmatmul.msk.f32.vlgmr.msrb.gmra.mxu0 %vm638_vm1, %v968_v54  ;;  %1443 = vmatmul.msk.f32.vlgmr.msrb.gmra.mxu3 %vm638_vm1, %v968_v54 }
 0x267   : > { %v936_v56 = vpop.f32.mrf.mxu0 }
 0x268   : > { %v969_v57 = vsub.f32 %v936_v56, %v965_v55  ;;  %v1013_v61 = vpop.f32.mrf.mxu1 }
 0x26a   : > { %1436 = vmatmul.msk.f32.gmra.mxu0 %vm638_vm1, %v969_v57  ;;  %1444 = vmatmul.msk.f32.gmra.mxu3 %vm638_vm1, %v969_v57 }
 0x26f   : > { %v987_v59 = vpop.f32.mrf.mxu0 }
 0x270   : > { %v1011_v60 = vadd.f32 %v1010_v58, %v987_v59 }
 0x272   : > { %1437 = vmatmul.msk.f32.vlgmr.msrb.gmra.mxu1 %vm638_vm1, %v1011_v60  ;;  %1441 = vmatmul.msk.f32.vlgmr.msrb.gmra.mxu2 %vm638_vm1, %v1011_v60 }
 0x277   : > { %v990_v62 = vpop.f32.mrf.mxu0 }
 0x278   : > { %v1014_v63 = vadd.f32 %v1013_v61, %v990_v62 }
 0x27a   : > { %1438 = vmatmul.msk.f32.gmra.mxu1 %vm638_vm1, %v1014_v63  ;;  %1442 = vmatmul.msk.f32.gmra.mxu2 %vm638_vm1, %v1014_v63 }
 0x2df   : > { %v1099_v0 = vpop.f32.mrf.mxu0 }
 0x2e5   : > { %v1192_v5 = vpop.f32.mrf.mxu3 }
 0x2e7   : > { %v1102_v9 = vpop.f32.mrf.mxu0 }
 0x2ed   : > { %v1195_v15 = vpop.f32.mrf.mxu3 }
 0x2ef   : > { %v1128_v1 = vpop.f32.mrf.mxu1 }
 0x2f0   : > { %v1134_v3 = vsub.f32 %v1099_v0, %v1128_v1 }
 0x2f2   : > { %v1139_v4 = vadd.f32 %v1439_v2, %v1134_v3 }
 0x2f4   : > { %1143 = vrot.lane.b32.xlu0 %v1139_v4, %s1474_s25 }
 0x2f5   : > { %v1169_v6 = vpop.f32.mrf.mxu2 }
 0x2f6   : > { %v1193_v8 = vadd.f32 %v1192_v5, %v1169_v6 }
 0x2f7   : > { %v1131_v10 = vpop.f32.mrf.mxu1 }
 0x2f8   : > { %v1135_v12 = vsub.f32 %v1102_v9, %v1131_v10  ;;  %v1200_v13 = vadd.f32 %v1445_v7, %v1193_v8 }
 0x2fa   : > { %v1140_v14 = vadd.f32 %v1440_v11, %v1135_v12  ;;  %1204 = vrot.lane.b32.xlu1 %v1200_v13, %s1474_s25 }
 0x2fc   : > { %1145 = vrot.lane.b32.xlu0 %v1140_v14, %s1474_s25 }
 0x2fd   : > { %v1172_v16 = vpop.f32.mrf.mxu2 }
 0x2fe   : > { %v1196_v18 = vadd.f32 %v1195_v15, %v1172_v16 }
 0x300   : > { %v1201_v19 = vadd.f32 %v1446_v17, %v1196_v18 }
 0x302   : > { %1206 = vrot.lane.b32.xlu1 %v1201_v19, %s1474_s25 }
 0x366   : > { %v1144_v20 = vpop.permute.xlu0 %1143 }
 0x367   : > { %1150 = vst.msk [vmem:[%s1653_s10] sm:$0xff] %vm1149_vm2, %v1144_v20 }
 0x36c   : > { %v1205_v21 = vpop.permute.xlu1 %1204 }
 0x36d   : > { %1210 = vst.msk [vmem:[%s1653_s10 + $0x10] sm:$0xff] %vm1149_vm2, %v1205_v21 }
 0x36e   : > { %v1146_v22 = vpop.permute.xlu0 %1145 }
 0x36f   : > { %1151 = vst.msk [vmem:[%s1653_s10 + $0x8] sm:$0xff] %vm1149_vm2, %v1146_v22 }
 0x374   : > { %v1207_v23 = vpop.permute.xlu1 %1206 }
 0x375   : > { %1211 = vst.msk [vmem:[%s1653_s10 + $0x18] sm:$0xff] %vm1149_vm2, %v1207_v23 }
 0x376 PF: > { %s17_s24 = sadd.s32 1, %s1472_s24  }
 0x377   : > { %p14_p5 = scmp.ge.s32.totalorder %s17_s24, 4  }
 0x379   :  { %16 = sbr.rel (!%p14_p5) target bundleno = 1 (0x1), region = 103 }

</bundles_post_ra>
